<compile_context>
chip_gen: v7x
topology: tpu7x:2x2x1
jax: 0.10.0
libtpu: 0.0.40
codegen_flags: <defaults>
</compile_context>

<pallas_src>
import functools

import jax
import jax.numpy as jnp
from jax.experimental import pallas as pl
from jax.experimental.pallas import tpu as pltpu


_PADMAX = 2      # largest depthwise halo (5x5 conv, pad=2)
_COL0 = 8        # sublane-aligned column offset of the interior in the pad scratch


def _relu(v):
    return jnp.maximum(v, 0.0)


# ---------------------------------------------------------------------------
# Fused per-level kernel: one grid step == one batch element.
# ---------------------------------------------------------------------------

def _level_kernel(*refs, H, W, Hh, Wh, C, has_prev, has_trans):
    HW = H * W
    refs = list(refs)
    pad_ref = refs.pop()                           # VMEM scratch (H+4, W+10, C)
    trans_ref = refs.pop() if has_trans else None
    out_ref = refs.pop()
    it = iter(refs)

    def pw(x, w_ref, sc_ref, sh_ref):
        # 1x1 conv (folded BN) + ReLU on (HW, Cin) -> (HW, Cout)
        y = jnp.dot(x, w_ref[...], preferred_element_type=jnp.float32)
        return _relu(y * sc_ref[...] + sh_ref[...])

    def dw(x2d, wd_ref, sc_ref, sh_ref, K, pad):
        # depthwise KxK conv (stride 1, 'same') + folded BN + ReLU, VMEM halo.
        x3 = x2d.reshape(H, W, C)
        pad_ref[...] = jnp.zeros_like(pad_ref)
        pad_ref[pad:pad + H, _COL0:_COL0 + W, :] = x3      # aligned interior store
        wd = wd_ref[...]                                   # (K*K, C): load ONCE
        acc = jnp.zeros((H, W, C), jnp.float32)
        for dy in range(K):
            for dx in range(K):
                c0 = _COL0 - pad + dx
                tap = pad_ref[dy:dy + H, c0:c0 + W, :]
                idx = dy * K + dx
                acc = acc + tap * wd[idx:idx + 1, :][None]
        y = acc * sc_ref[...][None] + sh_ref[...][None]
        return _relu(y).reshape(HW, C)

    # -- layer 1: 1x1 conv.  For levels > 0 the nearest-2x upsample of the
    #    previous trans output and the channel concat are fused in here:
    #    x1 = relu(bn( U @ (t @ W_up) + skip @ W_skip )).
    if has_prev:
        t_ref, s_ref = next(it), next(it)
        w1u_ref, w1s_ref, sc1_ref, sh1_ref = next(it), next(it), next(it), next(it)
        a_half = jnp.dot(t_ref[0], w1u_ref[...], preferred_element_type=jnp.float32)
        q = jax.lax.broadcasted_iota(jnp.int32, (HW, Hh * Wh), 0)   # output flat idx
        r = jax.lax.broadcasted_iota(jnp.int32, (HW, Hh * Wh), 1)   # input flat idx
        src = (q // (2 * W)) * Wh + (q % W) // 2
        up_mat = (src == r).astype(jnp.float32)        # 0/1 row-duplication matrix
        z = jnp.dot(up_mat, a_half, preferred_element_type=jnp.float32)
        z = z + jnp.dot(s_ref[0], w1s_ref[...], preferred_element_type=jnp.float32)
        x = _relu(z * sc1_ref[...] + sh1_ref[...])
    else:
        x_ref = next(it)
        w1_ref, sc1_ref, sh1_ref = next(it), next(it), next(it)
        x = pw(x_ref[0], w1_ref, sc1_ref, sh1_ref)

    # -- rest of InputModule: sep5 -> 1x1 -> sep5 -> 1x1
    x = dw(x, next(it), next(it), next(it), 5, 2)
    x = pw(x, next(it), next(it), next(it))            # (HW, 2C)
    x = pw(x, next(it), next(it), next(it))            # (HW, C)
    x = dw(x, next(it), next(it), next(it), 5, 2)
    x = pw(x, next(it), next(it), next(it))            # (HW, 2C)
    mod_out = pw(x, next(it), next(it), next(it))      # (HW, C)

    # -- output branch: 3x3 separable conv
    y = dw(mod_out, next(it), next(it), next(it), 3, 1)
    y = pw(y, next(it), next(it), next(it))            # (HW, 2C)
    out_ref[0] = y.astype(out_ref.dtype)

    # -- trans conv feeding the next pyramid level
    if has_trans:
        trans_ref[0] = pw(mod_out, next(it), next(it), next(it)).astype(trans_ref.dtype)


# ---------------------------------------------------------------------------
# Per-level wrapper: builds the flat input list + specs and calls pallas_call.
# ---------------------------------------------------------------------------

def run_level(x_skip, t_prev, module_p, conv_p, trans_p):
    """One pyramid level as a single fused pallas_call.

    x_skip : (N, H, W, Cs) NHWC backbone feature for this level.
    t_prev : (N, H//2, W//2, Cp) previous level's trans output, or None.
    Returns (out (N, H, W, 2C), trans (N, H, W, C) or None).
    """
    N, H, W, Cs = x_skip.shape
    HW = H * W
    has_prev = t_prev is not None
    has_trans = trans_p is not None
    C = module_p[0]["w"].shape[1]
    C2 = 2 * C

    arrays, in_specs = [], []

    def add_batched(arr):
        arrays.append(arr)
        in_specs.append(pl.BlockSpec(
            (1,) + arr.shape[1:],
            lambda n, nd=arr.ndim: (n,) + (0,) * (nd - 1)))

    def add_const(arr):
        arrays.append(arr)
        in_specs.append(pl.BlockSpec(
            arr.shape, lambda n, nd=arr.ndim: (0,) * nd))

    def add_cbr(p):                     # conv weight + folded-BN scale / shift
        cout = p["w"].shape[-1]
        add_const(p["w"])
        add_const(p["scale"].reshape(1, cout))
        add_const(p["shift"].reshape(1, cout))

    if has_prev:
        _, Hh, Wh, Cp = t_prev.shape
        assert H == 2 * Hh and W == 2 * Wh
        add_batched(t_prev.reshape(N, Hh * Wh, Cp))
        add_batched(x_skip.reshape(N, HW, Cs))
        w1 = module_p[0]["w"]           # (Cp + Cs, C): rows [:Cp] act on upsampled path
        add_const(w1[:Cp, :])
        add_const(w1[Cp:, :])
        add_const(module_p[0]["scale"].reshape(1, C))
        add_const(module_p[0]["shift"].reshape(1, C))
    else:
        Hh, Wh = H, W                   # unused in the kernel for this case
        add_batched(x_skip.reshape(N, HW, Cs))
        add_cbr(module_p[0])

    add_cbr(module_p[1]["dw"]); add_cbr(module_p[1]["pw"])
    add_cbr(module_p[2])
    add_cbr(module_p[3]["dw"]); add_cbr(module_p[3]["pw"])
    add_cbr(module_p[4])
    add_cbr(conv_p["dw"]); add_cbr(conv_p["pw"])
    if has_trans:
        add_cbr(trans_p)

    out_shapes = [jax.ShapeDtypeStruct((N, HW, C2), jnp.float32)]
    out_specs = [pl.BlockSpec((1, HW, C2), lambda n: (n, 0, 0))]
    if has_trans:
        out_shapes.append(jax.ShapeDtypeStruct((N, HW, C), jnp.float32))
        out_specs.append(pl.BlockSpec((1, HW, C), lambda n: (n, 0, 0)))

    kern = functools.partial(_level_kernel, H=H, W=W, Hh=Hh, Wh=Wh, C=C,
                             has_prev=has_prev, has_trans=has_trans)
    res = pl.pallas_call(
        kern,
        out_shape=tuple(out_shapes),
        grid=(N,),
        in_specs=in_specs,
        out_specs=tuple(out_specs),
        scratch_shapes=[pltpu.VMEM((H + 2 * _PADMAX, W + _COL0 + _PADMAX, C),
                                   jnp.float32)],
        compiler_params=pltpu.CompilerParams(
            dimension_semantics=("parallel",)),
    )(*arrays)

    out = res[0].reshape(N, H, W, C2)
    trans = res[1].reshape(N, H, W, C) if has_trans else None
    return out, trans


# ---------------------------------------------------------------------------
# Forward pass (mirrors YoloGroupNeck.forward)
# ---------------------------------------------------------------------------

def yolo_group_neck_forward(x_list, params, backbone_idx):
    n = len(backbone_idx)
    outputs = []
    t_prev = None
    for i in range(n):
        x_skip = x_list[backbone_idx[i]]
        trans_p = params[f"trans_conv{i}"] if i < n - 1 else None
        out, t_prev = run_level(x_skip, t_prev, params[f"module{i}"],
                                params[f"conv{i}"], trans_p)
        outputs.append(out)
    return outputs


# ---------------------------------------------------------------------------
# Deterministic parameter construction (synthetic; conv bias = 0 per xavier_init,
# BN params folded into per-channel scale / shift)
# ---------------------------------------------------------------------------

_BN_EPS = 1e-5


def _fold_bn(key, cout, bias):
    kg, kb, km, kv = jax.random.split(key, 4)
    gamma = jax.random.uniform(kg, (cout,), jnp.float32, 0.5, 1.5)
    beta = jax.random.uniform(kb, (cout,), jnp.float32, -0.1, 0.1)
    mean = jax.random.uniform(km, (cout,), jnp.float32, -0.1, 0.1)
    var = jax.random.uniform(kv, (cout,), jnp.float32, 0.5, 1.5)
    scale = gamma / jnp.sqrt(var + _BN_EPS)
    shift = (bias - mean) * scale + beta
    return scale, shift


def make_conv_bn_params(key, cin, cout):
    kw, kbn = jax.random.split(key)
    limit = (6.0 / (cin + cout)) ** 0.5                 # xavier uniform, 1x1 conv
    w = jax.random.uniform(kw, (cin, cout), jnp.float32, -limit, limit)
    bias = jnp.zeros((cout,), jnp.float32)              # xavier_init -> bias 0
    scale, shift = _fold_bn(kbn, cout, bias)
    return {"w": w, "scale": scale, "shift": shift}


def make_dw_bn_params(key, c, K):
    kw, kbn = jax.random.split(key)
    limit = (6.0 / (2.0 * K * K)) ** 0.5                # xavier uniform, depthwise
    w = jax.random.uniform(kw, (K * K, c), jnp.float32, -limit, limit)
    bias = jnp.zeros((c,), jnp.float32)
    scale, shift = _fold_bn(kbn, c, bias)
    return {"w": w, "scale": scale, "shift": shift}


def make_sep_params(key, cin, cout, K):
    kd, kp = jax.random.split(key)
    return {"dw": make_dw_bn_params(kd, cin, K),
            "pw": make_conv_bn_params(kp, cin, cout)}


def make_input_module_params(key, cin, cout):
    ks = jax.random.split(key, 5)
    return [
        make_conv_bn_params(ks[0], cin, cout),
        make_sep_params(ks[1], cout, cout * 2, 5),
        make_conv_bn_params(ks[2], cout * 2, cout),
        make_sep_params(ks[3], cout, cout * 2, 5),
        make_conv_bn_params(ks[4], cout * 2, cout),
    ]


def make_neck_params(key, backbone_idx, in_channels_list, out_channels_list):
    in_list = list(in_channels_list)
    n = len(backbone_idx)
    keys = jax.random.split(key, 3 * n)
    params = {}
    for i in range(n):
        c = out_channels_list[i]
        if i > 0:
            in_list[i] += out_channels_list[i - 1]
        params[f"module{i}"] = make_input_module_params(keys[3 * i], in_list[i], c)
        params[f"conv{i}"] = make_sep_params(keys[3 * i + 1], c, c * 2, 3)
        if i < n - 1:
            params[f"trans_conv{i}"] = make_conv_bn_params(keys[3 * i + 2], c, c)
    return params


# ---------------------------------------------------------------------------

if __name__ == "__main__":
    key = jax.random.PRNGKey(0)
    k0, k1, k2, kp = jax.random.split(key, 4)

    # Small synthetic backbone pyramid (NHWC). backbone_idx walks deep -> shallow.
    backbone_idx = [2, 1, 0]
    in_channels_list = [12, 8, 4]     # channels of x[2], x[1](+prev), x[0](+prev)
    out_channels_list = [8, 4, 2]
    N = 2
    x_list = [
        jax.random.normal(k0, (N, 32, 32, 4), jnp.float32),   # x[0]: shallow/large
        jax.random.normal(k1, (N, 16, 16, 8), jnp.float32),   # x[1]
        jax.random.normal(k2, (N, 8, 8, 12), jnp.float32),    # x[2]: deep/small
    ]

    params = make_neck_params(kp, backbone_idx, in_channels_list, out_channels_list)

    outs = yolo_group_neck_forward(x_list, params, backbone_idx)
    for o in outs:
        jax.block_until_ready(o)

    # Expected output shapes (NHWC): (2,8,8,16), (2,16,16,8), (2,32,32,4)
    assert outs[0].shape == (N, 8, 8, 16)
    assert outs[1].shape == (N, 16, 16, 8)
    assert outs[2].shape == (N, 32, 32, 4)
    print("KERNEL_OK")
</pallas_src>

<mosaic_0001>
module attributes {stable_mosaic.version = 11 : i64} {
  func.func @_level_kernel(%arg0: i32, %arg1: memref<1x64x12xf32, #tpu.memory_space<vmem>>, %arg2: memref<12x8xf32, #tpu.memory_space<vmem>>, %arg3: memref<1x8xf32, #tpu.memory_space<vmem>>, %arg4: memref<1x8xf32, #tpu.memory_space<vmem>>, %arg5: memref<25x8xf32, #tpu.memory_space<vmem>>, %arg6: memref<1x8xf32, #tpu.memory_space<vmem>>, %arg7: memref<1x8xf32, #tpu.memory_space<vmem>>, %arg8: memref<8x16xf32, #tpu.memory_space<vmem>>, %arg9: memref<1x16xf32, #tpu.memory_space<vmem>>, %arg10: memref<1x16xf32, #tpu.memory_space<vmem>>, %arg11: memref<16x8xf32, #tpu.memory_space<vmem>>, %arg12: memref<1x8xf32, #tpu.memory_space<vmem>>, %arg13: memref<1x8xf32, #tpu.memory_space<vmem>>, %arg14: memref<25x8xf32, #tpu.memory_space<vmem>>, %arg15: memref<1x8xf32, #tpu.memory_space<vmem>>, %arg16: memref<1x8xf32, #tpu.memory_space<vmem>>, %arg17: memref<8x16xf32, #tpu.memory_space<vmem>>, %arg18: memref<1x16xf32, #tpu.memory_space<vmem>>, %arg19: memref<1x16xf32, #tpu.memory_space<vmem>>, %arg20: memref<16x8xf32, #tpu.memory_space<vmem>>, %arg21: memref<1x8xf32, #tpu.memory_space<vmem>>, %arg22: memref<1x8xf32, #tpu.memory_space<vmem>>, %arg23: memref<9x8xf32, #tpu.memory_space<vmem>>, %arg24: memref<1x8xf32, #tpu.memory_space<vmem>>, %arg25: memref<1x8xf32, #tpu.memory_space<vmem>>, %arg26: memref<8x16xf32, #tpu.memory_space<vmem>>, %arg27: memref<1x16xf32, #tpu.memory_space<vmem>>, %arg28: memref<1x16xf32, #tpu.memory_space<vmem>>, %arg29: memref<8x8xf32, #tpu.memory_space<vmem>>, %arg30: memref<1x8xf32, #tpu.memory_space<vmem>>, %arg31: memref<1x8xf32, #tpu.memory_space<vmem>>, %arg32: memref<1x64x16xf32, #tpu.memory_space<vmem>>, %arg33: memref<1x64x8xf32, #tpu.memory_space<vmem>>, %arg34: memref<12x18x8xf32, #tpu.memory_space<vmem>>) attributes {dimension_semantics = [#tpu.dimension_semantics<parallel>], iteration_bounds = array<i64: 2>, scalar_prefetch = 0 : i64, scratch_operands = 1 : i64, tpu.core_type = #tpu.core_type<tc>, window_params = [{transform_indices = @transform_0, window_bounds = array<i64: 1, 64, 12>}, {pipeline_mode = #tpu.pipeline_mode<synchronous>, transform_indices = @transform_1, window_bounds = array<i64: 12, 8>}, {pipeline_mode = #tpu.pipeline_mode<synchronous>, transform_indices = @transform_2, window_bounds = array<i64: 1, 8>}, {pipeline_mode = #tpu.pipeline_mode<synchronous>, transform_indices = @transform_3, window_bounds = array<i64: 1, 8>}, {pipeline_mode = #tpu.pipeline_mode<synchronous>, transform_indices = @transform_4, window_bounds = array<i64: 25, 8>}, {pipeline_mode = #tpu.pipeline_mode<synchronous>, transform_indices = @transform_5, window_bounds = array<i64: 1, 8>}, {pipeline_mode = #tpu.pipeline_mode<synchronous>, transform_indices = @transform_6, window_bounds = array<i64: 1, 8>}, {pipeline_mode = #tpu.pipeline_mode<synchronous>, transform_indices = @transform_7, window_bounds = array<i64: 8, 16>}, {pipeline_mode = #tpu.pipeline_mode<synchronous>, transform_indices = @transform_8, window_bounds = array<i64: 1, 16>}, {pipeline_mode = #tpu.pipeline_mode<synchronous>, transform_indices = @transform_9, window_bounds = array<i64: 1, 16>}, {pipeline_mode = #tpu.pipeline_mode<synchronous>, transform_indices = @transform_10, window_bounds = array<i64: 16, 8>}, {pipeline_mode = #tpu.pipeline_mode<synchronous>, transform_indices = @transform_11, window_bounds = array<i64: 1, 8>}, {pipeline_mode = #tpu.pipeline_mode<synchronous>, transform_indices = @transform_12, window_bounds = array<i64: 1, 8>}, {pipeline_mode = #tpu.pipeline_mode<synchronous>, transform_indices = @transform_13, window_bounds = array<i64: 25, 8>}, {pipeline_mode = #tpu.pipeline_mode<synchronous>, transform_indices = @transform_14, window_bounds = array<i64: 1, 8>}, {pipeline_mode = #tpu.pipeline_mode<synchronous>, transform_indices = @transform_15, window_bounds = array<i64: 1, 8>}, {pipeline_mode = #tpu.pipeline_mode<synchronous>, transform_indices = @transform_16, window_bounds = array<i64: 8, 16>}, {pipeline_mode = #tpu.pipeline_mode<synchronous>, transform_indices = @transform_17, window_bounds = array<i64: 1, 16>}, {pipeline_mode = #tpu.pipeline_mode<synchronous>, transform_indices = @transform_18, window_bounds = array<i64: 1, 16>}, {pipeline_mode = #tpu.pipeline_mode<synchronous>, transform_indices = @transform_19, window_bounds = array<i64: 16, 8>}, {pipeline_mode = #tpu.pipeline_mode<synchronous>, transform_indices = @transform_20, window_bounds = array<i64: 1, 8>}, {pipeline_mode = #tpu.pipeline_mode<synchronous>, transform_indices = @transform_21, window_bounds = array<i64: 1, 8>}, {pipeline_mode = #tpu.pipeline_mode<synchronous>, transform_indices = @transform_22, window_bounds = array<i64: 9, 8>}, {pipeline_mode = #tpu.pipeline_mode<synchronous>, transform_indices = @transform_23, window_bounds = array<i64: 1, 8>}, {pipeline_mode = #tpu.pipeline_mode<synchronous>, transform_indices = @transform_24, window_bounds = array<i64: 1, 8>}, {pipeline_mode = #tpu.pipeline_mode<synchronous>, transform_indices = @transform_25, window_bounds = array<i64: 8, 16>}, {pipeline_mode = #tpu.pipeline_mode<synchronous>, transform_indices = @transform_26, window_bounds = array<i64: 1, 16>}, {pipeline_mode = #tpu.pipeline_mode<synchronous>, transform_indices = @transform_27, window_bounds = array<i64: 1, 16>}, {pipeline_mode = #tpu.pipeline_mode<synchronous>, transform_indices = @transform_28, window_bounds = array<i64: 8, 8>}, {pipeline_mode = #tpu.pipeline_mode<synchronous>, transform_indices = @transform_29, window_bounds = array<i64: 1, 8>}, {pipeline_mode = #tpu.pipeline_mode<synchronous>, transform_indices = @transform_30, window_bounds = array<i64: 1, 8>}, {transform_indices = @transform_31, window_bounds = array<i64: 1, 64, 16>}, {transform_indices = @transform_32, window_bounds = array<i64: 1, 64, 8>}]} {
    %c0 = arith.constant 0 : index
    %c0_0 = arith.constant 0 : index
    %c0_1 = arith.constant 0 : index
    %0 = vector.load %arg1[%c0, %c0_0, %c0_1] : memref<1x64x12xf32, #tpu.memory_space<vmem>>, vector<1x64x12xf32>
    %1 = vector.shape_cast %0 : vector<1x64x12xf32> to vector<64x12xf32>
    %c0_2 = arith.constant 0 : index
    %c0_3 = arith.constant 0 : index
    %2 = vector.load %arg2[%c0_2, %c0_3] : memref<12x8xf32, #tpu.memory_space<vmem>>, vector<12x8xf32>
    %cst = arith.constant dense<0.000000e+00> : vector<64x8xf32>
    %3 = tpu.matmul %1, %2, %cst {dimension_numbers = #tpu.dot_dimension_numbers<[1], [0], [0], [1], [0, 0, 1, 1], [], []>} : vector<64x12xf32>, vector<12x8xf32>, vector<64x8xf32> -> vector<64x8xf32>
    %c0_4 = arith.constant 0 : index
    %c0_5 = arith.constant 0 : index
    %4 = vector.load %arg3[%c0_4, %c0_5] : memref<1x8xf32, #tpu.memory_space<vmem>>, vector<1x8xf32>
    %5 = vector.broadcast %4 : vector<1x8xf32> to vector<64x8xf32>
    %6 = arith.mulf %3, %5 : vector<64x8xf32>
    %c0_6 = arith.constant 0 : index
    %c0_7 = arith.constant 0 : index
    %7 = vector.load %arg4[%c0_6, %c0_7] : memref<1x8xf32, #tpu.memory_space<vmem>>, vector<1x8xf32>
    %8 = vector.broadcast %7 : vector<1x8xf32> to vector<64x8xf32>
    %9 = arith.addf %6, %8 : vector<64x8xf32>
    %cst_8 = arith.constant 0.000000e+00 : f32
    %10 = vector.broadcast %cst_8 : f32 to vector<64x8xf32>
    %11 = arith.maximumf %9, %10 : vector<64x8xf32>
    %12 = vector.shape_cast %11 : vector<64x8xf32> to vector<8x8x8xf32>
    %cst_9 = arith.constant 0.000000e+00 : f32
    %13 = vector.broadcast %cst_9 : f32 to vector<12x18x8xf32>
    %c0_10 = arith.constant 0 : index
    %c0_11 = arith.constant 0 : index
    %c0_12 = arith.constant 0 : index
    %14 = vector.load %arg34[%c0_10, %c0_11, %c0_12] : memref<12x18x8xf32, #tpu.memory_space<vmem>>, vector<12x18x8xf32>
    tpu.vector_store %arg34[%c0_10, %c0_11, %c0_12], %13 {strides = array<i32>} : memref<12x18x8xf32, #tpu.memory_space<vmem>>, vector<12x18x8xf32>,
    %c2 = arith.constant 2 : index
    %c8 = arith.constant 8 : index
    %c0_13 = arith.constant 0 : index
    %15 = vector.load %arg34[%c2, %c8, %c0_13] : memref<12x18x8xf32, #tpu.memory_space<vmem>>, vector<8x8x8xf32>
    tpu.vector_store %arg34[%c2, %c8, %c0_13], %12 {strides = array<i32>} : memref<12x18x8xf32, #tpu.memory_space<vmem>>, vector<8x8x8xf32>,
    %c0_14 = arith.constant 0 : index
    %c0_15 = arith.constant 0 : index
    %16 = vector.load %arg5[%c0_14, %c0_15] : memref<25x8xf32, #tpu.memory_space<vmem>>, vector<25x8xf32>
    %cst_16 = arith.constant 0.000000e+00 : f32
    %17 = vector.broadcast %cst_16 : f32 to vector<8x8x8xf32>
    %c0_17 = arith.constant 0 : index
    %c6 = arith.constant 6 : index
    %c0_18 = arith.constant 0 : index
    %18 = vector.load %arg34[%c0_17, %c6, %c0_18] : memref<12x18x8xf32, #tpu.memory_space<vmem>>, vector<8x8x8xf32>
    %19 = vector.extract_strided_slice %16 {offsets = [0, 0], sizes = [1, 8], strides = [1, 1]} : vector<25x8xf32> to vector<1x8xf32>
    %20 = vector.shape_cast %19 : vector<1x8xf32> to vector<1x1x8xf32>
    %21 = vector.broadcast %20 : vector<1x1x8xf32> to vector<8x8x8xf32>
    %22 = arith.mulf %18, %21 : vector<8x8x8xf32>
    %23 = arith.addf %17, %22 : vector<8x8x8xf32>
    %c0_19 = arith.constant 0 : index
    %c7 = arith.constant 7 : index
    %c0_20 = arith.constant 0 : index
    %24 = vector.load %arg34[%c0_19, %c7, %c0_20] : memref<12x18x8xf32, #tpu.memory_space<vmem>>, vector<8x8x8xf32>
    %25 = vector.extract_strided_slice %16 {offsets = [1, 0], sizes = [1, 8], strides = [1, 1]} : vector<25x8xf32> to vector<1x8xf32>
    %26 = vector.shape_cast %25 : vector<1x8xf32> to vector<1x1x8xf32>
    %27 = vector.broadcast %26 : vector<1x1x8xf32> to vector<8x8x8xf32>
    %28 = arith.mulf %24, %27 : vector<8x8x8xf32>
    %29 = arith.addf %23, %28 : vector<8x8x8xf32>
    %c0_21 = arith.constant 0 : index
    %c8_22 = arith.constant 8 : index
    %c0_23 = arith.constant 0 : index
    %30 = vector.load %arg34[%c0_21, %c8_22, %c0_23] : memref<12x18x8xf32, #tpu.memory_space<vmem>>, vector<8x8x8xf32>
    %31 = vector.extract_strided_slice %16 {offsets = [2, 0], sizes = [1, 8], strides = [1, 1]} : vector<25x8xf32> to vector<1x8xf32>
    %32 = vector.shape_cast %31 : vector<1x8xf32> to vector<1x1x8xf32>
    %33 = vector.broadcast %32 : vector<1x1x8xf32> to vector<8x8x8xf32>
    %34 = arith.mulf %30, %33 : vector<8x8x8xf32>
    %35 = arith.addf %29, %34 : vector<8x8x8xf32>
    %c0_24 = arith.constant 0 : index
    %c9 = arith.constant 9 : index
    %c0_25 = arith.constant 0 : index
    %36 = vector.load %arg34[%c0_24, %c9, %c0_25] : memref<12x18x8xf32, #tpu.memory_space<vmem>>, vector<8x8x8xf32>
    %37 = vector.extract_strided_slice %16 {offsets = [3, 0], sizes = [1, 8], strides = [1, 1]} : vector<25x8xf32> to vector<1x8xf32>
    %38 = vector.shape_cast %37 : vector<1x8xf32> to vector<1x1x8xf32>
    %39 = vector.broadcast %38 : vector<1x1x8xf32> to vector<8x8x8xf32>
    %40 = arith.mulf %36, %39 : vector<8x8x8xf32>
    %41 = arith.addf %35, %40 : vector<8x8x8xf32>
    %c0_26 = arith.constant 0 : index
    %c10 = arith.constant 10 : index
    %c0_27 = arith.constant 0 : index
    %42 = vector.load %arg34[%c0_26, %c10, %c0_27] : memref<12x18x8xf32, #tpu.memory_space<vmem>>, vector<8x8x8xf32>
    %43 = vector.extract_strided_slice %16 {offsets = [4, 0], sizes = [1, 8], strides = [1, 1]} : vector<25x8xf32> to vector<1x8xf32>
    %44 = vector.shape_cast %43 : vector<1x8xf32> to vector<1x1x8xf32>
    %45 = vector.broadcast %44 : vector<1x1x8xf32> to vector<8x8x8xf32>
    %46 = arith.mulf %42, %45 : vector<8x8x8xf32>
    %47 = arith.addf %41, %46 : vector<8x8x8xf32>
    %c1 = arith.constant 1 : index
    %c6_28 = arith.constant 6 : index
    %c0_29 = arith.constant 0 : index
    %48 = vector.load %arg34[%c1, %c6_28, %c0_29] : memref<12x18x8xf32, #tpu.memory_space<vmem>>, vector<8x8x8xf32>
    %49 = vector.extract_strided_slice %16 {offsets = [5, 0], sizes = [1, 8], strides = [1, 1]} : vector<25x8xf32> to vector<1x8xf32>
    %50 = vector.shape_cast %49 : vector<1x8xf32> to vector<1x1x8xf32>
    %51 = vector.broadcast %50 : vector<1x1x8xf32> to vector<8x8x8xf32>
    %52 = arith.mulf %48, %51 : vector<8x8x8xf32>
    %53 = arith.addf %47, %52 : vector<8x8x8xf32>
    %c1_30 = arith.constant 1 : index
    %c7_31 = arith.constant 7 : index
    %c0_32 = arith.constant 0 : index
    %54 = vector.load %arg34[%c1_30, %c7_31, %c0_32] : memref<12x18x8xf32, #tpu.memory_space<vmem>>, vector<8x8x8xf32>
    %55 = vector.extract_strided_slice %16 {offsets = [6, 0], sizes = [1, 8], strides = [1, 1]} : vector<25x8xf32> to vector<1x8xf32>
    %56 = vector.shape_cast %55 : vector<1x8xf32> to vector<1x1x8xf32>
    %57 = vector.broadcast %56 : vector<1x1x8xf32> to vector<8x8x8xf32>
    %58 = arith.mulf %54, %57 : vector<8x8x8xf32>
    %59 = arith.addf %53, %58 : vector<8x8x8xf32>
    %c1_33 = arith.constant 1 : index
    %c8_34 = arith.constant 8 : index
    %c0_35 = arith.constant 0 : index
    %60 = vector.load %arg34[%c1_33, %c8_34, %c0_35] : memref<12x18x8xf32, #tpu.memory_space<vmem>>, vector<8x8x8xf32>
    %61 = vector.extract_strided_slice %16 {offsets = [7, 0], sizes = [1, 8], strides = [1, 1]} : vector<25x8xf32> to vector<1x8xf32>
    %62 = vector.shape_cast %61 : vector<1x8xf32> to vector<1x1x8xf32>
    %63 = vector.broadcast %62 : vector<1x1x8xf32> to vector<8x8x8xf32>
    %64 = arith.mulf %60, %63 : vector<8x8x8xf32>
    %65 = arith.addf %59, %64 : vector<8x8x8xf32>
    %c1_36 = arith.constant 1 : index
    %c9_37 = arith.constant 9 : index
    %c0_38 = arith.constant 0 : index
    %66 = vector.load %arg34[%c1_36, %c9_37, %c0_38] : memref<12x18x8xf32, #tpu.memory_space<vmem>>, vector<8x8x8xf32>
    %67 = vector.extract_strided_slice %16 {offsets = [8, 0], sizes = [1, 8], strides = [1, 1]} : vector<25x8xf32> to vector<1x8xf32>
    %68 = vector.shape_cast %67 : vector<1x8xf32> to vector<1x1x8xf32>
    %69 = vector.broadcast %68 : vector<1x1x8xf32> to vector<8x8x8xf32>
    %70 = arith.mulf %66, %69 : vector<8x8x8xf32>
    %71 = arith.addf %65, %70 : vector<8x8x8xf32>
    %c1_39 = arith.constant 1 : index
    %c10_40 = arith.constant 10 : index
    %c0_41 = arith.constant 0 : index
    %72 = vector.load %arg34[%c1_39, %c10_40, %c0_41] : memref<12x18x8xf32, #tpu.memory_space<vmem>>, vector<8x8x8xf32>
    %73 = vector.extract_strided_slice %16 {offsets = [9, 0], sizes = [1, 8], strides = [1, 1]} : vector<25x8xf32> to vector<1x8xf32>
    %74 = vector.shape_cast %73 : vector<1x8xf32> to vector<1x1x8xf32>
    %75 = vector.broadcast %74 : vector<1x1x8xf32> to vector<8x8x8xf32>
    %76 = arith.mulf %72, %75 : vector<8x8x8xf32>
    %77 = arith.addf %71, %76 : vector<8x8x8xf32>
    %c2_42 = arith.constant 2 : index
    %c6_43 = arith.constant 6 : index
    %c0_44 = arith.constant 0 : index
    %78 = vector.load %arg34[%c2_42, %c6_43, %c0_44] : memref<12x18x8xf32, #tpu.memory_space<vmem>>, vector<8x8x8xf32>
    %79 = vector.extract_strided_slice %16 {offsets = [10, 0], sizes = [1, 8], strides = [1, 1]} : vector<25x8xf32> to vector<1x8xf32>
    %80 = vector.shape_cast %79 : vector<1x8xf32> to vector<1x1x8xf32>
    %81 = vector.broadcast %80 : vector<1x1x8xf32> to vector<8x8x8xf32>
    %82 = arith.mulf %78, %81 : vector<8x8x8xf32>
    %83 = arith.addf %77, %82 : vector<8x8x8xf32>
    %c2_45 = arith.constant 2 : index
    %c7_46 = arith.constant 7 : index
    %c0_47 = arith.constant 0 : index
    %84 = vector.load %arg34[%c2_45, %c7_46, %c0_47] : memref<12x18x8xf32, #tpu.memory_space<vmem>>, vector<8x8x8xf32>
    %85 = vector.extract_strided_slice %16 {offsets = [11, 0], sizes = [1, 8], strides = [1, 1]} : vector<25x8xf32> to vector<1x8xf32>
    %86 = vector.shape_cast %85 : vector<1x8xf32> to vector<1x1x8xf32>
    %87 = vector.broadcast %86 : vector<1x1x8xf32> to vector<8x8x8xf32>
    %88 = arith.mulf %84, %87 : vector<8x8x8xf32>
    %89 = arith.addf %83, %88 : vector<8x8x8xf32>
    %c2_48 = arith.constant 2 : index
    %c8_49 = arith.constant 8 : index
    %c0_50 = arith.constant 0 : index
    %90 = vector.load %arg34[%c2_48, %c8_49, %c0_50] : memref<12x18x8xf32, #tpu.memory_space<vmem>>, vector<8x8x8xf32>
    %91 = vector.extract_strided_slice %16 {offsets = [12, 0], sizes = [1, 8], strides = [1, 1]} : vector<25x8xf32> to vector<1x8xf32>
    %92 = vector.shape_cast %91 : vector<1x8xf32> to vector<1x1x8xf32>
    %93 = vector.broadcast %92 : vector<1x1x8xf32> to vector<8x8x8xf32>
    %94 = arith.mulf %90, %93 : vector<8x8x8xf32>
    %95 = arith.addf %89, %94 : vector<8x8x8xf32>
    %c2_51 = arith.constant 2 : index
    %c9_52 = arith.constant 9 : index
    %c0_53 = arith.constant 0 : index
    %96 = vector.load %arg34[%c2_51, %c9_52, %c0_53] : memref<12x18x8xf32, #tpu.memory_space<vmem>>, vector<8x8x8xf32>
    %97 = vector.extract_strided_slice %16 {offsets = [13, 0], sizes = [1, 8], strides = [1, 1]} : vector<25x8xf32> to vector<1x8xf32>
    %98 = vector.shape_cast %97 : vector<1x8xf32> to vector<1x1x8xf32>
    %99 = vector.broadcast %98 : vector<1x1x8xf32> to vector<8x8x8xf32>
    %100 = arith.mulf %96, %99 : vector<8x8x8xf32>
    %101 = arith.addf %95, %100 : vector<8x8x8xf32>
    %c2_54 = arith.constant 2 : index
    %c10_55 = arith.constant 10 : index
    %c0_56 = arith.constant 0 : index
    %102 = vector.load %arg34[%c2_54, %c10_55, %c0_56] : memref<12x18x8xf32, #tpu.memory_space<vmem>>, vector<8x8x8xf32>
    %103 = vector.extract_strided_slice %16 {offsets = [14, 0], sizes = [1, 8], strides = [1, 1]} : vector<25x8xf32> to vector<1x8xf32>
    %104 = vector.shape_cast %103 : vector<1x8xf32> to vector<1x1x8xf32>
    %105 = vector.broadcast %104 : vector<1x1x8xf32> to vector<8x8x8xf32>
    %106 = arith.mulf %102, %105 : vector<8x8x8xf32>
    %107 = arith.addf %101, %106 : vector<8x8x8xf32>
    %c3 = arith.constant 3 : index
    %c6_57 = arith.constant 6 : index
    %c0_58 = arith.constant 0 : index
    %108 = vector.load %arg34[%c3, %c6_57, %c0_58] : memref<12x18x8xf32, #tpu.memory_space<vmem>>, vector<8x8x8xf32>
    %109 = vector.extract_strided_slice %16 {offsets = [15, 0], sizes = [1, 8], strides = [1, 1]} : vector<25x8xf32> to vector<1x8xf32>
    %110 = vector.shape_cast %109 : vector<1x8xf32> to vector<1x1x8xf32>
    %111 = vector.broadcast %110 : vector<1x1x8xf32> to vector<8x8x8xf32>
    %112 = arith.mulf %108, %111 : vector<8x8x8xf32>
    %113 = arith.addf %107, %112 : vector<8x8x8xf32>
    %c3_59 = arith.constant 3 : index
    %c7_60 = arith.constant 7 : index
    %c0_61 = arith.constant 0 : index
    %114 = vector.load %arg34[%c3_59, %c7_60, %c0_61] : memref<12x18x8xf32, #tpu.memory_space<vmem>>, vector<8x8x8xf32>
    %115 = vector.extract_strided_slice %16 {offsets = [16, 0], sizes = [1, 8], strides = [1, 1]} : vector<25x8xf32> to vector<1x8xf32>
    %116 = vector.shape_cast %115 : vector<1x8xf32> to vector<1x1x8xf32>
    %117 = vector.broadcast %116 : vector<1x1x8xf32> to vector<8x8x8xf32>
    %118 = arith.mulf %114, %117 : vector<8x8x8xf32>
    %119 = arith.addf %113, %118 : vector<8x8x8xf32>
    %c3_62 = arith.constant 3 : index
    %c8_63 = arith.constant 8 : index
    %c0_64 = arith.constant 0 : index
    %120 = vector.load %arg34[%c3_62, %c8_63, %c0_64] : memref<12x18x8xf32, #tpu.memory_space<vmem>>, vector<8x8x8xf32>
    %121 = vector.extract_strided_slice %16 {offsets = [17, 0], sizes = [1, 8], strides = [1, 1]} : vector<25x8xf32> to vector<1x8xf32>
    %122 = vector.shape_cast %121 : vector<1x8xf32> to vector<1x1x8xf32>
    %123 = vector.broadcast %122 : vector<1x1x8xf32> to vector<8x8x8xf32>
    %124 = arith.mulf %120, %123 : vector<8x8x8xf32>
    %125 = arith.addf %119, %124 : vector<8x8x8xf32>
    %c3_65 = arith.constant 3 : index
    %c9_66 = arith.constant 9 : index
    %c0_67 = arith.constant 0 : index
    %126 = vector.load %arg34[%c3_65, %c9_66, %c0_67] : memref<12x18x8xf32, #tpu.memory_space<vmem>>, vector<8x8x8xf32>
    %127 = vector.extract_strided_slice %16 {offsets = [18, 0], sizes = [1, 8], strides = [1, 1]} : vector<25x8xf32> to vector<1x8xf32>
    %128 = vector.shape_cast %127 : vector<1x8xf32> to vector<1x1x8xf32>
    %129 = vector.broadcast %128 : vector<1x1x8xf32> to vector<8x8x8xf32>
    %130 = arith.mulf %126, %129 : vector<8x8x8xf32>
    %131 = arith.addf %125, %130 : vector<8x8x8xf32>
    %c3_68 = arith.constant 3 : index
    %c10_69 = arith.constant 10 : index
    %c0_70 = arith.constant 0 : index
    %132 = vector.load %arg34[%c3_68, %c10_69, %c0_70] : memref<12x18x8xf32, #tpu.memory_space<vmem>>, vector<8x8x8xf32>
    %133 = vector.extract_strided_slice %16 {offsets = [19, 0], sizes = [1, 8], strides = [1, 1]} : vector<25x8xf32> to vector<1x8xf32>
    %134 = vector.shape_cast %133 : vector<1x8xf32> to vector<1x1x8xf32>
    %135 = vector.broadcast %134 : vector<1x1x8xf32> to vector<8x8x8xf32>
    %136 = arith.mulf %132, %135 : vector<8x8x8xf32>
    %137 = arith.addf %131, %136 : vector<8x8x8xf32>
    %c4 = arith.constant 4 : index
    %c6_71 = arith.constant 6 : index
    %c0_72 = arith.constant 0 : index
    %138 = vector.load %arg34[%c4, %c6_71, %c0_72] : memref<12x18x8xf32, #tpu.memory_space<vmem>>, vector<8x8x8xf32>
    %139 = vector.extract_strided_slice %16 {offsets = [20, 0], sizes = [1, 8], strides = [1, 1]} : vector<25x8xf32> to vector<1x8xf32>
    %140 = vector.shape_cast %139 : vector<1x8xf32> to vector<1x1x8xf32>
    %141 = vector.broadcast %140 : vector<1x1x8xf32> to vector<8x8x8xf32>
    %142 = arith.mulf %138, %141 : vector<8x8x8xf32>
    %143 = arith.addf %137, %142 : vector<8x8x8xf32>
    %c4_73 = arith.constant 4 : index
    %c7_74 = arith.constant 7 : index
    %c0_75 = arith.constant 0 : index
    %144 = vector.load %arg34[%c4_73, %c7_74, %c0_75] : memref<12x18x8xf32, #tpu.memory_space<vmem>>, vector<8x8x8xf32>
    %145 = vector.extract_strided_slice %16 {offsets = [21, 0], sizes = [1, 8], strides = [1, 1]} : vector<25x8xf32> to vector<1x8xf32>
    %146 = vector.shape_cast %145 : vector<1x8xf32> to vector<1x1x8xf32>
    %147 = vector.broadcast %146 : vector<1x1x8xf32> to vector<8x8x8xf32>
    %148 = arith.mulf %144, %147 : vector<8x8x8xf32>
    %149 = arith.addf %143, %148 : vector<8x8x8xf32>
    %c4_76 = arith.constant 4 : index
    %c8_77 = arith.constant 8 : index
    %c0_78 = arith.constant 0 : index
    %150 = vector.load %arg34[%c4_76, %c8_77, %c0_78] : memref<12x18x8xf32, #tpu.memory_space<vmem>>, vector<8x8x8xf32>
    %151 = vector.extract_strided_slice %16 {offsets = [22, 0], sizes = [1, 8], strides = [1, 1]} : vector<25x8xf32> to vector<1x8xf32>
    %152 = vector.shape_cast %151 : vector<1x8xf32> to vector<1x1x8xf32>
    %153 = vector.broadcast %152 : vector<1x1x8xf32> to vector<8x8x8xf32>
    %154 = arith.mulf %150, %153 : vector<8x8x8xf32>
    %155 = arith.addf %149, %154 : vector<8x8x8xf32>
    %c4_79 = arith.constant 4 : index
    %c9_80 = arith.constant 9 : index
    %c0_81 = arith.constant 0 : index
    %156 = vector.load %arg34[%c4_79, %c9_80, %c0_81] : memref<12x18x8xf32, #tpu.memory_space<vmem>>, vector<8x8x8xf32>
    %157 = vector.extract_strided_slice %16 {offsets = [23, 0], sizes = [1, 8], strides = [1, 1]} : vector<25x8xf32> to vector<1x8xf32>
    %158 = vector.shape_cast %157 : vector<1x8xf32> to vector<1x1x8xf32>
    %159 = vector.broadcast %158 : vector<1x1x8xf32> to vector<8x8x8xf32>
    %160 = arith.mulf %156, %159 : vector<8x8x8xf32>
    %161 = arith.addf %155, %160 : vector<8x8x8xf32>
    %c4_82 = arith.constant 4 : index
    %c10_83 = arith.constant 10 : index
    %c0_84 = arith.constant 0 : index
    %162 = vector.load %arg34[%c4_82, %c10_83, %c0_84] : memref<12x18x8xf32, #tpu.memory_space<vmem>>, vector<8x8x8xf32>
    %163 = vector.extract_strided_slice %16 {offsets = [24, 0], sizes = [1, 8], strides = [1, 1]} : vector<25x8xf32> to vector<1x8xf32>
    %164 = vector.shape_cast %163 : vector<1x8xf32> to vector<1x1x8xf32>
    %165 = vector.broadcast %164 : vector<1x1x8xf32> to vector<8x8x8xf32>
    %166 = arith.mulf %162, %165 : vector<8x8x8xf32>
    %167 = arith.addf %161, %166 : vector<8x8x8xf32>
    %c0_85 = arith.constant 0 : index
    %c0_86 = arith.constant 0 : index
    %168 = vector.load %arg6[%c0_85, %c0_86] : memref<1x8xf32, #tpu.memory_space<vmem>>, vector<1x8xf32>
    %169 = vector.shape_cast %168 : vector<1x8xf32> to vector<1x1x8xf32>
    %170 = vector.broadcast %169 : vector<1x1x8xf32> to vector<8x8x8xf32>
    %171 = arith.mulf %167, %170 : vector<8x8x8xf32>
    %c0_87 = arith.constant 0 : index
    %c0_88 = arith.constant 0 : index
    %172 = vector.load %arg7[%c0_87, %c0_88] : memref<1x8xf32, #tpu.memory_space<vmem>>, vector<1x8xf32>
    %173 = vector.shape_cast %172 : vector<1x8xf32> to vector<1x1x8xf32>
    %174 = vector.broadcast %173 : vector<1x1x8xf32> to vector<8x8x8xf32>
    %175 = arith.addf %171, %174 : vector<8x8x8xf32>
    %cst_89 = arith.constant 0.000000e+00 : f32
    %176 = vector.broadcast %cst_89 : f32 to vector<8x8x8xf32>
    %177 = arith.maximumf %175, %176 : vector<8x8x8xf32>
    %178 = vector.shape_cast %177 : vector<8x8x8xf32> to vector<64x8xf32>
    %c0_90 = arith.constant 0 : index
    %c0_91 = arith.constant 0 : index
    %179 = vector.load %arg8[%c0_90, %c0_91] : memref<8x16xf32, #tpu.memory_space<vmem>>, vector<8x16xf32>
    %cst_92 = arith.constant dense<0.000000e+00> : vector<64x16xf32>
    %180 = tpu.matmul %178, %179, %cst_92 {dimension_numbers = #tpu.dot_dimension_numbers<[1], [0], [0], [1], [0, 0, 1, 1], [], []>} : vector<64x8xf32>, vector<8x16xf32>, vector<64x16xf32> -> vector<64x16xf32>
    %c0_93 = arith.constant 0 : index
    %c0_94 = arith.constant 0 : index
    %181 = vector.load %arg9[%c0_93, %c0_94] : memref<1x16xf32, #tpu.memory_space<vmem>>, vector<1x16xf32>
    %182 = vector.broadcast %181 : vector<1x16xf32> to vector<64x16xf32>
    %183 = arith.mulf %180, %182 : vector<64x16xf32>
    %c0_95 = arith.constant 0 : index
    %c0_96 = arith.constant 0 : index
    %184 = vector.load %arg10[%c0_95, %c0_96] : memref<1x16xf32, #tpu.memory_space<vmem>>, vector<1x16xf32>
    %185 = vector.broadcast %184 : vector<1x16xf32> to vector<64x16xf32>
    %186 = arith.addf %183, %185 : vector<64x16xf32>
    %cst_97 = arith.constant 0.000000e+00 : f32
    %187 = vector.broadcast %cst_97 : f32 to vector<64x16xf32>
    %188 = arith.maximumf %186, %187 : vector<64x16xf32>
    %c0_98 = arith.constant 0 : index
    %c0_99 = arith.constant 0 : index
    %189 = vector.load %arg11[%c0_98, %c0_99] : memref<16x8xf32, #tpu.memory_space<vmem>>, vector<16x8xf32>
    %cst_100 = arith.constant dense<0.000000e+00> : vector<64x8xf32>
    %190 = tpu.matmul %188, %189, %cst_100 {dimension_numbers = #tpu.dot_dimension_numbers<[1], [0], [0], [1], [0, 0, 1, 1], [], []>} : vector<64x16xf32>, vector<16x8xf32>, vector<64x8xf32> -> vector<64x8xf32>
    %c0_101 = arith.constant 0 : index
    %c0_102 = arith.constant 0 : index
    %191 = vector.load %arg12[%c0_101, %c0_102] : memref<1x8xf32, #tpu.memory_space<vmem>>, vector<1x8xf32>
    %192 = vector.broadcast %191 : vector<1x8xf32> to vector<64x8xf32>
    %193 = arith.mulf %190, %192 : vector<64x8xf32>
    %c0_103 = arith.constant 0 : index
    %c0_104 = arith.constant 0 : index
    %194 = vector.load %arg13[%c0_103, %c0_104] : memref<1x8xf32, #tpu.memory_space<vmem>>, vector<1x8xf32>
    %195 = vector.broadcast %194 : vector<1x8xf32> to vector<64x8xf32>
    %196 = arith.addf %193, %195 : vector<64x8xf32>
    %cst_105 = arith.constant 0.000000e+00 : f32
    %197 = vector.broadcast %cst_105 : f32 to vector<64x8xf32>
    %198 = arith.maximumf %196, %197 : vector<64x8xf32>
    %199 = vector.shape_cast %198 : vector<64x8xf32> to vector<8x8x8xf32>
    %cst_106 = arith.constant 0.000000e+00 : f32
    %200 = vector.broadcast %cst_106 : f32 to vector<12x18x8xf32>
    %c0_107 = arith.constant 0 : index
    %c0_108 = arith.constant 0 : index
    %c0_109 = arith.constant 0 : index
    %201 = vector.load %arg34[%c0_107, %c0_108, %c0_109] : memref<12x18x8xf32, #tpu.memory_space<vmem>>, vector<12x18x8xf32>
    tpu.vector_store %arg34[%c0_107, %c0_108, %c0_109], %200 {strides = array<i32>} : memref<12x18x8xf32, #tpu.memory_space<vmem>>, vector<12x18x8xf32>,
    %c2_110 = arith.constant 2 : index
    %c8_111 = arith.constant 8 : index
    %c0_112 = arith.constant 0 : index
    %202 = vector.load %arg34[%c2_110, %c8_111, %c0_112] : memref<12x18x8xf32, #tpu.memory_space<vmem>>, vector<8x8x8xf32>
    tpu.vector_store %arg34[%c2_110, %c8_111, %c0_112], %199 {strides = array<i32>} : memref<12x18x8xf32, #tpu.memory_space<vmem>>, vector<8x8x8xf32>,
    %c0_113 = arith.constant 0 : index
    %c0_114 = arith.constant 0 : index
    %203 = vector.load %arg14[%c0_113, %c0_114] : memref<25x8xf32, #tpu.memory_space<vmem>>, vector<25x8xf32>
    %cst_115 = arith.constant 0.000000e+00 : f32
    %204 = vector.broadcast %cst_115 : f32 to vector<8x8x8xf32>
    %c0_116 = arith.constant 0 : index
    %c6_117 = arith.constant 6 : index
    %c0_118 = arith.constant 0 : index
    %205 = vector.load %arg34[%c0_116, %c6_117, %c0_118] : memref<12x18x8xf32, #tpu.memory_space<vmem>>, vector<8x8x8xf32>
    %206 = vector.extract_strided_slice %203 {offsets = [0, 0], sizes = [1, 8], strides = [1, 1]} : vector<25x8xf32> to vector<1x8xf32>
    %207 = vector.shape_cast %206 : vector<1x8xf32> to vector<1x1x8xf32>
    %208 = vector.broadcast %207 : vector<1x1x8xf32> to vector<8x8x8xf32>
    %209 = arith.mulf %205, %208 : vector<8x8x8xf32>
    %210 = arith.addf %204, %209 : vector<8x8x8xf32>
    %c0_119 = arith.constant 0 : index
    %c7_120 = arith.constant 7 : index
    %c0_121 = arith.constant 0 : index
    %211 = vector.load %arg34[%c0_119, %c7_120, %c0_121] : memref<12x18x8xf32, #tpu.memory_space<vmem>>, vector<8x8x8xf32>
    %212 = vector.extract_strided_slice %203 {offsets = [1, 0], sizes = [1, 8], strides = [1, 1]} : vector<25x8xf32> to vector<1x8xf32>
    %213 = vector.shape_cast %212 : vector<1x8xf32> to vector<1x1x8xf32>
    %214 = vector.broadcast %213 : vector<1x1x8xf32> to vector<8x8x8xf32>
    %215 = arith.mulf %211, %214 : vector<8x8x8xf32>
    %216 = arith.addf %210, %215 : vector<8x8x8xf32>
    %c0_122 = arith.constant 0 : index
    %c8_123 = arith.constant 8 : index
    %c0_124 = arith.constant 0 : index
    %217 = vector.load %arg34[%c0_122, %c8_123, %c0_124] : memref<12x18x8xf32, #tpu.memory_space<vmem>>, vector<8x8x8xf32>
    %218 = vector.extract_strided_slice %203 {offsets = [2, 0], sizes = [1, 8], strides = [1, 1]} : vector<25x8xf32> to vector<1x8xf32>
    %219 = vector.shape_cast %218 : vector<1x8xf32> to vector<1x1x8xf32>
    %220 = vector.broadcast %219 : vector<1x1x8xf32> to vector<8x8x8xf32>
    %221 = arith.mulf %217, %220 : vector<8x8x8xf32>
    %222 = arith.addf %216, %221 : vector<8x8x8xf32>
    %c0_125 = arith.constant 0 : index
    %c9_126 = arith.constant 9 : index
    %c0_127 = arith.constant 0 : index
    %223 = vector.load %arg34[%c0_125, %c9_126, %c0_127] : memref<12x18x8xf32, #tpu.memory_space<vmem>>, vector<8x8x8xf32>
    %224 = vector.extract_strided_slice %203 {offsets = [3, 0], sizes = [1, 8], strides = [1, 1]} : vector<25x8xf32> to vector<1x8xf32>
    %225 = vector.shape_cast %224 : vector<1x8xf32> to vector<1x1x8xf32>
    %226 = vector.broadcast %225 : vector<1x1x8xf32> to vector<8x8x8xf32>
    %227 = arith.mulf %223, %226 : vector<8x8x8xf32>
    %228 = arith.addf %222, %227 : vector<8x8x8xf32>
    %c0_128 = arith.constant 0 : index
    %c10_129 = arith.constant 10 : index
    %c0_130 = arith.constant 0 : index
    %229 = vector.load %arg34[%c0_128, %c10_129, %c0_130] : memref<12x18x8xf32, #tpu.memory_space<vmem>>, vector<8x8x8xf32>
    %230 = vector.extract_strided_slice %203 {offsets = [4, 0], sizes = [1, 8], strides = [1, 1]} : vector<25x8xf32> to vector<1x8xf32>
    %231 = vector.shape_cast %230 : vector<1x8xf32> to vector<1x1x8xf32>
    %232 = vector.broadcast %231 : vector<1x1x8xf32> to vector<8x8x8xf32>
    %233 = arith.mulf %229, %232 : vector<8x8x8xf32>
    %234 = arith.addf %228, %233 : vector<8x8x8xf32>
    %c1_131 = arith.constant 1 : index
    %c6_132 = arith.constant 6 : index
    %c0_133 = arith.constant 0 : index
    %235 = vector.load %arg34[%c1_131, %c6_132, %c0_133] : memref<12x18x8xf32, #tpu.memory_space<vmem>>, vector<8x8x8xf32>
    %236 = vector.extract_strided_slice %203 {offsets = [5, 0], sizes = [1, 8], strides = [1, 1]} : vector<25x8xf32> to vector<1x8xf32>
    %237 = vector.shape_cast %236 : vector<1x8xf32> to vector<1x1x8xf32>
    %238 = vector.broadcast %237 : vector<1x1x8xf32> to vector<8x8x8xf32>
    %239 = arith.mulf %235, %238 : vector<8x8x8xf32>
    %240 = arith.addf %234, %239 : vector<8x8x8xf32>
    %c1_134 = arith.constant 1 : index
    %c7_135 = arith.constant 7 : index
    %c0_136 = arith.constant 0 : index
    %241 = vector.load %arg34[%c1_134, %c7_135, %c0_136] : memref<12x18x8xf32, #tpu.memory_space<vmem>>, vector<8x8x8xf32>
    %242 = vector.extract_strided_slice %203 {offsets = [6, 0], sizes = [1, 8], strides = [1, 1]} : vector<25x8xf32> to vector<1x8xf32>
    %243 = vector.shape_cast %242 : vector<1x8xf32> to vector<1x1x8xf32>
    %244 = vector.broadcast %243 : vector<1x1x8xf32> to vector<8x8x8xf32>
    %245 = arith.mulf %241, %244 : vector<8x8x8xf32>
    %246 = arith.addf %240, %245 : vector<8x8x8xf32>
    %c1_137 = arith.constant 1 : index
    %c8_138 = arith.constant 8 : index
    %c0_139 = arith.constant 0 : index
    %247 = vector.load %arg34[%c1_137, %c8_138, %c0_139] : memref<12x18x8xf32, #tpu.memory_space<vmem>>, vector<8x8x8xf32>
    %248 = vector.extract_strided_slice %203 {offsets = [7, 0], sizes = [1, 8], strides = [1, 1]} : vector<25x8xf32> to vector<1x8xf32>
    %249 = vector.shape_cast %248 : vector<1x8xf32> to vector<1x1x8xf32>
    %250 = vector.broadcast %249 : vector<1x1x8xf32> to vector<8x8x8xf32>
    %251 = arith.mulf %247, %250 : vector<8x8x8xf32>
    %252 = arith.addf %246, %251 : vector<8x8x8xf32>
    %c1_140 = arith.constant 1 : index
    %c9_141 = arith.constant 9 : index
    %c0_142 = arith.constant 0 : index
    %253 = vector.load %arg34[%c1_140, %c9_141, %c0_142] : memref<12x18x8xf32, #tpu.memory_space<vmem>>, vector<8x8x8xf32>
    %254 = vector.extract_strided_slice %203 {offsets = [8, 0], sizes = [1, 8], strides = [1, 1]} : vector<25x8xf32> to vector<1x8xf32>
    %255 = vector.shape_cast %254 : vector<1x8xf32> to vector<1x1x8xf32>
    %256 = vector.broadcast %255 : vector<1x1x8xf32> to vector<8x8x8xf32>
    %257 = arith.mulf %253, %256 : vector<8x8x8xf32>
    %258 = arith.addf %252, %257 : vector<8x8x8xf32>
    %c1_143 = arith.constant 1 : index
    %c10_144 = arith.constant 10 : index
    %c0_145 = arith.constant 0 : index
    %259 = vector.load %arg34[%c1_143, %c10_144, %c0_145] : memref<12x18x8xf32, #tpu.memory_space<vmem>>, vector<8x8x8xf32>
    %260 = vector.extract_strided_slice %203 {offsets = [9, 0], sizes = [1, 8], strides = [1, 1]} : vector<25x8xf32> to vector<1x8xf32>
    %261 = vector.shape_cast %260 : vector<1x8xf32> to vector<1x1x8xf32>
    %262 = vector.broadcast %261 : vector<1x1x8xf32> to vector<8x8x8xf32>
    %263 = arith.mulf %259, %262 : vector<8x8x8xf32>
    %264 = arith.addf %258, %263 : vector<8x8x8xf32>
    %c2_146 = arith.constant 2 : index
    %c6_147 = arith.constant 6 : index
    %c0_148 = arith.constant 0 : index
    %265 = vector.load %arg34[%c2_146, %c6_147, %c0_148] : memref<12x18x8xf32, #tpu.memory_space<vmem>>, vector<8x8x8xf32>
    %266 = vector.extract_strided_slice %203 {offsets = [10, 0], sizes = [1, 8], strides = [1, 1]} : vector<25x8xf32> to vector<1x8xf32>
    %267 = vector.shape_cast %266 : vector<1x8xf32> to vector<1x1x8xf32>
    %268 = vector.broadcast %267 : vector<1x1x8xf32> to vector<8x8x8xf32>
    %269 = arith.mulf %265, %268 : vector<8x8x8xf32>
    %270 = arith.addf %264, %269 : vector<8x8x8xf32>
    %c2_149 = arith.constant 2 : index
    %c7_150 = arith.constant 7 : index
    %c0_151 = arith.constant 0 : index
    %271 = vector.load %arg34[%c2_149, %c7_150, %c0_151] : memref<12x18x8xf32, #tpu.memory_space<vmem>>, vector<8x8x8xf32>
    %272 = vector.extract_strided_slice %203 {offsets = [11, 0], sizes = [1, 8], strides = [1, 1]} : vector<25x8xf32> to vector<1x8xf32>
    %273 = vector.shape_cast %272 : vector<1x8xf32> to vector<1x1x8xf32>
    %274 = vector.broadcast %273 : vector<1x1x8xf32> to vector<8x8x8xf32>
    %275 = arith.mulf %271, %274 : vector<8x8x8xf32>
    %276 = arith.addf %270, %275 : vector<8x8x8xf32>
    %c2_152 = arith.constant 2 : index
    %c8_153 = arith.constant 8 : index
    %c0_154 = arith.constant 0 : index
    %277 = vector.load %arg34[%c2_152, %c8_153, %c0_154] : memref<12x18x8xf32, #tpu.memory_space<vmem>>, vector<8x8x8xf32>
    %278 = vector.extract_strided_slice %203 {offsets = [12, 0], sizes = [1, 8], strides = [1, 1]} : vector<25x8xf32> to vector<1x8xf32>
    %279 = vector.shape_cast %278 : vector<1x8xf32> to vector<1x1x8xf32>
    %280 = vector.broadcast %279 : vector<1x1x8xf32> to vector<8x8x8xf32>
    %281 = arith.mulf %277, %280 : vector<8x8x8xf32>
    %282 = arith.addf %276, %281 : vector<8x8x8xf32>
    %c2_155 = arith.constant 2 : index
    %c9_156 = arith.constant 9 : index
    %c0_157 = arith.constant 0 : index
    %283 = vector.load %arg34[%c2_155, %c9_156, %c0_157] : memref<12x18x8xf32, #tpu.memory_space<vmem>>, vector<8x8x8xf32>
    %284 = vector.extract_strided_slice %203 {offsets = [13, 0], sizes = [1, 8], strides = [1, 1]} : vector<25x8xf32> to vector<1x8xf32>
    %285 = vector.shape_cast %284 : vector<1x8xf32> to vector<1x1x8xf32>
    %286 = vector.broadcast %285 : vector<1x1x8xf32> to vector<8x8x8xf32>
    %287 = arith.mulf %283, %286 : vector<8x8x8xf32>
    %288 = arith.addf %282, %287 : vector<8x8x8xf32>
    %c2_158 = arith.constant 2 : index
    %c10_159 = arith.constant 10 : index
    %c0_160 = arith.constant 0 : index
    %289 = vector.load %arg34[%c2_158, %c10_159, %c0_160] : memref<12x18x8xf32, #tpu.memory_space<vmem>>, vector<8x8x8xf32>
    %290 = vector.extract_strided_slice %203 {offsets = [14, 0], sizes = [1, 8], strides = [1, 1]} : vector<25x8xf32> to vector<1x8xf32>
    %291 = vector.shape_cast %290 : vector<1x8xf32> to vector<1x1x8xf32>
    %292 = vector.broadcast %291 : vector<1x1x8xf32> to vector<8x8x8xf32>
    %293 = arith.mulf %289, %292 : vector<8x8x8xf32>
    %294 = arith.addf %288, %293 : vector<8x8x8xf32>
    %c3_161 = arith.constant 3 : index
    %c6_162 = arith.constant 6 : index
    %c0_163 = arith.constant 0 : index
    %295 = vector.load %arg34[%c3_161, %c6_162, %c0_163] : memref<12x18x8xf32, #tpu.memory_space<vmem>>, vector<8x8x8xf32>
    %296 = vector.extract_strided_slice %203 {offsets = [15, 0], sizes = [1, 8], strides = [1, 1]} : vector<25x8xf32> to vector<1x8xf32>
    %297 = vector.shape_cast %296 : vector<1x8xf32> to vector<1x1x8xf32>
    %298 = vector.broadcast %297 : vector<1x1x8xf32> to vector<8x8x8xf32>
    %299 = arith.mulf %295, %298 : vector<8x8x8xf32>
    %300 = arith.addf %294, %299 : vector<8x8x8xf32>
    %c3_164 = arith.constant 3 : index
    %c7_165 = arith.constant 7 : index
    %c0_166 = arith.constant 0 : index
    %301 = vector.load %arg34[%c3_164, %c7_165, %c0_166] : memref<12x18x8xf32, #tpu.memory_space<vmem>>, vector<8x8x8xf32>
    %302 = vector.extract_strided_slice %203 {offsets = [16, 0], sizes = [1, 8], strides = [1, 1]} : vector<25x8xf32> to vector<1x8xf32>
    %303 = vector.shape_cast %302 : vector<1x8xf32> to vector<1x1x8xf32>
    %304 = vector.broadcast %303 : vector<1x1x8xf32> to vector<8x8x8xf32>
    %305 = arith.mulf %301, %304 : vector<8x8x8xf32>
    %306 = arith.addf %300, %305 : vector<8x8x8xf32>
    %c3_167 = arith.constant 3 : index
    %c8_168 = arith.constant 8 : index
    %c0_169 = arith.constant 0 : index
    %307 = vector.load %arg34[%c3_167, %c8_168, %c0_169] : memref<12x18x8xf32, #tpu.memory_space<vmem>>, vector<8x8x8xf32>
    %308 = vector.extract_strided_slice %203 {offsets = [17, 0], sizes = [1, 8], strides = [1, 1]} : vector<25x8xf32> to vector<1x8xf32>
    %309 = vector.shape_cast %308 : vector<1x8xf32> to vector<1x1x8xf32>
    %310 = vector.broadcast %309 : vector<1x1x8xf32> to vector<8x8x8xf32>
    %311 = arith.mulf %307, %310 : vector<8x8x8xf32>
    %312 = arith.addf %306, %311 : vector<8x8x8xf32>
    %c3_170 = arith.constant 3 : index
    %c9_171 = arith.constant 9 : index
    %c0_172 = arith.constant 0 : index
    %313 = vector.load %arg34[%c3_170, %c9_171, %c0_172] : memref<12x18x8xf32, #tpu.memory_space<vmem>>, vector<8x8x8xf32>
    %314 = vector.extract_strided_slice %203 {offsets = [18, 0], sizes = [1, 8], strides = [1, 1]} : vector<25x8xf32> to vector<1x8xf32>
    %315 = vector.shape_cast %314 : vector<1x8xf32> to vector<1x1x8xf32>
    %316 = vector.broadcast %315 : vector<1x1x8xf32> to vector<8x8x8xf32>
    %317 = arith.mulf %313, %316 : vector<8x8x8xf32>
    %318 = arith.addf %312, %317 : vector<8x8x8xf32>
    %c3_173 = arith.constant 3 : index
    %c10_174 = arith.constant 10 : index
    %c0_175 = arith.constant 0 : index
    %319 = vector.load %arg34[%c3_173, %c10_174, %c0_175] : memref<12x18x8xf32, #tpu.memory_space<vmem>>, vector<8x8x8xf32>
    %320 = vector.extract_strided_slice %203 {offsets = [19, 0], sizes = [1, 8], strides = [1, 1]} : vector<25x8xf32> to vector<1x8xf32>
    %321 = vector.shape_cast %320 : vector<1x8xf32> to vector<1x1x8xf32>
    %322 = vector.broadcast %321 : vector<1x1x8xf32> to vector<8x8x8xf32>
    %323 = arith.mulf %319, %322 : vector<8x8x8xf32>
    %324 = arith.addf %318, %323 : vector<8x8x8xf32>
    %c4_176 = arith.constant 4 : index
    %c6_177 = arith.constant 6 : index
    %c0_178 = arith.constant 0 : index
    %325 = vector.load %arg34[%c4_176, %c6_177, %c0_178] : memref<12x18x8xf32, #tpu.memory_space<vmem>>, vector<8x8x8xf32>
    %326 = vector.extract_strided_slice %203 {offsets = [20, 0], sizes = [1, 8], strides = [1, 1]} : vector<25x8xf32> to vector<1x8xf32>
    %327 = vector.shape_cast %326 : vector<1x8xf32> to vector<1x1x8xf32>
    %328 = vector.broadcast %327 : vector<1x1x8xf32> to vector<8x8x8xf32>
    %329 = arith.mulf %325, %328 : vector<8x8x8xf32>
    %330 = arith.addf %324, %329 : vector<8x8x8xf32>
    %c4_179 = arith.constant 4 : index
    %c7_180 = arith.constant 7 : index
    %c0_181 = arith.constant 0 : index
    %331 = vector.load %arg34[%c4_179, %c7_180, %c0_181] : memref<12x18x8xf32, #tpu.memory_space<vmem>>, vector<8x8x8xf32>
    %332 = vector.extract_strided_slice %203 {offsets = [21, 0], sizes = [1, 8], strides = [1, 1]} : vector<25x8xf32> to vector<1x8xf32>
    %333 = vector.shape_cast %332 : vector<1x8xf32> to vector<1x1x8xf32>
    %334 = vector.broadcast %333 : vector<1x1x8xf32> to vector<8x8x8xf32>
    %335 = arith.mulf %331, %334 : vector<8x8x8xf32>
    %336 = arith.addf %330, %335 : vector<8x8x8xf32>
    %c4_182 = arith.constant 4 : index
    %c8_183 = arith.constant 8 : index
    %c0_184 = arith.constant 0 : index
    %337 = vector.load %arg34[%c4_182, %c8_183, %c0_184] : memref<12x18x8xf32, #tpu.memory_space<vmem>>, vector<8x8x8xf32>
    %338 = vector.extract_strided_slice %203 {offsets = [22, 0], sizes = [1, 8], strides = [1, 1]} : vector<25x8xf32> to vector<1x8xf32>
    %339 = vector.shape_cast %338 : vector<1x8xf32> to vector<1x1x8xf32>
    %340 = vector.broadcast %339 : vector<1x1x8xf32> to vector<8x8x8xf32>
    %341 = arith.mulf %337, %340 : vector<8x8x8xf32>
    %342 = arith.addf %336, %341 : vector<8x8x8xf32>
    %c4_185 = arith.constant 4 : index
    %c9_186 = arith.constant 9 : index
    %c0_187 = arith.constant 0 : index
    %343 = vector.load %arg34[%c4_185, %c9_186, %c0_187] : memref<12x18x8xf32, #tpu.memory_space<vmem>>, vector<8x8x8xf32>
    %344 = vector.extract_strided_slice %203 {offsets = [23, 0], sizes = [1, 8], strides = [1, 1]} : vector<25x8xf32> to vector<1x8xf32>
    %345 = vector.shape_cast %344 : vector<1x8xf32> to vector<1x1x8xf32>
    %346 = vector.broadcast %345 : vector<1x1x8xf32> to vector<8x8x8xf32>
    %347 = arith.mulf %343, %346 : vector<8x8x8xf32>
    %348 = arith.addf %342, %347 : vector<8x8x8xf32>
    %c4_188 = arith.constant 4 : index
    %c10_189 = arith.constant 10 : index
    %c0_190 = arith.constant 0 : index
    %349 = vector.load %arg34[%c4_188, %c10_189, %c0_190] : memref<12x18x8xf32, #tpu.memory_space<vmem>>, vector<8x8x8xf32>
    %350 = vector.extract_strided_slice %203 {offsets = [24, 0], sizes = [1, 8], strides = [1, 1]} : vector<25x8xf32> to vector<1x8xf32>
    %351 = vector.shape_cast %350 : vector<1x8xf32> to vector<1x1x8xf32>
    %352 = vector.broadcast %351 : vector<1x1x8xf32> to vector<8x8x8xf32>
    %353 = arith.mulf %349, %352 : vector<8x8x8xf32>
    %354 = arith.addf %348, %353 : vector<8x8x8xf32>
    %c0_191 = arith.constant 0 : index
    %c0_192 = arith.constant 0 : index
    %355 = vector.load %arg15[%c0_191, %c0_192] : memref<1x8xf32, #tpu.memory_space<vmem>>, vector<1x8xf32>
    %356 = vector.shape_cast %355 : vector<1x8xf32> to vector<1x1x8xf32>
    %357 = vector.broadcast %356 : vector<1x1x8xf32> to vector<8x8x8xf32>
    %358 = arith.mulf %354, %357 : vector<8x8x8xf32>
    %c0_193 = arith.constant 0 : index
    %c0_194 = arith.constant 0 : index
    %359 = vector.load %arg16[%c0_193, %c0_194] : memref<1x8xf32, #tpu.memory_space<vmem>>, vector<1x8xf32>
    %360 = vector.shape_cast %359 : vector<1x8xf32> to vector<1x1x8xf32>
    %361 = vector.broadcast %360 : vector<1x1x8xf32> to vector<8x8x8xf32>
    %362 = arith.addf %358, %361 : vector<8x8x8xf32>
    %cst_195 = arith.constant 0.000000e+00 : f32
    %363 = vector.broadcast %cst_195 : f32 to vector<8x8x8xf32>
    %364 = arith.maximumf %362, %363 : vector<8x8x8xf32>
    %365 = vector.shape_cast %364 : vector<8x8x8xf32> to vector<64x8xf32>
    %c0_196 = arith.constant 0 : index
    %c0_197 = arith.constant 0 : index
    %366 = vector.load %arg17[%c0_196, %c0_197] : memref<8x16xf32, #tpu.memory_space<vmem>>, vector<8x16xf32>
    %cst_198 = arith.constant dense<0.000000e+00> : vector<64x16xf32>
    %367 = tpu.matmul %365, %366, %cst_198 {dimension_numbers = #tpu.dot_dimension_numbers<[1], [0], [0], [1], [0, 0, 1, 1], [], []>} : vector<64x8xf32>, vector<8x16xf32>, vector<64x16xf32> -> vector<64x16xf32>
    %c0_199 = arith.constant 0 : index
    %c0_200 = arith.constant 0 : index
    %368 = vector.load %arg18[%c0_199, %c0_200] : memref<1x16xf32, #tpu.memory_space<vmem>>, vector<1x16xf32>
    %369 = vector.broadcast %368 : vector<1x16xf32> to vector<64x16xf32>
    %370 = arith.mulf %367, %369 : vector<64x16xf32>
    %c0_201 = arith.constant 0 : index
    %c0_202 = arith.constant 0 : index
    %371 = vector.load %arg19[%c0_201, %c0_202] : memref<1x16xf32, #tpu.memory_space<vmem>>, vector<1x16xf32>
    %372 = vector.broadcast %371 : vector<1x16xf32> to vector<64x16xf32>
    %373 = arith.addf %370, %372 : vector<64x16xf32>
    %cst_203 = arith.constant 0.000000e+00 : f32
    %374 = vector.broadcast %cst_203 : f32 to vector<64x16xf32>
    %375 = arith.maximumf %373, %374 : vector<64x16xf32>
    %c0_204 = arith.constant 0 : index
    %c0_205 = arith.constant 0 : index
    %376 = vector.load %arg20[%c0_204, %c0_205] : memref<16x8xf32, #tpu.memory_space<vmem>>, vector<16x8xf32>
    %cst_206 = arith.constant dense<0.000000e+00> : vector<64x8xf32>
    %377 = tpu.matmul %375, %376, %cst_206 {dimension_numbers = #tpu.dot_dimension_numbers<[1], [0], [0], [1], [0, 0, 1, 1], [], []>} : vector<64x16xf32>, vector<16x8xf32>, vector<64x8xf32> -> vector<64x8xf32>
    %c0_207 = arith.constant 0 : index
    %c0_208 = arith.constant 0 : index
    %378 = vector.load %arg21[%c0_207, %c0_208] : memref<1x8xf32, #tpu.memory_space<vmem>>, vector<1x8xf32>
    %379 = vector.broadcast %378 : vector<1x8xf32> to vector<64x8xf32>
    %380 = arith.mulf %377, %379 : vector<64x8xf32>
    %c0_209 = arith.constant 0 : index
    %c0_210 = arith.constant 0 : index
    %381 = vector.load %arg22[%c0_209, %c0_210] : memref<1x8xf32, #tpu.memory_space<vmem>>, vector<1x8xf32>
    %382 = vector.broadcast %381 : vector<1x8xf32> to vector<64x8xf32>
    %383 = arith.addf %380, %382 : vector<64x8xf32>
    %cst_211 = arith.constant 0.000000e+00 : f32
    %384 = vector.broadcast %cst_211 : f32 to vector<64x8xf32>
    %385 = arith.maximumf %383, %384 : vector<64x8xf32>
    %386 = vector.shape_cast %385 : vector<64x8xf32> to vector<8x8x8xf32>
    %cst_212 = arith.constant 0.000000e+00 : f32
    %387 = vector.broadcast %cst_212 : f32 to vector<12x18x8xf32>
    %c0_213 = arith.constant 0 : index
    %c0_214 = arith.constant 0 : index
    %c0_215 = arith.constant 0 : index
    %388 = vector.load %arg34[%c0_213, %c0_214, %c0_215] : memref<12x18x8xf32, #tpu.memory_space<vmem>>, vector<12x18x8xf32>
    tpu.vector_store %arg34[%c0_213, %c0_214, %c0_215], %387 {strides = array<i32>} : memref<12x18x8xf32, #tpu.memory_space<vmem>>, vector<12x18x8xf32>,
    %c1_216 = arith.constant 1 : index
    %c8_217 = arith.constant 8 : index
    %c0_218 = arith.constant 0 : index
    %389 = vector.load %arg34[%c1_216, %c8_217, %c0_218] : memref<12x18x8xf32, #tpu.memory_space<vmem>>, vector<8x8x8xf32>
    tpu.vector_store %arg34[%c1_216, %c8_217, %c0_218], %386 {strides = array<i32>} : memref<12x18x8xf32, #tpu.memory_space<vmem>>, vector<8x8x8xf32>,
    %c0_219 = arith.constant 0 : index
    %c0_220 = arith.constant 0 : index
    %390 = vector.load %arg23[%c0_219, %c0_220] : memref<9x8xf32, #tpu.memory_space<vmem>>, vector<9x8xf32>
    %cst_221 = arith.constant 0.000000e+00 : f32
    %391 = vector.broadcast %cst_221 : f32 to vector<8x8x8xf32>
    %c0_222 = arith.constant 0 : index
    %c7_223 = arith.constant 7 : index
    %c0_224 = arith.constant 0 : index
    %392 = vector.load %arg34[%c0_222, %c7_223, %c0_224] : memref<12x18x8xf32, #tpu.memory_space<vmem>>, vector<8x8x8xf32>
    %393 = vector.extract_strided_slice %390 {offsets = [0, 0], sizes = [1, 8], strides = [1, 1]} : vector<9x8xf32> to vector<1x8xf32>
    %394 = vector.shape_cast %393 : vector<1x8xf32> to vector<1x1x8xf32>
    %395 = vector.broadcast %394 : vector<1x1x8xf32> to vector<8x8x8xf32>
    %396 = arith.mulf %392, %395 : vector<8x8x8xf32>
    %397 = arith.addf %391, %396 : vector<8x8x8xf32>
    %c0_225 = arith.constant 0 : index
    %c8_226 = arith.constant 8 : index
    %c0_227 = arith.constant 0 : index
    %398 = vector.load %arg34[%c0_225, %c8_226, %c0_227] : memref<12x18x8xf32, #tpu.memory_space<vmem>>, vector<8x8x8xf32>
    %399 = vector.extract_strided_slice %390 {offsets = [1, 0], sizes = [1, 8], strides = [1, 1]} : vector<9x8xf32> to vector<1x8xf32>
    %400 = vector.shape_cast %399 : vector<1x8xf32> to vector<1x1x8xf32>
    %401 = vector.broadcast %400 : vector<1x1x8xf32> to vector<8x8x8xf32>
    %402 = arith.mulf %398, %401 : vector<8x8x8xf32>
    %403 = arith.addf %397, %402 : vector<8x8x8xf32>
    %c0_228 = arith.constant 0 : index
    %c9_229 = arith.constant 9 : index
    %c0_230 = arith.constant 0 : index
    %404 = vector.load %arg34[%c0_228, %c9_229, %c0_230] : memref<12x18x8xf32, #tpu.memory_space<vmem>>, vector<8x8x8xf32>
    %405 = vector.extract_strided_slice %390 {offsets = [2, 0], sizes = [1, 8], strides = [1, 1]} : vector<9x8xf32> to vector<1x8xf32>
    %406 = vector.shape_cast %405 : vector<1x8xf32> to vector<1x1x8xf32>
    %407 = vector.broadcast %406 : vector<1x1x8xf32> to vector<8x8x8xf32>
    %408 = arith.mulf %404, %407 : vector<8x8x8xf32>
    %409 = arith.addf %403, %408 : vector<8x8x8xf32>
    %c1_231 = arith.constant 1 : index
    %c7_232 = arith.constant 7 : index
    %c0_233 = arith.constant 0 : index
    %410 = vector.load %arg34[%c1_231, %c7_232, %c0_233] : memref<12x18x8xf32, #tpu.memory_space<vmem>>, vector<8x8x8xf32>
    %411 = vector.extract_strided_slice %390 {offsets = [3, 0], sizes = [1, 8], strides = [1, 1]} : vector<9x8xf32> to vector<1x8xf32>
    %412 = vector.shape_cast %411 : vector<1x8xf32> to vector<1x1x8xf32>
    %413 = vector.broadcast %412 : vector<1x1x8xf32> to vector<8x8x8xf32>
    %414 = arith.mulf %410, %413 : vector<8x8x8xf32>
    %415 = arith.addf %409, %414 : vector<8x8x8xf32>
    %c1_234 = arith.constant 1 : index
    %c8_235 = arith.constant 8 : index
    %c0_236 = arith.constant 0 : index
    %416 = vector.load %arg34[%c1_234, %c8_235, %c0_236] : memref<12x18x8xf32, #tpu.memory_space<vmem>>, vector<8x8x8xf32>
    %417 = vector.extract_strided_slice %390 {offsets = [4, 0], sizes = [1, 8], strides = [1, 1]} : vector<9x8xf32> to vector<1x8xf32>
    %418 = vector.shape_cast %417 : vector<1x8xf32> to vector<1x1x8xf32>
    %419 = vector.broadcast %418 : vector<1x1x8xf32> to vector<8x8x8xf32>
    %420 = arith.mulf %416, %419 : vector<8x8x8xf32>
    %421 = arith.addf %415, %420 : vector<8x8x8xf32>
    %c1_237 = arith.constant 1 : index
    %c9_238 = arith.constant 9 : index
    %c0_239 = arith.constant 0 : index
    %422 = vector.load %arg34[%c1_237, %c9_238, %c0_239] : memref<12x18x8xf32, #tpu.memory_space<vmem>>, vector<8x8x8xf32>
    %423 = vector.extract_strided_slice %390 {offsets = [5, 0], sizes = [1, 8], strides = [1, 1]} : vector<9x8xf32> to vector<1x8xf32>
    %424 = vector.shape_cast %423 : vector<1x8xf32> to vector<1x1x8xf32>
    %425 = vector.broadcast %424 : vector<1x1x8xf32> to vector<8x8x8xf32>
    %426 = arith.mulf %422, %425 : vector<8x8x8xf32>
    %427 = arith.addf %421, %426 : vector<8x8x8xf32>
    %c2_240 = arith.constant 2 : index
    %c7_241 = arith.constant 7 : index
    %c0_242 = arith.constant 0 : index
    %428 = vector.load %arg34[%c2_240, %c7_241, %c0_242] : memref<12x18x8xf32, #tpu.memory_space<vmem>>, vector<8x8x8xf32>
    %429 = vector.extract_strided_slice %390 {offsets = [6, 0], sizes = [1, 8], strides = [1, 1]} : vector<9x8xf32> to vector<1x8xf32>
    %430 = vector.shape_cast %429 : vector<1x8xf32> to vector<1x1x8xf32>
    %431 = vector.broadcast %430 : vector<1x1x8xf32> to vector<8x8x8xf32>
    %432 = arith.mulf %428, %431 : vector<8x8x8xf32>
    %433 = arith.addf %427, %432 : vector<8x8x8xf32>
    %c2_243 = arith.constant 2 : index
    %c8_244 = arith.constant 8 : index
    %c0_245 = arith.constant 0 : index
    %434 = vector.load %arg34[%c2_243, %c8_244, %c0_245] : memref<12x18x8xf32, #tpu.memory_space<vmem>>, vector<8x8x8xf32>
    %435 = vector.extract_strided_slice %390 {offsets = [7, 0], sizes = [1, 8], strides = [1, 1]} : vector<9x8xf32> to vector<1x8xf32>
    %436 = vector.shape_cast %435 : vector<1x8xf32> to vector<1x1x8xf32>
    %437 = vector.broadcast %436 : vector<1x1x8xf32> to vector<8x8x8xf32>
    %438 = arith.mulf %434, %437 : vector<8x8x8xf32>
    %439 = arith.addf %433, %438 : vector<8x8x8xf32>
    %c2_246 = arith.constant 2 : index
    %c9_247 = arith.constant 9 : index
    %c0_248 = arith.constant 0 : index
    %440 = vector.load %arg34[%c2_246, %c9_247, %c0_248] : memref<12x18x8xf32, #tpu.memory_space<vmem>>, vector<8x8x8xf32>
    %441 = vector.extract_strided_slice %390 {offsets = [8, 0], sizes = [1, 8], strides = [1, 1]} : vector<9x8xf32> to vector<1x8xf32>
    %442 = vector.shape_cast %441 : vector<1x8xf32> to vector<1x1x8xf32>
    %443 = vector.broadcast %442 : vector<1x1x8xf32> to vector<8x8x8xf32>
    %444 = arith.mulf %440, %443 : vector<8x8x8xf32>
    %445 = arith.addf %439, %444 : vector<8x8x8xf32>
    %c0_249 = arith.constant 0 : index
    %c0_250 = arith.constant 0 : index
    %446 = vector.load %arg24[%c0_249, %c0_250] : memref<1x8xf32, #tpu.memory_space<vmem>>, vector<1x8xf32>
    %447 = vector.shape_cast %446 : vector<1x8xf32> to vector<1x1x8xf32>
    %448 = vector.broadcast %447 : vector<1x1x8xf32> to vector<8x8x8xf32>
    %449 = arith.mulf %445, %448 : vector<8x8x8xf32>
    %c0_251 = arith.constant 0 : index
    %c0_252 = arith.constant 0 : index
    %450 = vector.load %arg25[%c0_251, %c0_252] : memref<1x8xf32, #tpu.memory_space<vmem>>, vector<1x8xf32>
    %451 = vector.shape_cast %450 : vector<1x8xf32> to vector<1x1x8xf32>
    %452 = vector.broadcast %451 : vector<1x1x8xf32> to vector<8x8x8xf32>
    %453 = arith.addf %449, %452 : vector<8x8x8xf32>
    %cst_253 = arith.constant 0.000000e+00 : f32
    %454 = vector.broadcast %cst_253 : f32 to vector<8x8x8xf32>
    %455 = arith.maximumf %453, %454 : vector<8x8x8xf32>
    %456 = vector.shape_cast %455 : vector<8x8x8xf32> to vector<64x8xf32>
    %c0_254 = arith.constant 0 : index
    %c0_255 = arith.constant 0 : index
    %457 = vector.load %arg26[%c0_254, %c0_255] : memref<8x16xf32, #tpu.memory_space<vmem>>, vector<8x16xf32>
    %cst_256 = arith.constant dense<0.000000e+00> : vector<64x16xf32>
    %458 = tpu.matmul %456, %457, %cst_256 {dimension_numbers = #tpu.dot_dimension_numbers<[1], [0], [0], [1], [0, 0, 1, 1], [], []>} : vector<64x8xf32>, vector<8x16xf32>, vector<64x16xf32> -> vector<64x16xf32>
    %c0_257 = arith.constant 0 : index
    %c0_258 = arith.constant 0 : index
    %459 = vector.load %arg27[%c0_257, %c0_258] : memref<1x16xf32, #tpu.memory_space<vmem>>, vector<1x16xf32>
    %460 = vector.broadcast %459 : vector<1x16xf32> to vector<64x16xf32>
    %461 = arith.mulf %458, %460 : vector<64x16xf32>
    %c0_259 = arith.constant 0 : index
    %c0_260 = arith.constant 0 : index
    %462 = vector.load %arg28[%c0_259, %c0_260] : memref<1x16xf32, #tpu.memory_space<vmem>>, vector<1x16xf32>
    %463 = vector.broadcast %462 : vector<1x16xf32> to vector<64x16xf32>
    %464 = arith.addf %461, %463 : vector<64x16xf32>
    %cst_261 = arith.constant 0.000000e+00 : f32
    %465 = vector.broadcast %cst_261 : f32 to vector<64x16xf32>
    %466 = arith.maximumf %464, %465 : vector<64x16xf32>
    %c0_262 = arith.constant 0 : index
    %c0_263 = arith.constant 0 : index
    %c0_264 = arith.constant 0 : index
    %467 = vector.load %arg32[%c0_262, %c0_263, %c0_264] : memref<1x64x16xf32, #tpu.memory_space<vmem>>, vector<1x64x16xf32>
    %468 = vector.shape_cast %467 : vector<1x64x16xf32> to vector<64x16xf32>
    %469 = vector.shape_cast %466 : vector<64x16xf32> to vector<1x64x16xf32>
    tpu.vector_store %arg32[%c0_262, %c0_263, %c0_264], %469 {strides = array<i32>} : memref<1x64x16xf32, #tpu.memory_space<vmem>>, vector<1x64x16xf32>,
    %c0_265 = arith.constant 0 : index
    %c0_266 = arith.constant 0 : index
    %470 = vector.load %arg29[%c0_265, %c0_266] : memref<8x8xf32, #tpu.memory_space<vmem>>, vector<8x8xf32>
    %cst_267 = arith.constant dense<0.000000e+00> : vector<64x8xf32>
    %471 = tpu.matmul %385, %470, %cst_267 {dimension_numbers = #tpu.dot_dimension_numbers<[1], [0], [0], [1], [0, 0, 1, 1], [], []>} : vector<64x8xf32>, vector<8x8xf32>, vector<64x8xf32> -> vector<64x8xf32>
    %c0_268 = arith.constant 0 : index
    %c0_269 = arith.constant 0 : index
    %472 = vector.load %arg30[%c0_268, %c0_269] : memref<1x8xf32, #tpu.memory_space<vmem>>, vector<1x8xf32>
    %473 = vector.broadcast %472 : vector<1x8xf32> to vector<64x8xf32>
    %474 = arith.mulf %471, %473 : vector<64x8xf32>
    %c0_270 = arith.constant 0 : index
    %c0_271 = arith.constant 0 : index
    %475 = vector.load %arg31[%c0_270, %c0_271] : memref<1x8xf32, #tpu.memory_space<vmem>>, vector<1x8xf32>
    %476 = vector.broadcast %475 : vector<1x8xf32> to vector<64x8xf32>
    %477 = arith.addf %474, %476 : vector<64x8xf32>
    %cst_272 = arith.constant 0.000000e+00 : f32
    %478 = vector.broadcast %cst_272 : f32 to vector<64x8xf32>
    %479 = arith.maximumf %477, %478 : vector<64x8xf32>
    %c0_273 = arith.constant 0 : index
    %c0_274 = arith.constant 0 : index
    %c0_275 = arith.constant 0 : index
    %480 = vector.load %arg33[%c0_273, %c0_274, %c0_275] : memref<1x64x8xf32, #tpu.memory_space<vmem>>, vector<1x64x8xf32>
    %481 = vector.shape_cast %480 : vector<1x64x8xf32> to vector<64x8xf32>
    %482 = vector.shape_cast %479 : vector<64x8xf32> to vector<1x64x8xf32>
    tpu.vector_store %arg33[%c0_273, %c0_274, %c0_275], %482 {strides = array<i32>} : memref<1x64x8xf32, #tpu.memory_space<vmem>>, vector<1x64x8xf32>,
    return
  }
  func.func @transform_0(%arg0: i32) -> (i32, i32, i32) {
    %c0_i32 = arith.constant 0 : i32
    %c0_i32_0 = arith.constant 0 : i32
    %c0_i32_1 = arith.constant 0 : i32
    return %arg0, %c0_i32, %c0_i32_0 : i32, i32, i32
  }
  func.func @transform_1(%arg0: i32) -> (i32, i32) {
    %c0_i32 = arith.constant 0 : i32
    %c0_i32_0 = arith.constant 0 : i32
    %c0_i32_1 = arith.constant 0 : i32
    return %c0_i32, %c0_i32_0 : i32, i32
  }
  func.func @transform_2(%arg0: i32) -> (i32, i32) {
    %c0_i32 = arith.constant 0 : i32
    %c0_i32_0 = arith.constant 0 : i32
    %c0_i32_1 = arith.constant 0 : i32
    return %c0_i32, %c0_i32_0 : i32, i32
  }
  func.func @transform_3(%arg0: i32) -> (i32, i32) {
    %c0_i32 = arith.constant 0 : i32
    %c0_i32_0 = arith.constant 0 : i32
    %c0_i32_1 = arith.constant 0 : i32
    return %c0_i32, %c0_i32_0 : i32, i32
  }
  func.func @transform_4(%arg0: i32) -> (i32, i32) {
    %c0_i32 = arith.constant 0 : i32
    %c0_i32_0 = arith.constant 0 : i32
    %c0_i32_1 = arith.constant 0 : i32
    return %c0_i32, %c0_i32_0 : i32, i32
  }
  func.func @transform_5(%arg0: i32) -> (i32, i32) {
    %c0_i32 = arith.constant 0 : i32
    %c0_i32_0 = arith.constant 0 : i32
    %c0_i32_1 = arith.constant 0 : i32
    return %c0_i32, %c0_i32_0 : i32, i32
  }
  func.func @transform_6(%arg0: i32) -> (i32, i32) {
    %c0_i32 = arith.constant 0 : i32
    %c0_i32_0 = arith.constant 0 : i32
    %c0_i32_1 = arith.constant 0 : i32
    return %c0_i32, %c0_i32_0 : i32, i32
  }
  func.func @transform_7(%arg0: i32) -> (i32, i32) {
    %c0_i32 = arith.constant 0 : i32
    %c0_i32_0 = arith.constant 0 : i32
    %c0_i32_1 = arith.constant 0 : i32
    return %c0_i32, %c0_i32_0 : i32, i32
  }
  func.func @transform_8(%arg0: i32) -> (i32, i32) {
    %c0_i32 = arith.constant 0 : i32
    %c0_i32_0 = arith.constant 0 : i32
    %c0_i32_1 = arith.constant 0 : i32
    return %c0_i32, %c0_i32_0 : i32, i32
  }
  func.func @transform_9(%arg0: i32) -> (i32, i32) {
    %c0_i32 = arith.constant 0 : i32
    %c0_i32_0 = arith.constant 0 : i32
    %c0_i32_1 = arith.constant 0 : i32
    return %c0_i32, %c0_i32_0 : i32, i32
  }
  func.func @transform_10(%arg0: i32) -> (i32, i32) {
    %c0_i32 = arith.constant 0 : i32
    %c0_i32_0 = arith.constant 0 : i32
    %c0_i32_1 = arith.constant 0 : i32
    return %c0_i32, %c0_i32_0 : i32, i32
  }
  func.func @transform_11(%arg0: i32) -> (i32, i32) {
    %c0_i32 = arith.constant 0 : i32
    %c0_i32_0 = arith.constant 0 : i32
    %c0_i32_1 = arith.constant 0 : i32
    return %c0_i32, %c0_i32_0 : i32, i32
  }
  func.func @transform_12(%arg0: i32) -> (i32, i32) {
    %c0_i32 = arith.constant 0 : i32
    %c0_i32_0 = arith.constant 0 : i32
    %c0_i32_1 = arith.constant 0 : i32
    return %c0_i32, %c0_i32_0 : i32, i32
  }
  func.func @transform_13(%arg0: i32) -> (i32, i32) {
    %c0_i32 = arith.constant 0 : i32
    %c0_i32_0 = arith.constant 0 : i32
    %c0_i32_1 = arith.constant 0 : i32
    return %c0_i32, %c0_i32_0 : i32, i32
  }
  func.func @transform_14(%arg0: i32) -> (i32, i32) {
    %c0_i32 = arith.constant 0 : i32
    %c0_i32_0 = arith.constant 0 : i32
    %c0_i32_1 = arith.constant 0 : i32
    return %c0_i32, %c0_i32_0 : i32, i32
  }
  func.func @transform_15(%arg0: i32) -> (i32, i32) {
    %c0_i32 = arith.constant 0 : i32
    %c0_i32_0 = arith.constant 0 : i32
    %c0_i32_1 = arith.constant 0 : i32
    return %c0_i32, %c0_i32_0 : i32, i32
  }
  func.func @transform_16(%arg0: i32) -> (i32, i32) {
    %c0_i32 = arith.constant 0 : i32
    %c0_i32_0 = arith.constant 0 : i32
    %c0_i32_1 = arith.constant 0 : i32
    return %c0_i32, %c0_i32_0 : i32, i32
  }
  func.func @transform_17(%arg0: i32) -> (i32, i32) {
    %c0_i32 = arith.constant 0 : i32
    %c0_i32_0 = arith.constant 0 : i32
    %c0_i32_1 = arith.constant 0 : i32
    return %c0_i32, %c0_i32_0 : i32, i32
  }
  func.func @transform_18(%arg0: i32) -> (i32, i32) {
    %c0_i32 = arith.constant 0 : i32
    %c0_i32_0 = arith.constant 0 : i32
    %c0_i32_1 = arith.constant 0 : i32
    return %c0_i32, %c0_i32_0 : i32, i32
  }
  func.func @transform_19(%arg0: i32) -> (i32, i32) {
    %c0_i32 = arith.constant 0 : i32
    %c0_i32_0 = arith.constant 0 : i32
    %c0_i32_1 = arith.constant 0 : i32
    return %c0_i32, %c0_i32_0 : i32, i32
  }
  func.func @transform_20(%arg0: i32) -> (i32, i32) {
    %c0_i32 = arith.constant 0 : i32
    %c0_i32_0 = arith.constant 0 : i32
    %c0_i32_1 = arith.constant 0 : i32
    return %c0_i32, %c0_i32_0 : i32, i32
  }
  func.func @transform_21(%arg0: i32) -> (i32, i32) {
    %c0_i32 = arith.constant 0 : i32
    %c0_i32_0 = arith.constant 0 : i32
    %c0_i32_1 = arith.constant 0 : i32
    return %c0_i32, %c0_i32_0 : i32, i32
  }
  func.func @transform_22(%arg0: i32) -> (i32, i32) {
    %c0_i32 = arith.constant 0 : i32
    %c0_i32_0 = arith.constant 0 : i32
    %c0_i32_1 = arith.constant 0 : i32
    return %c0_i32, %c0_i32_0 : i32, i32
  }
  func.func @transform_23(%arg0: i32) -> (i32, i32) {
    %c0_i32 = arith.constant 0 : i32
    %c0_i32_0 = arith.constant 0 : i32
    %c0_i32_1 = arith.constant 0 : i32
    return %c0_i32, %c0_i32_0 : i32, i32
  }
  func.func @transform_24(%arg0: i32) -> (i32, i32) {
    %c0_i32 = arith.constant 0 : i32
    %c0_i32_0 = arith.constant 0 : i32
    %c0_i32_1 = arith.constant 0 : i32
    return %c0_i32, %c0_i32_0 : i32, i32
  }
  func.func @transform_25(%arg0: i32) -> (i32, i32) {
    %c0_i32 = arith.constant 0 : i32
    %c0_i32_0 = arith.constant 0 : i32
    %c0_i32_1 = arith.constant 0 : i32
    return %c0_i32, %c0_i32_0 : i32, i32
  }
  func.func @transform_26(%arg0: i32) -> (i32, i32) {
    %c0_i32 = arith.constant 0 : i32
    %c0_i32_0 = arith.constant 0 : i32
    %c0_i32_1 = arith.constant 0 : i32
    return %c0_i32, %c0_i32_0 : i32, i32
  }
  func.func @transform_27(%arg0: i32) -> (i32, i32) {
    %c0_i32 = arith.constant 0 : i32
    %c0_i32_0 = arith.constant 0 : i32
    %c0_i32_1 = arith.constant 0 : i32
    return %c0_i32, %c0_i32_0 : i32, i32
  }
  func.func @transform_28(%arg0: i32) -> (i32, i32) {
    %c0_i32 = arith.constant 0 : i32
    %c0_i32_0 = arith.constant 0 : i32
    %c0_i32_1 = arith.constant 0 : i32
    return %c0_i32, %c0_i32_0 : i32, i32
  }
  func.func @transform_29(%arg0: i32) -> (i32, i32) {
    %c0_i32 = arith.constant 0 : i32
    %c0_i32_0 = arith.constant 0 : i32
    %c0_i32_1 = arith.constant 0 : i32
    return %c0_i32, %c0_i32_0 : i32, i32
  }
  func.func @transform_30(%arg0: i32) -> (i32, i32) {
    %c0_i32 = arith.constant 0 : i32
    %c0_i32_0 = arith.constant 0 : i32
    %c0_i32_1 = arith.constant 0 : i32
    return %c0_i32, %c0_i32_0 : i32, i32
  }
  func.func @transform_31(%arg0: i32) -> (i32, i32, i32) {
    %c0_i32 = arith.constant 0 : i32
    %c0_i32_0 = arith.constant 0 : i32
    %c0_i32_1 = arith.constant 0 : i32
    return %arg0, %c0_i32, %c0_i32_0 : i32, i32, i32
  }
  func.func @transform_32(%arg0: i32) -> (i32, i32, i32) {
    %c0_i32 = arith.constant 0 : i32
    %c0_i32_0 = arith.constant 0 : i32
    %c0_i32_1 = arith.constant 0 : i32
    return %arg0, %c0_i32, %c0_i32_0 : i32, i32, i32
  }
}

</mosaic_0001>

<bundles_post_ra>
// kernel: tpu_custom_call.1
= control target key start
LH: loop header
LB: loop body
LE: loop exit
PB: predicated region body
PF: predicated region fallthrough
CT: control target
= control target key end

     0   :  { %s4575_s6 = smov 1   ;;  %s4576_s10 = smov 2   ;;  %s6608_s0 = inlined_call_operand.smem [shape: u32[33], index: -1, kind: input, shape index: {}] }
   0x1   :  { %s4617_s5 = sld [smem:[%s6608_s0]]   ;;  %s4577_s14 = smov 3  }
   0x2   :  { %s4622_s9 = sld [smem:[%s6608_s0 + %s4575_s6]]   ;;  %s4578_s18 = smov 4  }
   0x3   :  { %s4627_s13 = sld [smem:[%s6608_s0 + %s4576_s10]]   ;;  %s4579_s22 = smov 5  }
   0x4   :  { %s4632_s17 = sld [smem:[%s6608_s0 + %s4577_s14]]   ;;  %s4580_s26 = smov 6  }
   0x5   :  { %s4637_s21 = sld [smem:[%s6608_s0 + %s4578_s18]]   ;;  %s4581_s30 = smov 7  }
   0x6   :  { %s4642_s25 = sld [smem:[%s6608_s0 + %s4579_s22]]   ;;  %s4582_s4 = smov 8  }
   0x7   :  { %s4647_s29 = sld [smem:[%s6608_s0 + %s4580_s26]]   ;;  %s4583_s10 = smov 9  }
   0x8   :  { %s4652_s3 = sld [smem:[%s6608_s0 + %s4581_s30]]   ;;  %s4584_s15 = smov 10  }
   0x9   :  { %s4657_s8 = sld [smem:[%s6608_s0 + %s4582_s4]]   ;;  %s4585_s20 = smov 11  }
   0xa   :  { %s4662_s14 = sld [smem:[%s6608_s0 + %s4583_s10]]   ;;  %s4586_s26 = smov 12  }
   0xb   :  { %s4667_s19 = sld [smem:[%s6608_s0 + %s4584_s15]]   ;;  %s4587_s1 = smov 13  }
   0xc   :  { %s4672_s24 = sld [smem:[%s6608_s0 + %s4585_s20]]   ;;  %s4588_s7 = smov 14  }
   0xd   :  { %s4677_s30 = sld [smem:[%s6608_s0 + %s4586_s26]]   ;;  %s4589_s15 = smov 15  }
   0xe   :  { %s4682_s6 = sld [smem:[%s6608_s0 + %s4587_s1]]   ;;  %s4590_s22 = smov 16  }
   0xf   :  { %s4687_s12 = sld [smem:[%s6608_s0 + %s4588_s7]]   ;;  %s4591_s28 = smov 17  }
  0x10   :  { %s4692_s20 = sld [smem:[%s6608_s0 + %s4589_s15]]   ;;  %s4592_s7 = smov 18  }
  0x11   :  { %s4697_s27 = sld [smem:[%s6608_s0 + %s4590_s22]]   ;;  %s4593_s15 = smov 19  }
  0x12   :  { %s4702_s4 = sld [smem:[%s6608_s0 + %s4591_s28]]   ;;  %s4594_s22 = smov 20  }
  0x13   :  { %6710 = sst [smem:[#allocation3_spill]] %s4677_s30  ;;  %s4595_s28 = smov 21  }
  0x14   :  { %s4717_s30 = sld [smem:[%s6608_s0 + %s4594_s22]]   ;;  %s4598_s22 = smov 24  }
  0x15   :  { %6711 = sst [smem:[#allocation4_spill]] %s4687_s12 }
  0x16   :  { %6712 = sst [smem:[#allocation5_spill]] %s4692_s20 }
  0x17   :  { %s4707_s12 = sld [smem:[%s6608_s0 + %s4592_s7]]   ;;  %s4596_s7 = smov 22  }
  0x18   :  { %6713 = sst [smem:[#allocation6_spill]] %s4702_s4 }
  0x19   :  { %s4712_s20 = sld [smem:[%s6608_s0 + %s4593_s15]]   ;;  %s4597_s15 = smov 23  }
  0x1a   :  { %6716 = sst [smem:[#allocation9_spill]] %s4717_s30 }
  0x1b   :  { %s4722_s4 = sld [smem:[%s6608_s0 + %s4595_s28]]   ;;  %s4599_s28 = smov 25  }
  0x1c   :  { %s4737_s30 = sld [smem:[%s6608_s0 + %s4598_s22]]   ;;  %s4602_s22 = smov 28  }
  0x1d   :  { %6714 = sst [smem:[#allocation7_spill]] %s4707_s12 }
  0x1e   :  { %s4727_s12 = sld [smem:[%s6608_s0 + %s4596_s7]]   ;;  %s4600_s7 = smov 26  }
  0x1f   :  { %6715 = sst [smem:[#allocation8_spill]] %s4712_s20 }
  0x20   :  { %s4732_s20 = sld [smem:[%s6608_s0 + %s4597_s15]]   ;;  %s4601_s15 = smov 27  }
  0x21   :  { %6717 = sst [smem:[#allocation10_spill]] %s4722_s4 }
  0x22   :  { %6720 = sst [smem:[#allocation13_spill]] %s4737_s30 }
  0x23   :  { %s4742_s4 = sld [smem:[%s6608_s0 + %s4599_s28]]   ;;  %s4603_s28 = smov 29  }
  0x24   :  { %6718 = sst [smem:[#allocation11_spill]] %s4727_s12 }
  0x25   :  { %s4747_s12 = sld [smem:[%s6608_s0 + %s4600_s7]]   ;;  %s4604_s7 = smov 30  }
  0x26   :  { %6719 = sst [smem:[#allocation12_spill]] %s4732_s20 }
  0x27   :  { %s4752_s20 = sld [smem:[%s6608_s0 + %s4601_s15]]   ;;  %s4605_s15 = smov 31  }
  0x28   :  { %s4757_s30 = sld [smem:[%s6608_s0 + %s4602_s22]]   ;;  %s4606_s22 = smov 32  }
  0x29   :  { %6721 = sst [smem:[#allocation14_spill]] %s4742_s4 }
  0x2a   :  { %s4762_s4 = sld [smem:[%s6608_s0 + %s4603_s28]]   ;;  %s4779_s28 = smov 0  }
  0x2b   :  { %6722 = sst [smem:[#allocation15_spill]] %s4747_s12 }
  0x2c   :  { %s4767_s12 = sld [smem:[%s6608_s0 + %s4604_s7]]  }
  0x2d   :  { %6723 = sst [smem:[#allocation16_spill]] %s4752_s20 }
  0x2e   :  { %6724 = sst [smem:[#allocation17_spill]] %s4757_s30 }
  0x2f   :  { %s4772_s20 = sld [smem:[%s6608_s0 + %s4605_s15]]  }
  0x30   :  { %s4777_s30 = sld [smem:[%s6608_s0 + %s4606_s22]]  }
  0x31 LB: > { %s4243_s1 = sadd.s32 4294967295, %s4573_s28   ;;  %p4247_p0 = scmp.ge.s32.totalorder %s4573_s28, 1  ;;  %s4573_s28 = sphi %s4779_s28, %s76_s28  }
  0x32   : > { %p898_p1 = scmp.lt.s32.totalorder %s4573_s28, 3 }
  0x34   : > { %p899_p2 = pnand %p4247_p0, %p898_p1 }
  0x36   : > { %902 = sbr.rel (%p899_p2) target bundleno = 1630 (0x65e), region = 144 }
  0x3d   : > { %v1008_v0 = vld [vmem:[%s4622_s9] sm:$0xff]  ;;  %v1009_v1 = vld [vmem:[%s4622_s9 + $0x8] sm:$0xf]  ;;  %vm1035_vm0 = vcmask 1043456   ;;  %p985_p3 = scmp.lt.s32.totalorder %s4243_s1, 1  ;;  %vm4607_vm1 = vmmov 1   ;;  %v1241_v12 = vlaneseq }
  0x3e   : > { %v4509_v2 = vpack.c.bf16 %v1009_v1, %v1008_v0  ;;  %vm4510_vm2 = vmpackc.low %vm1035_vm0, %vm4607_vm1  ;;  %vm1010_vm3 = vcmask 97280   ;;  %vm1182_vm4 = vcmask 64512   ;;  %v6651_v11 = vmov 0.0   ;;  %v1229_v16 = vld [vmem:[%s4637_s21] sm:$0xff]  ;;  %s6850_s7 = sld [smem:[#allocation3_spill]]  ;;  %s6862_s10 = sld [smem:[#allocation4_spill]] }
  0x3f   : > { %s6906_s1 = smov (!%p985_p3, %s4243_s1), 1  ;;  %1193 = vst.msk [vmem:[#allocation2 + $0x48] sm:$0xff] %vm1182_vm4, %v6651_v11  ;;  %1194 = vst.msk [vmem:[#allocation2 + $0x50] sm:$0xff] %vm1182_vm4, %v6651_v11  ;;  %vm1185_vm5 = vcmask 58368   ;;  %v1242_v13 = vshrl.u32 %v1241_v12, 7  ;;  %v1974_v56 = vld [vmem:[%s4652_s3] sm:$0xff] }
  0x40   : > { %4511 = vmatprep.subr.msk.bf16.mxu0 %vm4510_vm2, %v4509_v2  ;;  %s4789_s0 = sshll.u32 %s6906_s1, 6  ;;  %1183 = vst.msk [vmem:[#allocation2] sm:$0xff] %vm1182_vm4, %v6651_v11  ;;  %1184 = vst.msk [vmem:[#allocation2 + $0x8] sm:$0xff] %vm1182_vm4, %v6651_v11  ;;  %4523 = vmatprep.subr.mxu1 %v1974_v56  ;;  %v4967_v0 = vld [vmem:[%s4627_s13] ss:$0 sm:$0xff]  ;;  %vm2144_vm6 = vcmask 130048  }
  0x41   : > { %4514 = vmatpush3.bf16.msk.msra.mxu0 %vm4510_vm2, %v4509_v2  ;;  %s989_s2 = scalar_lea.vmem %s4617_s5, %s4789_s0  ;;  %1187 = vst.msk [vmem:[#allocation2 + $0x18] sm:$0xff] %vm1182_vm4, %v6651_v11  ;;  %1188 = vst.msk [vmem:[#allocation2 + $0x20] sm:$0xff] %vm1182_vm4, %v6651_v11  ;;  %v4873_v14 = vsub.s32 0, %v1242_v13  ;;  %v4875_v15 = vsub.s32 1, %v1242_v13  ;;  %v4878_v17 = vsub.s32 2, %v1242_v13  ;;  %v4888_v22 = vsub.s32 3, %v1242_v13  ;;  %4524 = vmatpush3.msra.mxu1 %v1974_v56 }
  0x42   : > { %v1000_v3 = vld [vmem:[%s989_s2] sm:$0xff]  ;;  %v1001_v4 = vld [vmem:[%s989_s2 + $0x8] sm:$0xff]  ;;  %v1002_v5 = vld [vmem:[%s989_s2 + $0x10] sm:$0xff]  ;;  %1190 = vst.msk [vmem:[#allocation2 + $0x30] sm:$0xff] %vm1182_vm4, %v6651_v11  ;;  %v4893_v24 = vsub.s32 4, %v1242_v13  ;;  %v4904_v31 = vsub.s32 5, %v1242_v13  ;;  %4421 = vmatprep.subr.mxu0 %v1974_v56 }
  0x43   : > { %4409 = vmatprep.mubr.msk.f32.mxu0 %vm1010_vm3, %v1000_v3  ;;  %v1003_v6 = vld [vmem:[%s989_s2 + $0x18] sm:$0xff]  ;;  %v1004_v7 = vld [vmem:[%s989_s2 + $0x20] sm:$0xff]  ;;  %v1005_v8 = vld [vmem:[%s989_s2 + $0x28] sm:$0xff]  ;;  %1191 = vst.msk [vmem:[#allocation2 + $0x38] sm:$0xff] %vm1182_vm4, %v6651_v11  ;;  %v4883_v20 = vrot.slane %v1229_v16, %v4873_v14  ;;  %v4886_v21 = vrot.slane %v1229_v16, %v4875_v15  ;;  %v4891_v23 = vrot.slane %v1229_v16, %v4878_v17  ;;  %v4917_v36 = vsub.s32 6, %v1242_v13  ;;  %s6863_s11 = sld [smem:[#allocation5_spill]] }
  0x44   : > { %4410 = vmatmul.mubr.msk.f32.vlgmr.msra.gmra.mrb[0].mxu0 %vm1010_vm3, %v1001_v4  ;;  %v1006_v9 = vld [vmem:[%s989_s2 + $0x30] sm:$0xff]  ;;  %v1007_v10 = vld [vmem:[%s989_s2 + $0x38] sm:$0xff]  ;;  %1196 = vst.msk [vmem:[#allocation2 + $0x60] sm:$0xff] %vm1182_vm4, %v6651_v11  ;;  %1197 = vst.msk [vmem:[#allocation2 + $0x68] sm:$0xff] %vm1182_vm4, %v6651_v11  ;;  %v4896_v27 = vrot.slane %v1229_v16, %v4888_v22  ;;  %v4915_v35 = vrot.slane %v1229_v16, %v4893_v24  ;;  %v4920_v40 = vsub.s32 7, %v1242_v13  ;;  %s6883_s15 = sld [smem:[#allocation8_spill]] }
  0x45   : > { %4412 = vmatprep.mubr.msk.f32.mxu0 %vm1010_vm3, %v1002_v5  ;;  %1199 = vst.msk [vmem:[#allocation2 + $0x78] sm:$0xff] %vm1182_vm4, %v6651_v11  ;;  %1200 = vst.msk [vmem:[#allocation2 + $0x80] sm:$0xff] %vm1182_vm4, %v6651_v11  ;;  %v4923_v41 = vrot.slane %v1229_v16, %v4904_v31  ;;  %v4927_v45 = vrot.slane %v1229_v16, %v4917_v36  ;;  %4422 = vmatpush3.msra.mxu0 %v1974_v56  ;;  %s6885_s16 = sld [smem:[#allocation6_spill]]  ;;  %s6887_s18 = sld [smem:[#allocation7_spill]] }
  0x46   : > { %1202 = vst.msk [vmem:[#allocation2 + $0x90] sm:$0xff] %vm1182_vm4, %v6651_v11  ;;  %1203 = vst.msk [vmem:[#allocation2 + $0x98] sm:$0xff] %vm1182_vm4, %v6651_v11  ;;  %v4935_v48 = vrot.slane %v1229_v16, %v4920_v40  ;;  %s6888_s22 = sld [smem:[#allocation17_spill]]  ;;  %s6889_s23 = sld [smem:[#allocation14_spill]] }
  0x47   : > { %1205 = vst.msk [vmem:[#allocation2 + $0xa8] sm:$0xff] %vm1182_vm4, %v6651_v11  ;;  %1206 = vst.msk [vmem:[#allocation2 + $0xb0] sm:$0xff] %vm1182_vm4, %v6651_v11  ;;  %v1233_v25 = vld [vmem:[#allocation2 + $0x6] sm:$0xff]  ;;  %s6890_s26 = sld [smem:[#allocation9_spill]]  ;;  %s6891_s1 = sld [smem:[#allocation11_spill]] }
  0x48   : > { %4413 = vmatmul.mubr.msk.f32.gmra.mrb[2].mxu0 %vm1010_vm3, %v1003_v6  ;;  %1208 = vst.msk [vmem:[#allocation2 + $0xc0] sm:$0xff] %vm1182_vm4, %v6651_v11  ;;  %1209 = vst.msk [vmem:[#allocation2 + $0xc8] sm:$0xff] %vm1182_vm4, %v6651_v11  ;;  %v1234_v18 = vld [vmem:[#allocation2 + $0x1e] sm:$0xff]  ;;  %v1261_v26 = vld [vmem:[#allocation2 + $0x7] sm:$0xff]  ;;  %v1245_v32 = vmul.f32 %v4883_v20, %v1233_v25  ;;  %s6892_s2 = sld [smem:[#allocation10_spill]] }
  0x49   : > { %4415 = vmatprep.mubr.msk.f32.mxu0 %vm1010_vm3, %v1004_v7  ;;  %1211 = vst.msk [vmem:[#allocation2 + $0xd8] sm:$0xff] %vm1182_vm4, %v6651_v11  ;;  %1212 = vst.msk [vmem:[#allocation2 + $0xe0] sm:$0xff] %vm1182_vm4, %v6651_v11  ;;  %v1262_v19 = vld [vmem:[#allocation2 + $0x1f] sm:$0xff]  ;;  %v1273_v33 = vmul.f32 %v4886_v21, %v1261_v26  ;;  %v1289_v34 = vld [vmem:[#allocation2 + $0x8] sm:$0xff]  ;;  %v1386_v50 = vmul.f32 %v4923_v41, %v1234_v18  ;;  %v1246_v1 = vmul.f32 %v4883_v20, %v1234_v18 }
  0x4a   : > { %1214 = vst.msk [vmem:[#allocation2 + $0xf0] sm:$0xff] %vm1182_vm4, %v6651_v11  ;;  %1215 = vst.msk [vmem:[#allocation2 + $0xf8] sm:$0xff] %vm1182_vm4, %v6651_v11  ;;  %v4898_v28 = vld [vmem:[#allocation2 + $0x20] sm:$0xff]  ;;  %v1301_v38 = vmul.f32 %v4891_v23, %v1289_v34  ;;  %v1414_v52 = vmul.f32 %v4927_v45, %v1262_v19  ;;  %v1274_v2 = vmul.f32 %v4886_v21, %v1262_v19 }
  0x4b   : > { %1217 = vst.msk [vmem:[#allocation2 + $0x108] sm:$0xff] %vm1182_vm4, %v6651_v11  ;;  %1218 = vst.msk [vmem:[#allocation2 + $0x110] sm:$0xff] %vm1182_vm4, %v6651_v11  ;;  %v1281_v37 = vadd.f32 %v1273_v33, %v1245_v32  ;;  %v1442_v54 = vmul.f32 %v4935_v48, %v4898_v28  ;;  %v4978_v7 = vld [vmem:[%s4632_s17] ss:$0 sm:$0xff]  ;;  %v1302_v18 = vmul.f32 %v4891_v23, %v4898_v28 }
  0x4c   : > { %4416 = vmatmul.mubr.msk.f32.gmra.mrb[4].mxu0 %vm1010_vm3, %v1005_v8  ;;  %1195 = vst.msk [vmem:[#allocation2 + $0x58] sm:$0x3] %vm1185_vm5, %v6651_v11  ;;  %1186 = vst.msk [vmem:[#allocation2 + $0x10] sm:$0x3] %vm1185_vm5, %v6651_v11  ;;  %v1282_v16 = vadd.f32 %v1274_v2, %v1246_v1 }
  0x4d   : > { %4418 = vmatprep.mubr.msk.f32.mxu0 %vm1010_vm3, %v1006_v9  ;;  %1189 = vst.msk [vmem:[#allocation2 + $0x28] sm:$0x3] %vm1185_vm5, %v6651_v11  ;;  %1192 = vst.msk [vmem:[#allocation2 + $0x40] sm:$0x3] %vm1185_vm5, %v6651_v11  ;;  %v1309_v42 = vadd.f32 %v1301_v38, %v1281_v37  ;;  %v4986_v9 = vld [vmem:[%s4637_s21 + $0x8] sm:$0xff] }
  0x4e   : > { %1198 = vst.msk [vmem:[#allocation2 + $0x70] sm:$0x3] %vm1185_vm5, %v6651_v11  ;;  %1201 = vst.msk [vmem:[#allocation2 + $0x88] sm:$0x3] %vm1185_vm5, %v6651_v11  ;;  %v4995_v25 = vrot.slane %v4986_v9, %v4873_v14 }
  0x4f   : > { %1204 = vst.msk [vmem:[#allocation2 + $0xa0] sm:$0x3] %vm1185_vm5, %v6651_v11  ;;  %1207 = vst.msk [vmem:[#allocation2 + $0xb8] sm:$0x3] %vm1185_vm5, %v6651_v11 }
  0x50   : > { %4419 = vmatmul.mubr.msk.f32.gmra.mrb[6].mxu0 %vm1010_vm3, %v1007_v10  ;;  %1210 = vst.msk [vmem:[#allocation2 + $0xd0] sm:$0x3] %vm1185_vm5, %v6651_v11  ;;  %1213 = vst.msk [vmem:[#allocation2 + $0xe8] sm:$0x3] %vm1185_vm5, %v6651_v11 }
  0x51   : > { %1216 = vst.msk [vmem:[#allocation2 + $0x100] sm:$0x3] %vm1185_vm5, %v6651_v11  ;;  %1219 = vst.msk [vmem:[#allocation2 + $0x118] sm:$0x3] %vm1185_vm5, %v6651_v11  ;;  %v4944_v57 = vld [vmem:[#allocation2 + $0xf6] sm:$0xff] }
  0x52   : > { %6725 = vst [vmem:[#allocation18_spill] sm:$0xff] %v4873_v14  ;;  %6726 = vst [vmem:[#allocation19_spill] sm:$0xff] %v4875_v15  ;;  %v4946_v58 = vld [vmem:[#allocation2 + $0xf7] sm:$0xff]  ;;  %v4960_v62 = vld [vmem:[#allocation2 + $0x10e] sm:$0xff] }
  0x53   : > { %6727 = vst [vmem:[#allocation20_spill] sm:$0xff] %v4878_v17  ;;  %2315 = vst.msk [vmem:[#allocation2 + $0x18] sm:$0xff] %vm1182_vm4, %v6651_v11  ;;  %v1317_v39 = vld [vmem:[#allocation2 + $0x9] sm:$0xff]  ;;  %v4950_v59 = vld [vmem:[#allocation2 + $0xf8] sm:$0xff] }
  0x54   : > { %6728 = vst [vmem:[#allocation21_spill] sm:$0xff] %v4888_v22  ;;  %6729 = vst [vmem:[#allocation22_spill] sm:$0xff] %v4893_v24  ;;  %v4900_v29 = vld [vmem:[#allocation2 + $0x21] sm:$0xff]  ;;  %v1329_v43 = vmul.f32 %v4896_v27, %v1317_v39  ;;  %v1345_v44 = vld [vmem:[#allocation2 + $0xa] sm:$0xff]  ;;  %v1310_v39 = vadd.f32 %v1302_v18, %v1282_v16 }
  0x55   : > { %v4902_v30 = vld [vmem:[#allocation2 + $0x22] sm:$0xff]  ;;  %6730 = vst [vmem:[#allocation23_spill] sm:$0xff] %v4904_v31  ;;  %2312 = vst.msk [vmem:[#allocation2] sm:$0xff] %vm1182_vm4, %v6651_v11  ;;  %v1357_v47 = vmul.f32 %v4915_v35, %v1345_v44  ;;  %v4962_v63 = vld [vmem:[#allocation2 + $0x10f] sm:$0xff]  ;;  %v1330_v28 = vmul.f32 %v4896_v27, %v4900_v29 }
  0x56   : > { %2317 = vst.msk [vmem:[#allocation2 + $0x28] sm:$0x3] %vm1185_vm5, %v6651_v11  ;;  %6731 = vst [vmem:[#allocation24_spill] sm:$0xff] %v4917_v36  ;;  %v1337_v46 = vadd.f32 %v1329_v43, %v1309_v42  ;;  %v4971_v3 = vld [vmem:[#allocation2 + $0x110] sm:$0xff]  ;;  %v5006_v43 = vrot.slane %v4986_v9, %v4875_v15  ;;  %v1358_v1 = vmul.f32 %v4915_v35, %v4902_v30 }
  0x57   : > { %2316 = vst.msk [vmem:[#allocation2 + $0x20] sm:$0xff] %vm1182_vm4, %v6651_v11  ;;  %6732 = vst [vmem:[#allocation25_spill] sm:$0xff] %v4920_v40 }
  0x58   : > { %2313 = vst.msk [vmem:[#allocation2 + $0x8] sm:$0xff] %vm1182_vm4, %v6651_v11  ;;  %v1365_v49 = vadd.f32 %v1357_v47, %v1337_v46  ;;  %6733 = vst [vmem:[#allocation26_spill] sm:$0xff] %v4944_v57  ;;  %v4952_v60 = vld [vmem:[#allocation2 + $0xf9] sm:$0xff]  ;;  %v4973_v4 = vld [vmem:[#allocation2 + $0x111] sm:$0xff]  ;;  %v1470_v47 = vmul.f32 %v4995_v25, %v4900_v29 }
  0x59   : > { %2314 = vst.msk [vmem:[#allocation2 + $0x10] sm:$0x3] %vm1185_vm5, %v6651_v11  ;;  %6734 = vst [vmem:[#allocation27_spill] sm:$0xff] %v4946_v58  ;;  %v4954_v61 = vld [vmem:[#allocation2 + $0xfa] sm:$0xff]  ;;  %v4975_v5 = vld [vmem:[#allocation2 + $0x112] sm:$0xff] }
  0x5a   : > { %v1394_v51 = vadd.f32 %v1386_v50, %v1365_v49  ;;  %2342 = vst.msk [vmem:[#allocation2 + $0xf0] sm:$0xff] %vm1182_vm4, %v6651_v11  ;;  %6735 = vst [vmem:[#allocation28_spill] sm:$0xff] %v4950_v59 }
  0x5b   : > { %6736 = vst [vmem:[#allocation29_spill] sm:$0xff] %v4952_v60  ;;  %6737 = vst [vmem:[#allocation30_spill] sm:$0xff] %v4954_v61 }
  0x5c   : > { %v1422_v53 = vadd.f32 %v1414_v52, %v1394_v51  ;;  %2344 = vst.msk [vmem:[#allocation2 + $0x100] sm:$0x3] %vm1185_vm5, %v6651_v11  ;;  %6738 = vst [vmem:[#allocation31_spill] sm:$0xff] %v4960_v62 }
  0x5d   : > { %2343 = vst.msk [vmem:[#allocation2 + $0xf8] sm:$0xff] %vm1182_vm4, %v6651_v11  ;;  %6739 = vst [vmem:[#allocation32_spill] sm:$0xff] %v4962_v63 }
  0x5e   : > { %v4941_v55 = vadd.f32 %v1442_v54, %v1422_v53  ;;  %2345 = vst.msk [vmem:[#allocation2 + $0x108] sm:$0xff] %vm1182_vm4, %v6651_v11  ;;  %6740 = vst [vmem:[#allocation33_spill] sm:$0xff] %v4971_v3  ;;  %v1338_v54 = vadd.f32 %v1330_v28, %v1310_v39 }
  0x5f   : > { %6741 = vst [vmem:[#allocation34_spill] sm:$0xff] %v4973_v4  ;;  %6742 = vst [vmem:[#allocation35_spill] sm:$0xff] %v4975_v5 }
  0x60   : > { %2346 = vst.msk [vmem:[#allocation2 + $0x110] sm:$0xff] %vm1182_vm4, %v6651_v11  ;;  %6743 = vst [vmem:[#allocation36_spill] sm:$0xff] %v4995_v25  ;;  %v1366_v28 = vadd.f32 %v1358_v1, %v1338_v54  ;;  %v5087_v54 = vrot.slane %v4986_v9, %v4920_v40 }
  0x61   : > { %2347 = vst.msk [vmem:[#allocation2 + $0x118] sm:$0x3] %vm1185_vm5, %v6651_v11  ;;  %6744 = vst [vmem:[#allocation37_spill] sm:$0xff] %v5006_v43 }
  0x62   : > { %6749 = vst [vmem:[#allocation42_spill] sm:$0xff] %v5087_v54 }
 0x117   : > { %v4411_v6 = vpop.f32.mrb[0].mxu0 }
 0x118   : > { %v1152_v8 = vmul.f32 %v4411_v6, %v4967_v0  ;;  %v1105_v10 = vpop.f32.mrb[1].mxu0  ;;  %v1478_v6 = vadd.f32 %v1470_v47, %v4941_v55 }
 0x119   : > { %v1151_v12 = vmul.f32 %v4967_v0, %v1105_v10 }
 0x11a   : > { %v1167_v13 = vadd.f32 %v4978_v7, %v1152_v8  ;;  %v1498_v8 = vmul.f32 %v5006_v43, %v4902_v30 }
 0x11b   : > { %v1166_v19 = vadd.f32 %v4978_v7, %v1151_v12  ;;  %v4414_v26 = vpop.f32.mrb[2].mxu0 }
 0x11c   : > { %v1175_v32 = vmax.f32 %v1167_v13, 0.0  ;;  %v1154_v33 = vmul.f32 %v4414_v26, %v4967_v0  ;;  %v1115_v34 = vpop.f32.mrb[3].mxu0  ;;  %v1231_v13 = vld [vmem:[%s4637_s21 + $0x10] sm:$0xff] }
 0x11d   : > { %v1174_v37 = vmax.f32 %v1166_v19, 0.0  ;;  %v1153_v38 = vmul.f32 %v4967_v0, %v1115_v34  ;;  %v5043_v34 = vrot.slane %v4986_v9, %v4893_v24  ;;  %v5117_v4 = vrot.slane %v1231_v13, %v4888_v22 }
 0x11e   : > { %1222 = vst.msk [vmem:[#allocation2 + $0x50] sm:$0xff] %vm1182_vm4, %v1175_v32  ;;  %v1169_v42 = vadd.f32 %v4978_v7, %v1154_v33  ;;  %v5153_v62 = vrot.slane %v1231_v13, %v4920_v40 }
 0x11f   : > { %1221 = vst.msk [vmem:[#allocation2 + $0x38] sm:$0xff] %vm1182_vm4, %v1174_v37  ;;  %v1168_v44 = vadd.f32 %v4978_v7, %v1153_v38  ;;  %v4417_v46 = vpop.f32.mrb[4].mxu0  ;;  %v5051_v38 = vrot.slane %v4986_v9, %v4878_v17  ;;  %6756 = vst [vmem:[#allocation49_spill] sm:$0xff] %v5117_v4 }
 0x120   : > { %v1177_v49 = vmax.f32 %v1169_v42, 0.0  ;;  %v1156_v50 = vmul.f32 %v4417_v46, %v4967_v0  ;;  %v1125_v51 = vpop.f32.mrb[5].mxu0  ;;  %v5057_v42 = vadd.f32 %v1498_v8, %v1478_v6  ;;  %v5065_v46 = vrot.slane %v4986_v9, %v4904_v31  ;;  %6760 = vst [vmem:[#allocation53_spill] sm:$0xff] %v5153_v62 }
 0x121   : > { %v1176_v52 = vmax.f32 %v1168_v44, 0.0  ;;  %v1155_v53 = vmul.f32 %v4967_v0, %v1125_v51  ;;  %v5061_v44 = vrot.slane %v4986_v9, %v4888_v22  ;;  %v5100_v8 = vrot.slane %v1231_v13, %v4873_v14 }
 0x122   : > { %1224 = vst.msk [vmem:[#allocation2 + $0x80] sm:$0xff] %vm1182_vm4, %v1177_v49  ;;  %v1171_v56 = vadd.f32 %v4978_v7, %v1156_v50  ;;  %v5120_v14 = vrot.slane %v1231_v13, %v4893_v24  ;;  %v5134_v22 = vrot.slane %v1231_v13, %v4917_v36 }
 0x123   : > { %1223 = vst.msk [vmem:[#allocation2 + $0x68] sm:$0xff] %vm1182_vm4, %v1176_v52  ;;  %v1170_v29 = vadd.f32 %v4978_v7, %v1155_v53  ;;  %v5019_v2 = vpop.f32.mrb[6].mxu0  ;;  %v5083_v53 = vrot.slane %v4986_v9, %v4917_v36  ;;  %6751 = vst [vmem:[#allocation44_spill] sm:$0xff] %v5100_v8  ;;  %v5106_v9 = vrot.slane %v1231_v13, %v4878_v17 }
 0x124   : > { %v1179_v10 = vmax.f32 %v1171_v56, 0.0  ;;  %v5024_v12 = vpop.f32.mrb[7].mxu0  ;;  %6757 = vst [vmem:[#allocation50_spill] sm:$0xff] %v5120_v14  ;;  %6759 = vst [vmem:[#allocation52_spill] sm:$0xff] %v5134_v22 }
 0x125   : > { %v5027_v16 = vld [vmem:[#allocation2 + $0x4e] sm:$0xff]  ;;  %v1178_v26 = vmax.f32 %v1170_v29, 0.0  ;;  %6748 = vst [vmem:[#allocation41_spill] sm:$0xff] %v5083_v53  ;;  %6753 = vst [vmem:[#allocation46_spill] sm:$0xff] %v5106_v9  ;;  %v1157_v4 = vmul.f32 %v4967_v0, %v5024_v12 }
 0x126   : > { %v5029_v18 = vld [vmem:[#allocation2 + $0x4f] sm:$0xff]  ;;  %v1248_v32 = vmul.f32 %v4883_v20, %v5027_v16  ;;  %1226 = vst.msk [vmem:[#allocation2 + $0xb0] sm:$0xff] %vm1182_vm4, %v1179_v10  ;;  %v5054_v39 = vld [vmem:[#allocation2 + $0x37] sm:$0xff]  ;;  %v5103_v10 = vrot.slane %v1231_v13, %v4875_v15  ;;  %v5123_v15 = vrot.slane %v1231_v13, %v4904_v31  ;;  %v1527_v8 = vmul.f32 %v5051_v38, %v5027_v16 }
 0x127   : > { %v5031_v19 = vld [vmem:[#allocation2 + $0x50] sm:$0xff]  ;;  %v1276_v55 = vmul.f32 %v4886_v21, %v5029_v18  ;;  %2321 = vst.msk [vmem:[#allocation2 + $0x48] sm:$0xff] %vm1182_vm4, %v6651_v11  ;;  %1225 = vst.msk [vmem:[#allocation2 + $0x98] sm:$0xff] %vm1182_vm4, %v1178_v26  ;;  %v5073_v50 = vld [vmem:[#allocation2 + $0x38] sm:$0xff]  ;;  %v1415_v31 = vmul.f32 %v4927_v45, %v5054_v39  ;;  %v1275_v61 = vmul.f32 %v4886_v21, %v5054_v39 }
 0x128   : > { %6745 = vst [vmem:[#allocation38_spill] sm:$0xff] %v5031_v19  ;;  %v5037_v33 = vld [vmem:[#allocation2 + $0x51] sm:$0xff]  ;;  %v1304_v49 = vmul.f32 %v4891_v23, %v5031_v19  ;;  %v5075_v51 = vld [vmem:[#allocation2 + $0x39] sm:$0xff]  ;;  %6752 = vst [vmem:[#allocation45_spill] sm:$0xff] %v5103_v10 }
 0x129   : > { %6746 = vst [vmem:[#allocation39_spill] sm:$0xff] %v5037_v33  ;;  %v5039_v30 = vld [vmem:[#allocation2 + $0x52] sm:$0xff]  ;;  %v1284_v47 = vadd.f32 %v1276_v55, %v1248_v32  ;;  %v5077_v52 = vld [vmem:[#allocation2 + $0x3a] sm:$0xff]  ;;  %v5112_v55 = vld [vmem:[#allocation2 + $0x82] sm:$0xff] }
 0x12a   : > { %6747 = vst [vmem:[#allocation40_spill] sm:$0xff] %v5039_v30  ;;  %v5047_v37 = vld [vmem:[#allocation2 + $0x36] sm:$0xff]  ;;  %2322 = vst.msk [vmem:[#allocation2 + $0x50] sm:$0xff] %vm1182_vm4, %v6651_v11  ;;  %v5093_v1 = vld [vmem:[#allocation2 + $0x7e] sm:$0xff]  ;;  %v1360_v14 = vmul.f32 %v4915_v35, %v5039_v30 }
 0x12b   : > { %2323 = vst.msk [vmem:[#allocation2 + $0x58] sm:$0x3] %vm1185_vm5, %v6651_v11  ;;  %v1387_v56 = vmul.f32 %v4923_v41, %v5047_v37  ;;  %2320 = vst.msk [vmem:[#allocation2 + $0x40] sm:$0x3] %vm1185_vm5, %v6651_v11  ;;  %v5095_v29 = vld [vmem:[#allocation2 + $0x7f] sm:$0xff]  ;;  %v1312_v26 = vadd.f32 %v1304_v49, %v1284_v47  ;;  %v1250_v47 = vmul.f32 %v4883_v20, %v5093_v1  ;;  %v5131_v3 = vld [vmem:[#allocation2 + $0x67] sm:$0xff] }
 0x12c   : > { %2318 = vst.msk [vmem:[#allocation2 + $0x30] sm:$0xff] %vm1182_vm4, %v6651_v11  ;;  %6750 = vst [vmem:[#allocation43_spill] sm:$0xff] %v5095_v29  ;;  %v5097_v6 = vld [vmem:[#allocation2 + $0x80] sm:$0xff]  ;;  %v1278_v49 = vmul.f32 %v4886_v21, %v5095_v29  ;;  %v5146_v24 = vld [vmem:[#allocation2 + $0x68] sm:$0xff] }
 0x12d   : > { %2319 = vst.msk [vmem:[#allocation2 + $0x38] sm:$0xff] %vm1182_vm4, %v6651_v11  ;;  %v5110_v32 = vld [vmem:[#allocation2 + $0x81] sm:$0xff]  ;;  %6755 = vst [vmem:[#allocation48_spill] sm:$0xff] %v5112_v55  ;;  %v1395_v17 = vadd.f32 %v1387_v56, %v1366_v28  ;;  %v1332_v28 = vmul.f32 %v4896_v27, %v5037_v33  ;;  %v1247_v56 = vmul.f32 %v4883_v20, %v5047_v37  ;;  %v5148_v63 = vld [vmem:[#allocation2 + $0x69] sm:$0xff] }
 0x12e   : > { %6754 = vst [vmem:[#allocation47_spill] sm:$0xff] %v5110_v32  ;;  %v5114_v5 = vld [vmem:[#allocation2 + $0x66] sm:$0xff]  ;;  %6758 = vst [vmem:[#allocation51_spill] sm:$0xff] %v5123_v15  ;;  %v1286_v60 = vadd.f32 %v1278_v49, %v1250_v47  ;;  %v1306_v59 = vmul.f32 %v4891_v23, %v5097_v6  ;;  %v5163_v57 = vld [vmem:[#allocation2 + $0xae] sm:$0xff]  ;;  %v1277_v47 = vmul.f32 %v4886_v21, %v5131_v3 }
 0x12f   : > { %2327 = vst.msk [vmem:[#allocation2 + $0x78] sm:$0xff] %vm1182_vm4, %v6651_v11  ;;  %2328 = vst.msk [vmem:[#allocation2 + $0x80] sm:$0xff] %vm1182_vm4, %v6651_v11  ;;  %v5150_v36 = vld [vmem:[#allocation2 + $0x6a] sm:$0xff]  ;;  %v1249_v58 = vmul.f32 %v4883_v20, %v5114_v5  ;;  %v1340_v13 = vadd.f32 %v1332_v28, %v1312_v26  ;;  %v1423_v40 = vadd.f32 %v1415_v31, %v1395_v17  ;;  %v5177_v22 = vld [vmem:[#allocation2 + $0xb2] sm:$0xff] }
 0x130   : > { %2329 = vst.msk [vmem:[#allocation2 + $0x88] sm:$0x3] %vm1185_vm5, %v6651_v11  ;;  %6761 = vst [vmem:[#allocation54_spill] sm:$0xff] %v5163_v57  ;;  %v5165_v29 = vld [vmem:[#allocation2 + $0xaf] sm:$0xff]  ;;  %v1158_v15 = vmul.f32 %v5019_v2, %v4967_v0  ;;  %v5187_v17 = vmul.f32 %v4935_v48, %v5031_v19  ;;  %v1314_v31 = vadd.f32 %v1306_v59, %v1286_v60  ;;  %v5191_v28 = vld [vmem:[#allocation2 + $0x97] sm:$0xff] }
 0x131   : > { %2324 = vst.msk [vmem:[#allocation2 + $0x60] sm:$0xff] %vm1182_vm4, %v6651_v11  ;;  %6762 = vst [vmem:[#allocation55_spill] sm:$0xff] %v5165_v29  ;;  %v5173_v49 = vld [vmem:[#allocation2 + $0xb0] sm:$0xff]  ;;  %v5201_v2 = vmul.f32 %v5043_v34, %v5031_v19  ;;  %v1303_v59 = vmul.f32 %v4891_v23, %v5073_v50  ;;  %v1443_v60 = vmul.f32 %v4935_v48, %v5073_v50  ;;  %v5207_v30 = vld [vmem:[#allocation2 + $0x98] sm:$0xff] }
 0x132   : > { %2326 = vst.msk [vmem:[#allocation2 + $0x70] sm:$0x3] %vm1185_vm5, %v6651_v11  ;;  %6763 = vst [vmem:[#allocation56_spill] sm:$0xff] %v5173_v49  ;;  %v5175_v62 = vld [vmem:[#allocation2 + $0xb1] sm:$0xff]  ;;  %v5209_v0 = vld [vmem:[#allocation2 + $0x99] sm:$0xff]  ;;  %v1283_v9 = vadd.f32 %v1275_v61, %v1247_v56  ;;  %v1334_v33 = vmul.f32 %v4896_v27, %v5110_v32  ;;  %v1252_v10 = vmul.f32 %v4883_v20, %v5163_v57 }
 0x133   : > { %2325 = vst.msk [vmem:[#allocation2 + $0x68] sm:$0xff] %vm1182_vm4, %v6651_v11  ;;  %6764 = vst [vmem:[#allocation57_spill] sm:$0xff] %v5175_v62  ;;  %v5189_v26 = vld [vmem:[#allocation2 + $0x96] sm:$0xff]  ;;  %v1305_v61 = vmul.f32 %v4891_v23, %v5146_v24  ;;  %v1280_v56 = vmul.f32 %v4886_v21, %v5165_v29  ;;  %v1471_v32 = vmul.f32 %v4995_v25, %v5075_v51 }
 0x134   : > { %6765 = vst [vmem:[#allocation58_spill] sm:$0xff] %v5177_v22  ;;  %2333 = vst.msk [vmem:[#allocation2 + $0xa8] sm:$0xff] %vm1182_vm4, %v6651_v11  ;;  %v5211_v12 = vld [vmem:[#allocation2 + $0x9a] sm:$0xff]  ;;  %v1499_v19 = vmul.f32 %v5006_v43, %v5077_v52  ;;  %v1342_v54 = vadd.f32 %v1334_v33, %v1314_v31  ;;  %v1279_v29 = vmul.f32 %v4886_v21, %v5191_v28 }
 0x135   : > { %6766 = vst [vmem:[#allocation59_spill] sm:$0xff] %v5187_v17  ;;  %2335 = vst.msk [vmem:[#allocation2 + $0xb8] sm:$0x3] %vm1185_vm5, %v6651_v11  ;;  %v1285_v17 = vadd.f32 %v1277_v47, %v1249_v58  ;;  %v1368_v58 = vadd.f32 %v1360_v14, %v1340_v13  ;;  %v1451_v47 = vadd.f32 %v1443_v60, %v1423_v40 }
 0x136   : > { %2334 = vst.msk [vmem:[#allocation2 + $0xb0] sm:$0xff] %vm1182_vm4, %v6651_v11  ;;  %6767 = vst [vmem:[#allocation60_spill] sm:$0xff] %v5201_v2  ;;  %v1331_v2 = vmul.f32 %v4896_v27, %v5075_v51  ;;  %v1389_v14 = vmul.f32 %v4923_v41, %v5114_v5  ;;  %v1288_v40 = vadd.f32 %v1280_v56, %v1252_v10 }
 0x137   : > { %6768 = vst [vmem:[#allocation61_spill] sm:$0xff] %v5207_v30  ;;  %6769 = vst [vmem:[#allocation62_spill] sm:$0xff] %v5209_v0  ;;  %v1313_v53 = vadd.f32 %v1305_v61, %v1285_v17  ;;  %v1308_v13 = vmul.f32 %v4891_v23, %v5173_v49  ;;  %v1362_v60 = vmul.f32 %v4915_v35, %v5112_v55 }
 0x138   : > { %6770 = vst [vmem:[#allocation63_spill] sm:$0xff] %v5211_v12  ;;  %2330 = vst.msk [vmem:[#allocation2 + $0x90] sm:$0xff] %vm1182_vm4, %v6651_v11  ;;  %v1307_v33 = vmul.f32 %v4891_v23, %v5207_v30  ;;  %v1311_v17 = vadd.f32 %v1303_v59, %v1283_v9  ;;  %v1479_v31 = vadd.f32 %v1471_v32, %v1451_v47 }
 0x139   : > { %2332 = vst.msk [vmem:[#allocation2 + $0xa0] sm:$0x3] %vm1185_vm5, %v6651_v11  ;;  %v1333_v10 = vmul.f32 %v4896_v27, %v5148_v63  ;;  %v1397_v61 = vadd.f32 %v1389_v14, %v1368_v58  ;;  %v1370_v56 = vadd.f32 %v1362_v60, %v1342_v54  ;;  %v5251_v43 = vmul.f32 %v4935_v48, %v5097_v6 }
 0x13a   : > { %2331 = vst.msk [vmem:[#allocation2 + $0x98] sm:$0xff] %vm1182_vm4, %v6651_v11  ;;  %v1251_v11 = vmul.f32 %v4883_v20, %v5189_v26  ;;  %v1391_v20 = vmul.f32 %v4923_v41, %v5189_v26  ;;  %v1417_v21 = vmul.f32 %v4927_v45, %v5131_v3  ;;  %v1316_v23 = vadd.f32 %v1308_v13, %v1288_v40 }
 0x13b   : > { %6771 = vst [vmem:[#allocation64_spill] sm:$0xff] %v5251_v43  ;;  %v1341_v55 = vadd.f32 %v1333_v10, %v1313_v53  ;;  %v1336_v9 = vmul.f32 %v4896_v27, %v5175_v62  ;;  %v1335_v54 = vmul.f32 %v4896_v27, %v5209_v0  ;;  %v1173_v59 = vadd.f32 %v4978_v7, %v1158_v15 }
 0x13c   : > { %v1287_v25 = vadd.f32 %v1279_v29, %v1251_v11  ;;  %v1172_v58 = vadd.f32 %v4978_v7, %v1157_v4  ;;  %v1507_v11 = vadd.f32 %v1499_v19, %v1479_v31  ;;  %v1361_v29 = vmul.f32 %v4915_v35, %v5150_v36 }
 0x13d   : > { %v1425_v53 = vadd.f32 %v1417_v21, %v1397_v61  ;;  %v1526_v47 = vmul.f32 %v5051_v38, %v5047_v37  ;;  %v1399_v14 = vadd.f32 %v1391_v20, %v1370_v56  ;;  %v1419_v40 = vmul.f32 %v4927_v45, %v5191_v28 }
 0x13e   : > { %v1315_v32 = vadd.f32 %v1307_v33, %v1287_v25  ;;  %v1181_v25 = vmax.f32 %v1173_v59, 0.0  ;;  %v1180_v13 = vmax.f32 %v1172_v58, 0.0  ;;  %v1339_v60 = vadd.f32 %v1331_v2, %v1311_v17  ;;  %v6774_v59 = vld [vmem:[#allocation41_spill] sm:$0xff] }
 0x13f   : > { %v1445_v15 = vmul.f32 %v4935_v48, %v5146_v24  ;;  %v1534_v27 = vadd.f32 %v1526_v47, %v5057_v42  ;;  %v1554_v4 = vmul.f32 %v5061_v44, %v5054_v39  ;;  %v1369_v7 = vadd.f32 %v1361_v29, %v1341_v55  ;;  %v5309_v47 = vld [vmem:[%s4637_s21 + $0x18] ss:$0 sm:$0xff] }
 0x140   : > { %v1344_v19 = vadd.f32 %v1336_v9, %v1316_v23  ;;  %v1364_v37 = vmul.f32 %v4915_v35, %v5177_v22  ;;  %v1343_v33 = vadd.f32 %v1335_v54, %v1315_v32  ;;  %1228 = vst.msk [vmem:[#allocation2 + $0xe0] sm:$0xff] %vm1182_vm4, %v1181_v25  ;;  %1227 = vst.msk [vmem:[#allocation2 + $0xc8] sm:$0xff] %vm1182_vm4, %v1180_v13  ;;  %v6779_v25 = vld [vmem:[#allocation38_spill] sm:$0xff]  ;;  %v6780_v13 = vld [vmem:[#allocation45_spill] sm:$0xff] }
 0x141   : > { %v1535_v31 = vadd.f32 %v1527_v8, %v1507_v11  ;;  %v1390_v2 = vmul.f32 %v4923_v41, %v5093_v1  ;;  %v1562_v17 = vadd.f32 %v1554_v4, %v1534_v27  ;;  %v1582_v42 = vmul.f32 %v5043_v34, %v5073_v50  ;;  %v6775_v11 = vld [vmem:[#allocation42_spill] sm:$0xff]  ;;  %v6781_v27 = vld [vmem:[#allocation39_spill] sm:$0xff] }
 0x142   : > { %v5282_v10 = vadd.f32 %v1445_v15, %v1425_v53  ;;  %v5286_v39 = vmul.f32 %v4935_v48, %v5173_v49  ;;  %v1363_v55 = vmul.f32 %v4915_v35, %v5211_v12  ;;  %v1427_v61 = vadd.f32 %v1419_v40, %v1399_v14  ;;  %6777 = vst [vmem:[#allocation42_spill] sm:$0xff] %v5309_v47  ;;  %v6778_v14 = vld [vmem:[#allocation44_spill] sm:$0xff]  ;;  %v6782_v4 = vld [vmem:[#allocation46_spill] sm:$0xff] }
 0x143   : > { %v1392_v8 = vmul.f32 %v4923_v41, %v5163_v57  ;;  %v1590_v56 = vadd.f32 %v1582_v42, %v1562_v17  ;;  %v1610_v20 = vmul.f32 %v5065_v46, %v5075_v51  ;;  %v1555_v50 = vmul.f32 %v5061_v44, %v5029_v18  ;;  %v6787_v17 = vld [vmem:[#allocation49_spill] sm:$0xff]  ;;  %v6801_v57 = vld [vmem:[#allocation43_spill] sm:$0xff] }
 0x144   : > { %6772 = vst [vmem:[#allocation65_spill] sm:$0xff] %v5286_v39  ;;  %v5296_v21 = vadd.f32 %v1390_v2, %v1369_v7  ;;  %v5298_v23 = vadd.f32 %v1364_v37, %v1344_v19  ;;  %v1371_v9 = vadd.f32 %v1363_v55, %v1343_v33  ;;  %v1447_v32 = vmul.f32 %v4935_v48, %v5207_v30  ;;  %v6786_v2 = vld [vmem:[#allocation40_spill] sm:$0xff] }
 0x145   : > { %v1618_v54 = vadd.f32 %v1610_v20, %v1590_v56  ;;  %v1638_v58 = vmul.f32 %v6774_v59, %v5077_v52  ;;  %v1667_v29 = vmul.f32 %v6775_v11, %v5027_v16  ;;  %v1563_v53 = vadd.f32 %v1555_v50, %v1535_v31  ;;  %v6788_v55 = vld [vmem:[#allocation60_spill] sm:$0xff] }
 0x146   : > { %6773 = vst [vmem:[#allocation66_spill] sm:$0xff] %v5296_v21  ;;  %v5306_v51 = vadd.f32 %v1447_v32, %v1427_v61  ;;  %v1695_v40 = vmul.f32 %v6778_v14, %v5029_v18  ;;  %v1723_v15 = vmul.f32 %v6780_v13, %v6779_v25  ;;  %v1751_v7 = vmul.f32 %v6782_v4, %v6781_v27  ;;  %v6798_v39 = vld [vmem:[#allocation52_spill] sm:$0xff] }
 0x147   : > { %v5317_v19 = vld [vmem:[#allocation2 + $0xde] sm:$0xff]  ;;  %v1646_v31 = vadd.f32 %v1638_v58, %v1618_v54  ;;  %v1779_v42 = vmul.f32 %v6787_v17, %v6786_v2  ;;  %v1591_v61 = vadd.f32 %v6788_v55, %v1563_v53  ;;  %v1611_v56 = vmul.f32 %v5065_v46, %v6781_v27  ;;  %v5332_v32 = vld [vmem:[#allocation2 + $0xc6] sm:$0xff]  ;;  %v6805_v21 = vld [vmem:[#allocation36_spill] sm:$0xff] }
 0x148   : > { %6776 = vst [vmem:[#allocation41_spill] sm:$0xff] %v5306_v51  ;;  %6783 = vst [vmem:[#allocation44_spill] sm:$0xff] %v5317_v19  ;;  %v5319_v37 = vld [vmem:[#allocation2 + $0xdf] sm:$0xff]  ;;  %v5328_v20 = vadd.f32 %v1392_v8, %v1371_v9  ;;  %v5334_v25 = vld [vmem:[#allocation2 + $0xc7] sm:$0xff]  ;;  %v1359_v53 = vmul.f32 %v4915_v35, %v5077_v52  ;;  %v6795_v55 = vmov 0.0   ;;  %v1639_v62 = vmul.f32 %v6774_v59, %v6786_v2 }
 0x149   : > { %6784 = vst [vmem:[#allocation38_spill] sm:$0xff] %v5319_v37  ;;  %v5321_v33 = vld [vmem:[#allocation2 + $0xe1] sm:$0xff]  ;;  %6791 = vst [vmem:[#allocation40_spill] sm:$0xff] %v5332_v32  ;;  %v5346_v9 = vld [vmem:[#allocation2 + $0xc9] sm:$0xff]  ;;  %v1675_v19 = vadd.f32 %v1667_v29, %v1646_v31  ;;  %v1619_v22 = vadd.f32 %v1611_v56, %v1591_v61  ;;  %v5364_v29 = vmul.f32 %v5309_v47, %v5150_v36 }
 0x14a   : > { %6785 = vst [vmem:[#allocation45_spill] sm:$0xff] %v5321_v33  ;;  %6789 = vst [vmem:[#allocation39_spill] sm:$0xff] %v5328_v20  ;;  %v5330_v50 = vld [vmem:[#allocation2 + $0xe2] sm:$0xff]  ;;  %v1864_v20 = vmul.f32 %v6798_v39, %v5146_v24  ;;  %v6799_v35 = vld [vmem:[#allocation53_spill] sm:$0xff]  ;;  %v1367_v31 = vadd.f32 %v1359_v53, %v1339_v60  ;;  %v1388_v61 = vmul.f32 %v4923_v41, %v5027_v16 }
 0x14b   : > { %6790 = vst [vmem:[#allocation46_spill] sm:$0xff] %v5330_v50  ;;  %6792 = vst [vmem:[#allocation49_spill] sm:$0xff] %v5334_v25  ;;  %v6793_v37 = vld [vmem:[#allocation50_spill] sm:$0xff]  ;;  %v6794_v54 = vld [vmem:[#allocation51_spill] sm:$0xff]  ;;  %v5360_v52 = vmul.f32 %v6799_v35, %v5148_v63  ;;  %v1668_v49 = vmul.f32 %v6775_v11, %v5114_v5  ;;  %v1696_v51 = vmul.f32 %v6778_v14, %v5131_v3 }
 0x14c   : > { %v1808_v33 = vmul.f32 %v6793_v37, %v5114_v5  ;;  %v1836_v58 = vmul.f32 %v6794_v54, %v5131_v3  ;;  %2339 = vst.msk [vmem:[#allocation2 + $0xd8] sm:$0xff] %vm1182_vm4, %v6795_v55  ;;  %v5344_v8 = vld [vmem:[#allocation2 + $0xc8] sm:$0xff]  ;;  %6796 = vst [vmem:[#allocation60_spill] sm:$0xff] %v5346_v9  ;;  %v5368_v56 = vld [vmem:[#allocation2 + $0xe0] sm:$0xff]  ;;  %v1647_v9 = vadd.f32 %v1639_v62, %v1619_v22 }
 0x14d   : > { %v5348_v50 = vld [vmem:[#allocation2 + $0xca] sm:$0xff]  ;;  %2336 = vst.msk [vmem:[#allocation2 + $0xc0] sm:$0xff] %vm1182_vm4, %v6795_v55  ;;  %6800 = vst [vmem:[#allocation51_spill] sm:$0xff] %v5368_v56  ;;  %v1724_v16 = vmul.f32 %v6780_v13, %v5146_v24  ;;  %v1752_v60 = vmul.f32 %v6782_v4, %v5148_v63  ;;  %v1396_v53 = vadd.f32 %v1388_v61, %v1367_v31 }
 0x14e   : > { %6797 = vst [vmem:[#allocation50_spill] sm:$0xff] %v5348_v50  ;;  %2341 = vst.msk [vmem:[#allocation2 + $0xe8] sm:$0x3] %vm1185_vm5, %v6795_v55  ;;  %v1703_v50 = vadd.f32 %v1695_v40, %v1675_v19  ;;  %v1416_v40 = vmul.f32 %v4927_v45, %v5029_v18  ;;  %v1676_v62 = vadd.f32 %v1668_v49, %v1647_v9 }
 0x14f   : > { %2338 = vst.msk [vmem:[#allocation2 + $0xd0] sm:$0x3] %vm1185_vm5, %v6795_v55  ;;  %v1780_v19 = vmul.f32 %v6787_v17, %v5150_v36  ;;  %v1809_v56 = vmul.f32 %v6793_v37, %v5093_v1  ;;  %v1837_v12 = vmul.f32 %v6794_v54, %v6801_v57  ;;  %v1865_v31 = vmul.f32 %v6798_v39, %v5097_v6  ;;  %v6806_v39 = vld [vmem:[#allocation37_spill] sm:$0xff] }
 0x150   : > { %2337 = vst.msk [vmem:[#allocation2 + $0xc8] sm:$0xff] %vm1182_vm4, %v6795_v55  ;;  %2340 = vst.msk [vmem:[#allocation2 + $0xe0] sm:$0xff] %vm1182_vm4, %v6795_v55  ;;  %v1731_v22 = vadd.f32 %v1723_v15, %v1703_v50  ;;  %v1393_v55 = vmul.f32 %v4923_v41, %v5332_v32  ;;  %v1424_v61 = vadd.f32 %v1416_v40, %v1396_v53  ;;  %v6802_v15 = vld [vmem:[#allocation47_spill] sm:$0xff]  ;;  %v6803_v50 = vld [vmem:[#allocation48_spill] sm:$0xff] }
 0x151   : > { %v1704_v18 = vadd.f32 %v1696_v51, %v1676_v62  ;;  %v1893_v49 = vmul.f32 %v6799_v35, %v6802_v15  ;;  %v5400_v9 = vmul.f32 %v5309_v47, %v6803_v50  ;;  %v1421_v0 = vmul.f32 %v4927_v45, %v5334_v25  ;;  %v6804_v41 = vld [vmem:[#allocation59_spill] sm:$0xff] }
 0x152   : > { %v1759_v43 = vadd.f32 %v1751_v7, %v1731_v22  ;;  %v1452_v32 = vadd.f32 %v6804_v41, %v1424_v61  ;;  %v1472_v30 = vmul.f32 %v6805_v21, %v6781_v27  ;;  %v1500_v53 = vmul.f32 %v6806_v39, %v6786_v2 }
 0x153   : > { %v1449_v51 = vmul.f32 %v4935_v48, %v5344_v8  ;;  %v1732_v40 = vadd.f32 %v1724_v16, %v1704_v18  ;;  %v1473_v22 = vmul.f32 %v6805_v21, %v5148_v63  ;;  %v1401_v62 = vadd.f32 %v1393_v55, %v5298_v23 }
 0x154   : > { %v1787_v7 = vadd.f32 %v1779_v42, %v1759_v43  ;;  %v1480_v47 = vadd.f32 %v1472_v30, %v1452_v32  ;;  %v1528_v61 = vmul.f32 %v5051_v38, %v5114_v5  ;;  %v1556_v27 = vmul.f32 %v5061_v44, %v5131_v3 }
 0x155   : > { %v1760_v25 = vadd.f32 %v1752_v60, %v1732_v40  ;;  %v1481_v2 = vadd.f32 %v1473_v22, %v5282_v10  ;;  %v1501_v48 = vmul.f32 %v6806_v39, %v5150_v36  ;;  %v1584_v42 = vmul.f32 %v5043_v34, %v5146_v24 }
 0x156   : > { %v1816_v41 = vadd.f32 %v1808_v33, %v1787_v7  ;;  %v1508_v43 = vadd.f32 %v1500_v53, %v1480_v47  ;;  %v1612_v30 = vmul.f32 %v5065_v46, %v5148_v63  ;;  %v1640_v5 = vmul.f32 %v6774_v59, %v5150_v36  ;;  %v5449_v7 = vld [vmem:[%s4642_s25] ss:$0 sm:$0xff] }
 0x157   : > { %v1788_v32 = vadd.f32 %v1780_v19, %v1760_v25  ;;  %v1509_v3 = vadd.f32 %v1501_v48, %v1481_v2  ;;  %v1529_v33 = vmul.f32 %v5051_v38, %v5093_v1  ;;  %v1429_v10 = vadd.f32 %v1421_v0, %v1401_v62  ;;  %v6807_v2 = vld [vmem:[#allocation61_spill] sm:$0xff]  ;;  %v6808_v48 = vld [vmem:[#allocation52_spill] sm:$0xff] }
 0x158   : > { %v1844_v23 = vadd.f32 %v1836_v58, %v1816_v41  ;;  %v1536_v55 = vadd.f32 %v1528_v61, %v1508_v43  ;;  %v1669_v47 = vmul.f32 %v6775_v11, %v5093_v1  ;;  %v1697_v24 = vmul.f32 %v6778_v14, %v6801_v57 }
 0x159   : > { %v1817_v63 = vadd.f32 %v1809_v56, %v1788_v32  ;;  %v1537_v60 = vadd.f32 %v1529_v33, %v1509_v3  ;;  %v1557_v36 = vmul.f32 %v5061_v44, %v6801_v57  ;;  %v1725_v58 = vmul.f32 %v6780_v13, %v5097_v6  ;;  %v6810_v33 = vld [vmem:[#allocation62_spill] sm:$0xff] }
 0x15a   : > { %v1872_v16 = vadd.f32 %v1864_v20, %v1844_v23  ;;  %v1564_v25 = vadd.f32 %v1556_v27, %v1536_v55  ;;  %v1753_v0 = vmul.f32 %v6782_v4, %v6802_v15  ;;  %v5441_v1 = vmul.f32 %v6787_v17, %v6803_v50 }
 0x15b   : > { %v1845_v20 = vadd.f32 %v1837_v12, %v1817_v63  ;;  %v1565_v56 = vadd.f32 %v1557_v36, %v1537_v60  ;;  %v1585_v18 = vmul.f32 %v5043_v34, %v5097_v6  ;;  %v5446_v53 = vadd.f32 %v1449_v51, %v1429_v10  ;;  %v5461_v6 = vld [vmem:[%s4647_s29] ss:$0 sm:$0xff]  ;;  %v6811_v10 = vld [vmem:[#allocation64_spill] sm:$0xff] }
 0x15c   : > { %v1900_v19 = vadd.f32 %v5360_v52, %v1872_v16  ;;  %v1592_v40 = vadd.f32 %v1584_v42, %v1564_v25  ;;  %v5453_v22 = vmul.f32 %v6793_v37, %v5189_v26  ;;  %v1418_v62 = vmul.f32 %v4927_v45, %v6801_v57  ;;  %v6809_v42 = vld [vmem:[#allocation66_spill] sm:$0xff] }
 0x15d   : > { %v1873_v52 = vadd.f32 %v1865_v31, %v1845_v20  ;;  %v1593_v12 = vadd.f32 %v1585_v18, %v1565_v56  ;;  %v1613_v27 = vmul.f32 %v5065_v46, %v6802_v15  ;;  %v5465_v41 = vmul.f32 %v6794_v54, %v5191_v28 }
 0x15e   : > { %v1928_v61 = vadd.f32 %v5364_v29, %v1900_v19  ;;  %v1620_v51 = vadd.f32 %v1612_v30, %v1592_v40  ;;  %v5469_v43 = vmul.f32 %v6808_v48, %v6807_v2  ;;  %v1426_v57 = vadd.f32 %v1418_v62, %v6809_v42  ;;  %v6812_v19 = vld [vmem:[#allocation63_spill] sm:$0xff] }
 0x15f   : > { %v1901_v31 = vadd.f32 %v1893_v49, %v1873_v52  ;;  %v1621_v23 = vadd.f32 %v1613_v27, %v1593_v12  ;;  %v1641_v32 = vmul.f32 %v6774_v59, %v6803_v50  ;;  %v5477_v30 = vmul.f32 %v6799_v35, %v6810_v33 }
 0x160   : > { %v1943_v29 = vmul.f32 %v5449_v7, %v1928_v61  ;;  %v1648_v3 = vadd.f32 %v1640_v5, %v1620_v51  ;;  %v1454_v55 = vadd.f32 %v6811_v10, %v1426_v57  ;;  %v1474_v16 = vmul.f32 %v6805_v21, %v6802_v15  ;;  %v6813_v5 = vld [vmem:[#allocation42_spill] sm:$0xff] }
 0x161   : > { %v1929_v60 = vadd.f32 %v5400_v9, %v1901_v31  ;;  %v1649_v36 = vadd.f32 %v1641_v32, %v1621_v23  ;;  %v1670_v49 = vmul.f32 %v6775_v11, %v5189_v26  ;;  %v5488_v20 = vmul.f32 %v6813_v5, %v6812_v19  ;;  %v6814_v32 = vld [vmem:[#allocation54_spill] sm:$0xff] }
 0x162   : > { %v1958_v63 = vadd.f32 %v5461_v6, %v1943_v29  ;;  %v1677_v25 = vadd.f32 %v1669_v47, %v1648_v3  ;;  %v1482_v56 = vadd.f32 %v1474_v16, %v1454_v55  ;;  %v1502_v18 = vmul.f32 %v6806_v39, %v6803_v50 }
 0x163   : > { %v1944_v15 = vmul.f32 %v5449_v7, %v1929_v60  ;;  %v1678_v62 = vadd.f32 %v1670_v49, %v1649_v36  ;;  %v1698_v9 = vmul.f32 %v6778_v14, %v5191_v28  ;;  %v1726_v52 = vmul.f32 %v6780_v13, %v6807_v2  ;;  %v6816_v36 = vld [vmem:[#allocation55_spill] sm:$0xff] }
 0x164   : > { %v1966_v40 = vmax.f32 %v1958_v63, 0.0  ;;  %v1705_v61 = vadd.f32 %v1697_v24, %v1677_v25  ;;  %v1510_v47 = vadd.f32 %v1502_v18, %v1482_v56  ;;  %v1530_v12 = vmul.f32 %v5051_v38, %v5189_v26  ;;  %v6815_v63 = vld [vmem:[#allocation41_spill] sm:$0xff]  ;;  %v6817_v25 = vld [vmem:[#allocation56_spill] sm:$0xff] }
 0x165   : > { %v1959_v27 = vadd.f32 %v5461_v6, %v1944_v15  ;;  %v1706_v50 = vadd.f32 %v1698_v9, %v1678_v62  ;;  %v1754_v51 = vmul.f32 %v6782_v4, %v6810_v33  ;;  %v1782_v42 = vmul.f32 %v6787_v17, %v6812_v19  ;;  %v6818_v9 = vld [vmem:[#allocation57_spill] sm:$0xff] }
 0x166   : > { %4423 = vmatprep.mubr.msk.f32.mxu0 %vm1182_vm4, %v1966_v40  ;;  %v1733_v57 = vadd.f32 %v1725_v58, %v1705_v61  ;;  %v1538_v24 = vadd.f32 %v1530_v12, %v1510_v47  ;;  %v1558_v29 = vmul.f32 %v5061_v44, %v5191_v28  ;;  %v1475_v31 = vmul.f32 %v6805_v21, %v6810_v33 }
 0x167   : > { %v1967_v26 = vmax.f32 %v1959_v27, 0.0  ;;  %v1734_v23 = vadd.f32 %v1726_v52, %v1706_v50  ;;  %v1811_v3 = vmul.f32 %v6793_v37, %v6814_v32  ;;  %v1586_v10 = vmul.f32 %v5043_v34, %v6807_v2  ;;  %v6819_v52 = vld [vmem:[#allocation58_spill] sm:$0xff] }
 0x168   : > { %v1761_v55 = vadd.f32 %v1753_v0, %v1733_v57  ;;  %v1566_v16 = vadd.f32 %v1558_v29, %v1538_v24  ;;  %v1483_v60 = vadd.f32 %v1475_v31, %v6815_v63  ;;  %v1503_v58 = vmul.f32 %v6806_v39, %v6812_v19 }
 0x169   : > { %4424 = vmatmul.mubr.msk.f32.vlgmr.msra.gmra.mrb[8].mxu0 %vm1182_vm4, %v1967_v26  ;;  %v1762_v28 = vadd.f32 %v1754_v51, %v1734_v23  ;;  %v1839_v49 = vmul.f32 %v6794_v54, %v6816_v36  ;;  %v1867_v56 = vmul.f32 %v6808_v48, %v6817_v25  ;;  %v1614_v18 = vmul.f32 %v5065_v46, %v6810_v33 }
 0x16a   : > { %v1789_v0 = vadd.f32 %v5441_v1, %v1761_v55  ;;  %v1594_v2 = vadd.f32 %v1586_v10, %v1566_v16  ;;  %v1511_v40 = vadd.f32 %v1503_v58, %v1483_v60  ;;  %v1531_v15 = vmul.f32 %v5051_v38, %v6814_v32  ;;  %v6820_v60 = vld [vmem:[#allocation40_spill] sm:$0xff] }
 0x16b   : > { %v1790_v62 = vadd.f32 %v1782_v42, %v1762_v28  ;;  %v1895_v61 = vmul.f32 %v6799_v35, %v6818_v9  ;;  %v1923_v47 = vmul.f32 %v6813_v5, %v6819_v52  ;;  %v1642_v12 = vmul.f32 %v6774_v59, %v6812_v19  ;;  %v6821_v28 = vld [vmem:[#allocation49_spill] sm:$0xff] }
 0x16c   : > { %v1818_v27 = vadd.f32 %v5453_v22, %v1789_v0  ;;  %v1622_v33 = vadd.f32 %v1614_v18, %v1594_v2  ;;  %v1539_v50 = vadd.f32 %v1531_v15, %v1511_v40  ;;  %v1559_v1 = vmul.f32 %v5061_v44, %v6816_v36 }
 0x16d   : > { %v1819_v51 = vadd.f32 %v1811_v3, %v1790_v62  ;;  %v1671_v42 = vmul.f32 %v6775_v11, %v6814_v32  ;;  %v1699_v57 = vmul.f32 %v6778_v14, %v6816_v36  ;;  %v1727_v24 = vmul.f32 %v6780_v13, %v6817_v25 }
 0x16e   : > { %v1846_v29 = vadd.f32 %v5465_v41, %v1818_v27  ;;  %v1650_v19 = vadd.f32 %v1642_v12, %v1622_v33  ;;  %v1567_v31 = vadd.f32 %v1559_v1, %v1539_v50  ;;  %v1587_v22 = vmul.f32 %v5043_v34, %v6817_v25  ;;  %v6822_v25 = vld [vmem:[#allocation39_spill] sm:$0xff] }
 0x16f   : > { %v1847_v26 = vadd.f32 %v1839_v49, %v1819_v51  ;;  %v1755_v23 = vmul.f32 %v6782_v4, %v6818_v9  ;;  %v1783_v32 = vmul.f32 %v6787_v17, %v6819_v52  ;;  %v1420_v3 = vmul.f32 %v4927_v45, %v6816_v36 }
 0x170   : > { %v1874_v10 = vadd.f32 %v5469_v43, %v1846_v29  ;;  %v1679_v55 = vadd.f32 %v1671_v42, %v1650_v19  ;;  %v1595_v16 = vadd.f32 %v1587_v22, %v1567_v31  ;;  %v1615_v41 = vmul.f32 %v5065_v46, %v6818_v9 }
 0x171   : > { %v1875_v63 = vadd.f32 %v1867_v56, %v1847_v26  ;;  %v1812_v58 = vmul.f32 %v6793_v37, %v6820_v60  ;;  %v1840_v49 = vmul.f32 %v6794_v54, %v6821_v28  ;;  %v1428_v18 = vadd.f32 %v1420_v3, %v6822_v25  ;;  %v6823_v56 = vld [vmem:[#allocation65_spill] sm:$0xff] }
 0x172   : > { %v1902_v0 = vadd.f32 %v5477_v30, %v1874_v10  ;;  %v1707_v2 = vadd.f32 %v1699_v57, %v1679_v55  ;;  %v1623_v45 = vadd.f32 %v1615_v41, %v1595_v16  ;;  %v1643_v43 = vmul.f32 %v6774_v59, %v6819_v52  ;;  %v6825_v16 = vld [vmem:[#allocation50_spill] sm:$0xff] }
 0x173   : > { %v1903_v36 = vadd.f32 %v1895_v61, %v1875_v63  ;;  %v1672_v40 = vmul.f32 %v6775_v11, %v6820_v60  ;;  %v1456_v15 = vadd.f32 %v6823_v56, %v1428_v18  ;;  %v1476_v62 = vmul.f32 %v6805_v21, %v6818_v9  ;;  %v6824_v9 = vld [vmem:[#allocation60_spill] sm:$0xff]  ;;  %v6827_v56 = vld [vmem:[#allocation38_spill] sm:$0xff] }
 0x174   : > { %v1930_v12 = vadd.f32 %v5488_v20, %v1902_v0  ;;  %v1735_v27 = vadd.f32 %v1727_v24, %v1707_v2  ;;  %v1651_v33 = vadd.f32 %v1643_v43, %v1623_v45  ;;  %v1700_v30 = vmul.f32 %v6778_v14, %v6821_v28  ;;  %v6826_v2 = vld [vmem:[#allocation44_spill] sm:$0xff] }
 0x175   : > { %v1931_v50 = vadd.f32 %v1923_v47, %v1903_v36  ;;  %v1728_v1 = vmul.f32 %v6780_v13, %v5344_v8  ;;  %v1484_v61 = vadd.f32 %v1476_v62, %v1456_v15  ;;  %v1504_v51 = vmul.f32 %v6806_v39, %v6819_v52 }
 0x176   : > { %v1945_v42 = vmul.f32 %v5449_v7, %v1930_v12  ;;  %v1763_v57 = vadd.f32 %v1755_v23, %v1735_v27  ;;  %v1680_v29 = vadd.f32 %v1672_v40, %v1651_v33  ;;  %v1756_v20 = vmul.f32 %v6782_v4, %v6824_v9 }
 0x177   : > { %v1946_v24 = vmul.f32 %v5449_v7, %v1931_v50  ;;  %v1512_v19 = vadd.f32 %v1504_v51, %v1484_v61  ;;  %v1532_v47 = vmul.f32 %v5051_v38, %v6820_v60  ;;  %v1477_v31 = vmul.f32 %v6805_v21, %v6824_v9 }
 0x178   : > { %v1960_v22 = vadd.f32 %v5461_v6, %v1945_v42  ;;  %v1791_v26 = vadd.f32 %v1783_v32, %v1763_v57  ;;  %v1708_v52 = vadd.f32 %v1700_v30, %v1680_v29  ;;  %v1560_v23 = vmul.f32 %v5061_v44, %v6821_v28  ;;  %v6828_v30 = vld [vmem:[#allocation51_spill] sm:$0xff] }
 0x179   : > { %v1961_v3 = vadd.f32 %v5461_v6, %v1946_v24  ;;  %v1540_v10 = vadd.f32 %v1532_v47, %v1512_v19  ;;  %v1485_v55 = vadd.f32 %v1477_v31, %v5446_v53  ;;  %v1505_v41 = vmul.f32 %v6806_v39, %v6825_v16  ;;  %v6830_v47 = vld [vmem:[#allocation26_spill] sm:$0xff] }
 0x17a   : > { %v1968_v63 = vmax.f32 %v1960_v22, 0.0  ;;  %v1820_v60 = vadd.f32 %v1812_v58, %v1791_v26  ;;  %v1736_v25 = vadd.f32 %v1728_v1, %v1708_v52  ;;  %v1588_v21 = vmul.f32 %v5043_v34, %v5344_v8 }
 0x17b   : > { %v1969_v18 = vmax.f32 %v1961_v3, 0.0  ;;  %v1568_v32 = vadd.f32 %v1560_v23, %v1540_v10  ;;  %v1513_v0 = vadd.f32 %v1505_v41, %v1485_v55  ;;  %v1533_v28 = vmul.f32 %v5051_v38, %v6826_v2  ;;  %v6831_v23 = vld [vmem:[#allocation46_spill] sm:$0xff] }
 0x17c   : > { %4426 = vmatprep.mubr.msk.f32.mxu1 %vm1182_vm4, %v1968_v63  ;;  %v1848_v45 = vadd.f32 %v1840_v49, %v1820_v60  ;;  %v1868_v53 = vmul.f32 %v6808_v48, %v5344_v8  ;;  %v1764_v43 = vadd.f32 %v1756_v20, %v1736_v25  ;;  %v1784_v39 = vmul.f32 %v6787_v17, %v6825_v16 }
 0x17d   : > { %4427 = vmatmul.mubr.msk.f32.vlgmr.msra.gmra.mrb[0].mxu1 %vm1182_vm4, %v1969_v18  ;;  %v1596_v58 = vadd.f32 %v1588_v21, %v1568_v32  ;;  %v1616_v36 = vmul.f32 %v5065_v46, %v6824_v9  ;;  %v1541_v40 = vadd.f32 %v1533_v28, %v1513_v0  ;;  %v1561_v38 = vmul.f32 %v5061_v44, %v6827_v56 }
 0x17e   : > { %v1876_v15 = vadd.f32 %v1868_v53, %v1848_v45  ;;  %v1896_v49 = vmul.f32 %v6799_v35, %v6824_v9  ;;  %v1792_v62 = vadd.f32 %v1784_v39, %v1764_v43  ;;  %v1813_v8 = vmul.f32 %v6793_v37, %v6826_v2  ;;  %v6829_v9 = vld [vmem:[#allocation45_spill] sm:$0xff] }
 0x17f   : > { %v1624_v12 = vadd.f32 %v1616_v36, %v1596_v58  ;;  %v1644_v27 = vmul.f32 %v6774_v59, %v6825_v16  ;;  %v1569_v33 = vadd.f32 %v1561_v38, %v1541_v40  ;;  %v1589_v50 = vmul.f32 %v6828_v30, %v5043_v34  ;;  %v6834_v36 = vld [vmem:[#allocation29_spill] sm:$0xff] }
 0x180   : > { %v1904_v1 = vadd.f32 %v1896_v49, %v1876_v15  ;;  %v1924_v44 = vmul.f32 %v6813_v5, %v6825_v16  ;;  %v1821_v61 = vadd.f32 %v1813_v8, %v1792_v62  ;;  %v1841_v51 = vmul.f32 %v6794_v54, %v6827_v56  ;;  %v6835_v49 = vld [vmem:[#allocation30_spill] sm:$0xff] }
 0x181   : > { %v1652_v42 = vadd.f32 %v1644_v27, %v1624_v12  ;;  %v1673_v57 = vmul.f32 %v6775_v11, %v6826_v2  ;;  %v1597_v29 = vadd.f32 %v1589_v50, %v1569_v33  ;;  %v1617_v20 = vmul.f32 %v5065_v46, %v6829_v9  ;;  %v6833_v2 = vld [vmem:[#allocation28_spill] sm:$0xff] }
 0x182   : > { %v1932_v24 = vadd.f32 %v1924_v44, %v1904_v1  ;;  %v1849_v19 = vadd.f32 %v1841_v51, %v1821_v61  ;;  %v1869_v34 = vmul.f32 %v6808_v48, %v6828_v30  ;;  %v1674_v31 = vmul.f32 %v6830_v47, %v6775_v11  ;;  %v6832_v11 = vld [vmem:[#allocation27_spill] sm:$0xff]  ;;  %v6837_v51 = vld [vmem:[#allocation32_spill] sm:$0xff] }
 0x183   : > { %v1681_v22 = vadd.f32 %v1673_v57, %v1652_v42  ;;  %v1701_v26 = vmul.f32 %v6778_v14, %v6827_v56  ;;  %v1625_v52 = vadd.f32 %v1617_v20, %v1597_v29  ;;  %v1645_v3 = vmul.f32 %v6774_v59, %v6831_v23 }
 0x184   : > { %v1947_v10 = vmul.f32 %v5449_v7, %v1932_v24  ;;  %v1877_v55 = vadd.f32 %v1869_v34, %v1849_v19  ;;  %v1897_v46 = vmul.f32 %v6799_v35, %v6829_v9  ;;  %v1729_v41 = vmul.f32 %v6828_v30, %v6780_v13  ;;  %v6839_v19 = vld [vmem:[#allocation34_spill] sm:$0xff] }
 0x185   : > { %v1709_v16 = vadd.f32 %v1701_v26, %v1681_v22  ;;  %v1653_v63 = vadd.f32 %v1645_v3, %v1625_v52  ;;  %v1702_v60 = vmul.f32 %v6832_v11, %v6778_v14  ;;  %v1925_v59 = vmul.f32 %v6813_v5, %v6831_v23 }
 0x186   : > { %v1962_v25 = vadd.f32 %v5461_v6, %v1947_v10  ;;  %v1905_v21 = vadd.f32 %v1897_v46, %v1877_v55  ;;  %v1757_v32 = vmul.f32 %v6782_v4, %v6829_v9  ;;  %v1730_v28 = vmul.f32 %v6833_v2, %v6780_v13  ;;  %v6838_v9 = vld [vmem:[#allocation33_spill] sm:$0xff]  ;;  %v2142_v46 = vld [vmem:[%s4667_s19] sm:$0xff] }
 0x187   : > { %v1737_v18 = vadd.f32 %v1729_v41, %v1709_v16  ;;  %v1682_v0 = vadd.f32 %v1674_v31, %v1653_v63  ;;  %v1814_v43 = vmul.f32 %v6793_v37, %v6830_v47  ;;  %v1785_v39 = vmul.f32 %v6787_v17, %v6831_v23  ;;  %v4276_v41 = vld [vmem:[%s4657_s8] ss:$0 sm:$0xff] }
 0x188   : > { %v1970_v45 = vmax.f32 %v1962_v25, 0.0  ;;  %v1933_v53 = vadd.f32 %v1925_v59, %v1905_v21  ;;  %v1758_v40 = vmul.f32 %v6834_v36, %v6782_v4  ;;  %v1842_v13 = vmul.f32 %v6794_v54, %v6832_v11  ;;  %v6836_v4 = vld [vmem:[#allocation31_spill] sm:$0xff]  ;;  %v4277_v11 = vld [vmem:[%s4662_s14] ss:$0 sm:$0xff] }
 0x189   : > { %v1765_v14 = vadd.f32 %v1757_v32, %v1737_v18  ;;  %v1710_v58 = vadd.f32 %v1702_v60, %v1682_v0  ;;  %v1786_v62 = vmul.f32 %v6835_v49, %v6787_v17  ;;  %v1870_v27 = vmul.f32 %v6808_v48, %v6833_v2 }
 0x18a   : > { %4429 = vmatprep.mubr.msk.f32.mxu1 %vm1182_vm4, %v1970_v45  ;;  %v1948_v56 = vmul.f32 %v5449_v7, %v1933_v53  ;;  %v1815_v30 = vmul.f32 %v6793_v37, %v6836_v4  ;;  %v1898_v44 = vmul.f32 %v6799_v35, %v6834_v36  ;;  %v1843_v42 = vmul.f32 %v6794_v54, %v6837_v51  ;;  %v6840_v54 = vld [vmem:[#allocation35_spill] sm:$0xff] }
 0x18b   : > { %v1793_v38 = vadd.f32 %v1785_v39, %v1765_v14  ;;  %v1738_v15 = vadd.f32 %v1730_v28, %v1710_v58  ;;  %v1926_v57 = vmul.f32 %v6813_v5, %v6835_v49  ;;  %v1871_v20 = vmul.f32 %v6808_v48, %v6838_v9  ;;  %v6843_v9 = vld [vmem:[#allocation20_spill] sm:$0xff] }
 0x18c   : > { %v1963_v8 = vadd.f32 %v5461_v6, %v1948_v56  ;;  %v1899_v34 = vmul.f32 %v6799_v35, %v6839_v19  ;;  %v1927_v22 = vmul.f32 %v6813_v5, %v6840_v54  ;;  %v2143_v5 = vld [vmem:[%s4667_s19 + $0x8] sm:$0xff] }
 0x18d   : > { %v1822_v12 = vadd.f32 %v1814_v43, %v1793_v38  ;;  %v1766_v33 = vadd.f32 %v1758_v40, %v1738_v15  ;;  %v4515_v16 = vpack.c.bf16 %v2143_v5, %v2142_v46  ;;  %v2444_v54 = vld [vmem:[#allocation2 + $0x9] sm:$0xff]  ;;  %v2500_v46 = vld [vmem:[#allocation2 + $0x1e] sm:$0xff] }
 0x18e   : > { %v1971_v50 = vmax.f32 %v1963_v8, 0.0 }
 0x18f   : > { %v1850_v1 = vadd.f32 %v1842_v13, %v1822_v12  ;;  %v1794_v61 = vadd.f32 %v1786_v62, %v1766_v33  ;;  %4516 = vmatprep.subr.bf16.mxu1 %v4515_v16 }
 0x190   : > { %4430 = vmatmul.mubr.msk.f32.gmra.mrb[2].mxu1 %vm1182_vm4, %v1971_v50  ;;  %v2356_v50 = vld [vmem:[%s4682_s6] sm:$0xff] }
 0x191   : > { %v1878_v17 = vadd.f32 %v1870_v27, %v1850_v1  ;;  %v1823_v29 = vadd.f32 %v1815_v30, %v1794_v61  ;;  %4518 = vmatpush3.bf16.msra.mxu1 %v4515_v16  ;;  %v6841_v1 = vld [vmem:[#allocation18_spill] sm:$0xff]  ;;  %v6842_v61 = vld [vmem:[#allocation19_spill] sm:$0xff] }
 0x192   : > { %v5693_v51 = vrot.slane %v2356_v50, %v6842_v61 }
 0x193   : > { %v1906_v37 = vadd.f32 %v1898_v44, %v1878_v17  ;;  %v1851_v24 = vadd.f32 %v1843_v42, %v1823_v29  ;;  %v5690_v44 = vrot.slane %v2356_v50, %v6841_v1  ;;  %v2360_v42 = vld [vmem:[#allocation2 + $0x6] sm:$0xff] }
 0x194   : > { %v2388_v17 = vld [vmem:[#allocation2 + $0x7] sm:$0xff] }
 0x195   : > { %v1934_v47 = vadd.f32 %v1926_v57, %v1906_v37  ;;  %v1879_v31 = vadd.f32 %v1871_v20, %v1851_v24  ;;  %v2372_v57 = vmul.f32 %v5690_v44, %v2360_v42  ;;  %v2400_v29 = vmul.f32 %v5693_v51, %v2388_v17  ;;  %v2416_v24 = vld [vmem:[#allocation2 + $0x8] sm:$0xff] }
 0x196   : > { %v5698_v20 = vrot.slane %v2356_v50, %v6843_v9  ;;  %v6844_v37 = vmov 0.0  }
 0x197   : > { %v1949_v26 = vmul.f32 %v5449_v7, %v1934_v47  ;;  %v1907_v52 = vadd.f32 %v1899_v34, %v1879_v31  ;;  %3435 = vst.msk [vmem:[#allocation2] sm:$0xff] %vm1182_vm4, %v6844_v37  ;;  %v2408_v19 = vadd.f32 %v2400_v29, %v2372_v57  ;;  %v6845_v47 = vld [vmem:[#allocation21_spill] sm:$0xff] }
 0x198   : > { %v2428_v34 = vmul.f32 %v5698_v20, %v2416_v24  ;;  %v5704_v31 = vrot.slane %v2356_v50, %v6845_v47  ;;  %v5776_v24 = vld [vmem:[#allocation2 + $0x10e] sm:$0xff] }
 0x199   : > { %v1964_v23 = vadd.f32 %v5461_v6, %v1949_v26  ;;  %v1935_v48 = vadd.f32 %v1927_v22, %v1907_v52  ;;  %v6846_v52 = vld [vmem:[#allocation22_spill] sm:$0xff]  ;;  %6856 = vst [vmem:[#allocation36_spill] sm:$0xff] %v5776_v24 }
 0x19a   : > { %v2436_v22 = vadd.f32 %v2428_v34, %v2408_v19  ;;  %v2456_v26 = vmul.f32 %v5704_v31, %v2444_v54  ;;  %v5778_v19 = vld [vmem:[#allocation2 + $0x10f] sm:$0xff] }
 0x19b   : > { %v1972_v3 = vmax.f32 %v1964_v23, 0.0  ;;  %v1950_v10 = vmul.f32 %v5449_v7, %v1935_v48  ;;  %v5708_v23 = vrot.slane %v2356_v50, %v6846_v52  ;;  %v2472_v48 = vld [vmem:[#allocation2 + $0xa] sm:$0xff]  ;;  %6857 = vst [vmem:[#allocation37_spill] sm:$0xff] %v5778_v19  ;;  %3468 = vst.msk [vmem:[#allocation2 + $0x108] sm:$0xff] %vm1182_vm4, %v6844_v37 }
 0x19c   : > { %3436 = vst.msk [vmem:[#allocation2 + $0x8] sm:$0xff] %vm1182_vm4, %v6844_v37 }
 0x19d   : > { %4432 = vmatprep.mubr.msk.f32.mxu1 %vm1182_vm4, %v1972_v3  ;;  %v1965_v35 = vadd.f32 %v5461_v6, %v1950_v10  ;;  %v2464_v3 = vadd.f32 %v2456_v26, %v2436_v22  ;;  %v2484_v10 = vmul.f32 %v5708_v23, %v2472_v48  ;;  %3437 = vst.msk [vmem:[#allocation2 + $0x10] sm:$0x3] %vm1185_vm5, %v6844_v37  ;;  %v5786_v48 = vld [vmem:[#allocation2 + $0x110] sm:$0xff] }
 0x19e   : > { %6858 = vst [vmem:[#allocation61_spill] sm:$0xff] %v5786_v48 }
 0x19f   : > { %v1973_v55 = vmax.f32 %v1965_v35, 0.0  ;;  %v6847_v35 = vld [vmem:[#allocation23_spill] sm:$0xff]  ;;  %v2492_v5 = vadd.f32 %v2484_v10, %v2464_v3  ;;  %v5788_v3 = vld [vmem:[#allocation2 + $0x111] sm:$0xff] }
 0x1a0   : > { %6859 = vst [vmem:[#allocation52_spill] sm:$0xff] %v5788_v3  ;;  %v5790_v10 = vld [vmem:[#allocation2 + $0x112] sm:$0xff] }
 0x1a1   : > { %4433 = vmatmul.mubr.msk.f32.gmra.mrb[4].mxu1 %vm1182_vm4, %v1973_v55  ;;  %v5712_v55 = vrot.slane %v2356_v50, %v6847_v35  ;;  %6860 = vst [vmem:[#allocation66_spill] sm:$0xff] %v5790_v10  ;;  %3469 = vst.msk [vmem:[#allocation2 + $0x110] sm:$0xff] %vm1182_vm4, %v6844_v37 }
 0x1a2   : > { %3470 = vst.msk [vmem:[#allocation2 + $0x118] sm:$0x3] %vm1185_vm5, %v6844_v37 }
 0x1a3   : > { %v2512_v16 = vmul.f32 %v5712_v55, %v2500_v46 }
 0x23c   : > { %v4425_v63 = vpop.f32.mrb[8].mxu0 }
 0x23d   : > { %v2112_v60 = vmul.f32 %v4425_v63, %v4276_v41  ;;  %v2065_v25 = vpop.f32.mrb[9].mxu0 }
 0x23e   : > { %v2111_v21 = vmul.f32 %v4276_v41, %v2065_v25 }
 0x23f   : > { %v2127_v59 = vadd.f32 %v4277_v11, %v2112_v60  ;;  %v2520_v60 = vadd.f32 %v2512_v16, %v2492_v5 }
 0x240   : > { %v2126_v7 = vadd.f32 %v4277_v11, %v2111_v21  ;;  %v6849_v21 = vld [vmem:[#allocation25_spill] sm:$0xff] }
 0x241   : > { %v2135_v32 = vmax.f32 %v2127_v59, 0.0  ;;  %v5724_v59 = vrot.slane %v2356_v50, %v6849_v21 }
 0x242   : > { %v2134_v18 = vmax.f32 %v2126_v7, 0.0  ;;  %v2556_v7 = vld [vmem:[#allocation2 + $0x20] sm:$0xff] }
 0x244   : > { %4439 = vmatprep.mubr.msk.f32.mxu1 %vm2144_vm6, %v2134_v18 }
 0x245   : > { %4440 = vmatmul.mubr.msk.f32.vlgmr.msra.gmra.mrb[6].mxu1 %vm2144_vm6, %v2135_v32  ;;  %v2568_v32 = vmul.f32 %v5724_v59, %v2556_v7 }
 0x250   : > { %v4428_v6 = vpop.f32.mrb[0].mxu1 }
 0x251   : > { %v2114_v0 = vmul.f32 %v4428_v6, %v4276_v41  ;;  %v2075_v2 = vpop.f32.mrb[1].mxu1 }
 0x252   : > { %v2113_v28 = vmul.f32 %v4276_v41, %v2075_v2  ;;  %v2612_v2 = vld [vmem:[#allocation2 + $0x22] sm:$0xff] }
 0x253   : > { %v2129_v45 = vadd.f32 %v4277_v11, %v2114_v0  ;;  %v2584_v0 = vld [vmem:[#allocation2 + $0x21] sm:$0xff]  ;;  %v2485_v26 = vmul.f32 %v2612_v2, %v5708_v23 }
 0x254   : > { %v2128_v53 = vadd.f32 %v4277_v11, %v2113_v28  ;;  %3440 = vst.msk [vmem:[#allocation2 + $0x28] sm:$0x3] %vm1185_vm5, %v6844_v37  ;;  %v3098_v28 = vld [vmem:[%s4697_s27] sm:$0xff]  ;;  %v2457_v29 = vmul.f32 %v2584_v0, %v5704_v31 }
 0x255   : > { %v2137_v14 = vmax.f32 %v2129_v45, 0.0  ;;  %4451 = vmatprep.subr.mxu0 %v3098_v28  ;;  %v5734_v45 = vld [vmem:[#allocation2 + $0xf6] sm:$0xff] }
 0x256   : > { %v2136_v43 = vmax.f32 %v2128_v53, 0.0  ;;  %4452 = vmatpush3.msra.mxu0 %v3098_v28  ;;  %6851 = vst [vmem:[#allocation53_spill] sm:$0xff] %v5734_v45  ;;  %v5736_v53 = vld [vmem:[#allocation2 + $0xf7] sm:$0xff] }
 0x257   : > { %6852 = vst [vmem:[#allocation43_spill] sm:$0xff] %v5736_v53  ;;  %3465 = vst.msk [vmem:[#allocation2 + $0xf0] sm:$0xff] %vm1182_vm4, %v6844_v37 }
 0x258   : > { %4442 = vmatprep.mubr.msk.f32.mxu1 %vm2144_vm6, %v2136_v43  ;;  %v5740_v43 = vld [vmem:[#allocation2 + $0xf8] sm:$0xff] }
 0x259   : > { %4443 = vmatmul.mubr.msk.f32.gmra.mrb[8].mxu1 %vm2144_vm6, %v2137_v14  ;;  %6853 = vst [vmem:[#allocation47_spill] sm:$0xff] %v5740_v43  ;;  %v5742_v14 = vld [vmem:[#allocation2 + $0xf9] sm:$0xff] }
 0x25a   : > { %6854 = vst [vmem:[#allocation48_spill] sm:$0xff] %v5742_v14 }
 0x263   : > { %v4431_v39 = vpop.f32.mrb[2].mxu1 }
 0x264   : > { %v2116_v58 = vmul.f32 %v4431_v39, %v4276_v41  ;;  %v2085_v36 = vpop.f32.mrb[3].mxu1  ;;  %v5744_v39 = vld [vmem:[#allocation2 + $0xfa] sm:$0xff] }
 0x265   : > { %v2115_v40 = vmul.f32 %v4276_v41, %v2085_v36  ;;  %6855 = vst [vmem:[#allocation59_spill] sm:$0xff] %v5744_v39  ;;  %3466 = vst.msk [vmem:[#allocation2 + $0xf8] sm:$0xff] %vm1182_vm4, %v6844_v37  ;;  %v5754_v36 = vld [vmem:[%s4682_s6 + $0x8] sm:$0xff] }
 0x266   : > { %v2131_v56 = vadd.f32 %v4277_v11, %v2116_v58  ;;  %3467 = vst.msk [vmem:[#allocation2 + $0x100] sm:$0x3] %vm1185_vm5, %v6844_v37  ;;  %v5751_v58 = vld [vmem:[%s4672_s24] ss:$0 sm:$0xff]  ;;  %v5773_v17 = vrot.slane %v5754_v36, %v6842_v61  ;;  %v5802_v16 = vrot.slane %v5754_v36, %v6845_v47 }
 0x267   : > { %v2130_v38 = vadd.f32 %v4277_v11, %v2115_v40  ;;  %v2373_v40 = vmul.f32 %v2500_v46, %v5690_v44  ;;  %v5794_v46 = vrot.slane %v5754_v36, %v6843_v9 }
 0x268   : > { %v2139_v15 = vmax.f32 %v2131_v56, 0.0  ;;  %v2624_v54 = vmul.f32 %v5773_v17, %v2612_v2  ;;  %6861 = vst [vmem:[#allocation62_spill] sm:$0xff] %v5802_v16  ;;  %v5816_v2 = vrot.slane %v5754_v36, %v6846_v52 }
 0x269   : > { %v2138_v13 = vmax.f32 %v2130_v38, 0.0 }
 0x26b   : > { %4445 = vmatprep.mubr.msk.f32.mxu1 %vm2144_vm6, %v2138_v13  ;;  %v5759_v13 = vld [vmem:[%s6850_s7] ss:$0 sm:$0xff]  ;;  %s6900_s7 = sld [smem:[#allocation12_spill]] }
 0x26c   : > { %4446 = vmatmul.mubr.msk.f32.gmra.mrb[10].mxu1 %vm2144_vm6, %v2139_v15 }
 0x274   : > { %v4434_v49 = vpop.f32.mrb[4].mxu1 }
 0x275   : > { %v2118_v62 = vmul.f32 %v4434_v49, %v4276_v41  ;;  %v2095_v8 = vpop.f32.mrb[5].mxu1 }
 0x276   : > { %v2117_v12 = vmul.f32 %v4276_v41, %v2095_v8  ;;  %v6848_v41 = vld [vmem:[#allocation24_spill] sm:$0xff] }
 0x277   : > { %v2133_v27 = vadd.f32 %v4277_v11, %v2118_v62  ;;  %v5720_v63 = vrot.slane %v2356_v50, %v6848_v41  ;;  %v5764_v62 = vrot.slane %v5754_v36, %v6841_v1 }
 0x278   : > { %v2132_v33 = vadd.f32 %v4277_v11, %v2117_v12  ;;  %v2528_v11 = vld [vmem:[#allocation2 + $0x1f] sm:$0xff] }
 0x279   : > { %v2141_v30 = vmax.f32 %v2133_v27, 0.0  ;;  %v2540_v25 = vmul.f32 %v5720_v63, %v2528_v11  ;;  %3438 = vst.msk [vmem:[#allocation2 + $0x18] sm:$0xff] %vm1182_vm4, %v6844_v37  ;;  %3439 = vst.msk [vmem:[#allocation2 + $0x20] sm:$0xff] %vm1182_vm4, %v6844_v37  ;;  %v2401_v56 = vmul.f32 %v2528_v11, %v5693_v51  ;;  %v2429_v27 = vmul.f32 %v2556_v7, %v5698_v20  ;;  %v5809_v7 = vld [vmem:[%s4682_s6 + $0x10] sm:$0xff] }
 0x27a   : > { %v2140_v4 = vmax.f32 %v2132_v33, 0.0  ;;  %v2596_v50 = vmul.f32 %v5764_v62, %v2584_v0 }
 0x27b   : > { %v2548_v18 = vadd.f32 %v2540_v25, %v2520_v60  ;;  %v2409_v12 = vadd.f32 %v2401_v56, %v2373_v40 }
 0x27c   : > { %4448 = vmatprep.mubr.msk.f32.mxu1 %vm2144_vm6, %v2140_v4 }
 0x27d   : > { %4449 = vmatmul.mubr.msk.f32.gmra.mrb[12].mxu1 %vm2144_vm6, %v2141_v30  ;;  %v2576_v6 = vadd.f32 %v2568_v32, %v2548_v18  ;;  %v2437_v57 = vadd.f32 %v2429_v27, %v2409_v12 }
 0x27f   : > { %v2604_v34 = vadd.f32 %v2596_v50, %v2576_v6  ;;  %v2465_v22 = vadd.f32 %v2457_v29, %v2437_v57  ;;  %v5847_v50 = vrot.slane %v5754_v36, %v6849_v21  ;;  %v5855_v57 = vrot.slane %v5809_v7, %v6842_v61 }
 0x280   : > { %v5859_v29 = vrot.slane %v5809_v7, %v6843_v9 }
 0x281   : > { %v2632_v5 = vadd.f32 %v2624_v54, %v2604_v34  ;;  %v2493_v25 = vadd.f32 %v2485_v26, %v2465_v22 }
 0x318   : > { %v4441_v38 = vpop.f32.mrb[6].mxu1 }
 0x319   : > { %v2282_v15 = vmul.f32 %v4441_v38, %v5751_v58  ;;  %v2235_v49 = vpop.f32.mrb[7].mxu1  ;;  %v5823_v38 = vrot.slane %v5754_v36, %v6847_v35 }
 0x31a   : > { %v2281_v8 = vmul.f32 %v5751_v58, %v2235_v49 }
 0x31b   : > { %v2297_v33 = vadd.f32 %v5759_v13, %v2282_v15  ;;  %v5827_v15 = vrot.slane %v5754_v36, %v6848_v41 }
 0x31c   : > { %v2296_v4 = vadd.f32 %v5759_v13, %v2281_v8 }
 0x31d   : > { %v2305_v30 = vmax.f32 %v2297_v33, 0.0 }
 0x31e   : > { %v2304_v42 = vmax.f32 %v2296_v4, 0.0 }
 0x31f   : > { %2349 = vst.msk [vmem:[#allocation2 + $0x50] sm:$0xff] %vm1182_vm4, %v2305_v30 }
 0x320   : > { %2348 = vst.msk [vmem:[#allocation2 + $0x38] sm:$0xff] %vm1182_vm4, %v2304_v42  ;;  %v5851_v42 = vrot.slane %v5809_v7, %v6841_v1 }
 0x326   : > { %v5804_v11 = vld [vmem:[#allocation2 + $0x4e] sm:$0xff] }
 0x327   : > { %v5806_v60 = vld [vmem:[#allocation2 + $0x4f] sm:$0xff]  ;;  %v2668_v32 = vld [vmem:[#allocation2 + $0x37] sm:$0xff] }
 0x328   : > { %v2640_v18 = vld [vmem:[#allocation2 + $0x36] sm:$0xff]  ;;  %3444 = vst.msk [vmem:[#allocation2 + $0x48] sm:$0xff] %vm1182_vm4, %v6844_v37  ;;  %v2680_v33 = vmul.f32 %v5802_v16, %v2668_v32  ;;  %v2541_v30 = vmul.f32 %v2668_v32, %v5720_v63  ;;  %v2402_v61 = vmul.f32 %v2668_v32, %v5693_v51 }
 0x329   : > { %v2652_v6 = vmul.f32 %v5794_v46, %v2640_v18  ;;  %v2696_v0 = vld [vmem:[#allocation2 + $0x38] sm:$0xff]  ;;  %v2513_v56 = vmul.f32 %v2640_v18, %v5712_v55  ;;  %3441 = vst.msk [vmem:[#allocation2 + $0x30] sm:$0xff] %vm1182_vm4, %v6844_v37  ;;  %v5829_v49 = vld [vmem:[#allocation2 + $0x50] sm:$0xff] }
 0x32a   : > { %v2724_v28 = vld [vmem:[#allocation2 + $0x39] sm:$0xff]  ;;  %v5831_v8 = vld [vmem:[#allocation2 + $0x51] sm:$0xff]  ;;  %v2708_v22 = vmul.f32 %v5816_v2, %v2696_v0  ;;  %v2569_v36 = vmul.f32 %v2696_v0, %v5724_v59 }
 0x32b   : > { %v2752_v40 = vld [vmem:[#allocation2 + $0x3a] sm:$0xff]  ;;  %v5833_v12 = vld [vmem:[#allocation2 + $0x52] sm:$0xff]  ;;  %v2660_v27 = vadd.f32 %v2652_v6, %v2632_v5  ;;  %v2521_v4 = vadd.f32 %v2513_v56, %v2493_v25  ;;  %v2736_v6 = vmul.f32 %v5823_v38, %v2724_v28  ;;  %v2374_v56 = vmul.f32 %v2640_v18, %v5690_v44 }
 0x32c   : > { %3442 = vst.msk [vmem:[#allocation2 + $0x38] sm:$0xff] %vm1182_vm4, %v6844_v37  ;;  %3445 = vst.msk [vmem:[#allocation2 + $0x50] sm:$0xff] %vm1182_vm4, %v6844_v37  ;;  %v4444_v34 = vpop.f32.mrb[8].mxu1  ;;  %v2625_v18 = vmul.f32 %v2752_v40, %v5773_v17 }
 0x32d   : > { %3443 = vst.msk [vmem:[#allocation2 + $0x40] sm:$0x3] %vm1185_vm5, %v6844_v37  ;;  %3446 = vst.msk [vmem:[#allocation2 + $0x58] sm:$0x3] %vm1185_vm5, %v6844_v37  ;;  %v2688_v54 = vadd.f32 %v2680_v33, %v2660_v27  ;;  %v2549_v26 = vadd.f32 %v2541_v30, %v2521_v4  ;;  %v2284_v5 = vmul.f32 %v4444_v34, %v5751_v58  ;;  %v2245_v25 = vpop.f32.mrb[9].mxu1 }
 0x32e   : > { %v2283_v1 = vmul.f32 %v5751_v58, %v2245_v25  ;;  %v2597_v27 = vmul.f32 %v2724_v28, %v5764_v62  ;;  %v2764_v4 = vmul.f32 %v5827_v15, %v2752_v40  ;;  %v2410_v30 = vadd.f32 %v2402_v61, %v2374_v56 }
 0x32f   : > { %v2716_v9 = vadd.f32 %v2708_v22, %v2688_v54  ;;  %v2577_v10 = vadd.f32 %v2569_v36, %v2549_v26  ;;  %v2299_v33 = vadd.f32 %v5759_v13, %v2284_v5  ;;  %v2430_v34 = vmul.f32 %v2696_v0, %v5698_v20 }
 0x330   : > { %v2298_v3 = vadd.f32 %v5759_v13, %v2283_v1  ;;  %v2792_v54 = vmul.f32 %v5847_v50, %v5804_v11  ;;  %v2458_v26 = vmul.f32 %v2724_v28, %v5704_v31  ;;  %v2653_v61 = vmul.f32 %v5804_v11, %v5794_v46 }
 0x331   : > { %v2744_v48 = vadd.f32 %v2736_v6, %v2716_v9  ;;  %v2605_v19 = vadd.f32 %v2597_v27, %v2577_v10  ;;  %v2307_v32 = vmax.f32 %v2299_v33, 0.0  ;;  %v2438_v22 = vadd.f32 %v2430_v34, %v2410_v30 }
 0x332   : > { %v2306_v36 = vmax.f32 %v2298_v3, 0.0  ;;  %v2486_v9 = vmul.f32 %v2752_v40, %v5708_v23  ;;  %v2375_v10 = vmul.f32 %v5804_v11, %v5690_v44  ;;  %v2403_v0 = vmul.f32 %v5806_v60, %v5693_v51 }
 0x333   : > { %v2772_v5 = vadd.f32 %v2764_v4, %v2744_v48  ;;  %v2633_v25 = vadd.f32 %v2625_v18, %v2605_v19  ;;  %2351 = vst.msk [vmem:[#allocation2 + $0x80] sm:$0xff] %vm1182_vm4, %v2307_v32  ;;  %v2466_v1 = vadd.f32 %v2458_v26, %v2438_v22  ;;  %v2820_v19 = vmul.f32 %v5851_v42, %v5806_v60 }
 0x334   : > { %2350 = vst.msk [vmem:[#allocation2 + $0x68] sm:$0xff] %vm1182_vm4, %v2306_v36  ;;  %v2681_v3 = vmul.f32 %v5806_v60, %v5802_v16  ;;  %v5892_v6 = vrot.slane %v5809_v7, %v6845_v47  ;;  %v2514_v56 = vmul.f32 %v5804_v11, %v5712_v55  ;;  %v2848_v33 = vmul.f32 %v5855_v57, %v5829_v49 }
 0x335   : > { %v2800_v28 = vadd.f32 %v2792_v54, %v2772_v5  ;;  %v2661_v48 = vadd.f32 %v2653_v61, %v2633_v25  ;;  %v2494_v40 = vadd.f32 %v2486_v9, %v2466_v1  ;;  %v2709_v30 = vmul.f32 %v5829_v49, %v5816_v2 }
 0x336   : > { %v5902_v34 = vrot.slane %v5809_v7, %v6846_v52  ;;  %v2542_v32 = vmul.f32 %v5806_v60, %v5720_v63  ;;  %v2411_v54 = vadd.f32 %v2403_v0, %v2375_v10  ;;  %v2876_v11 = vmul.f32 %v5859_v29, %v5831_v8 }
 0x337   : > { %v2828_v27 = vadd.f32 %v2820_v19, %v2800_v28  ;;  %v2689_v4 = vadd.f32 %v2681_v3, %v2661_v48  ;;  %v2522_v18 = vadd.f32 %v2514_v56, %v2494_v40  ;;  %v2737_v36 = vmul.f32 %v5831_v8, %v5823_v38 }
 0x338   : > { %v5912_v5 = vrot.slane %v5809_v7, %v6847_v35  ;;  %v2431_v61 = vmul.f32 %v5829_v49, %v5698_v20  ;;  %v2904_v60 = vmul.f32 %v5892_v6, %v5833_v12  ;;  %v2570_v28 = vmul.f32 %v5829_v49, %v5724_v59 }
 0x339   : > { %v2856_v22 = vadd.f32 %v2848_v33, %v2828_v27  ;;  %v2717_v26 = vadd.f32 %v2709_v30, %v2689_v4  ;;  %v2550_v25 = vadd.f32 %v2542_v32, %v2522_v18  ;;  %v2765_v3 = vmul.f32 %v5833_v12, %v5827_v15 }
 0x33a   : > { %v5918_v10 = vld [vmem:[#allocation2 + $0x7e] sm:$0xff]  ;;  %v2439_v40 = vadd.f32 %v2431_v61, %v2411_v54  ;;  %v5938_v49 = vrot.slane %v5809_v7, %v6848_v41  ;;  %v5948_v32 = vrot.slane %v5809_v7, %v6849_v21  ;;  %v5978_v41 = vld [vmem:[%s4682_s6 + $0x18] ss:$0 sm:$0xff] }
 0x33b   : > { %v2884_v1 = vadd.f32 %v2876_v11, %v2856_v22  ;;  %v2745_v9 = vadd.f32 %v2737_v36, %v2717_v26  ;;  %v5920_v0 = vld [vmem:[#allocation2 + $0x7f] sm:$0xff]  ;;  %v5926_v48 = vld [vmem:[#allocation2 + $0x67] sm:$0xff]  ;;  %v2578_v18 = vadd.f32 %v2570_v28, %v2550_v25  ;;  %v2459_v25 = vmul.f32 %v5831_v8, %v5704_v31 }
 0x33c   : > { %v5924_v19 = vld [vmem:[#allocation2 + $0x66] sm:$0xff]  ;;  %3450 = vst.msk [vmem:[#allocation2 + $0x78] sm:$0xff] %vm1182_vm4, %v6844_v37  ;;  %v2960_v61 = vmul.f32 %v5912_v5, %v5926_v48  ;;  %v2821_v28 = vmul.f32 %v5926_v48, %v5851_v42 }
 0x33d   : > { %v2912_v56 = vadd.f32 %v2904_v60, %v2884_v1  ;;  %v2932_v27 = vmul.f32 %v5902_v34, %v5924_v19  ;;  %v5934_v33 = vld [vmem:[#allocation2 + $0x68] sm:$0xff]  ;;  %3447 = vst.msk [vmem:[#allocation2 + $0x60] sm:$0xff] %vm1182_vm4, %v6844_v37  ;;  %v2773_v54 = vadd.f32 %v2765_v3, %v2745_v9  ;;  %v2793_v22 = vmul.f32 %v5924_v19, %v5847_v50  ;;  %v5952_v11 = vld [vmem:[#allocation2 + $0x80] sm:$0xff] }
 0x33e   : > { %v5940_v4 = vld [vmem:[#allocation2 + $0x69] sm:$0xff]  ;;  %v5954_v26 = vld [vmem:[#allocation2 + $0x81] sm:$0xff]  ;;  %v2598_v1 = vmul.f32 %v5831_v8, %v5764_v62  ;;  %v2626_v3 = vmul.f32 %v5833_v12, %v5773_v17  ;;  %v2988_v35 = vmul.f32 %v5938_v49, %v5934_v33 }
 0x33f   : > { %v5942_v30 = vld [vmem:[#allocation2 + $0x6a] sm:$0xff]  ;;  %v5956_v36 = vld [vmem:[#allocation2 + $0x82] sm:$0xff]  ;;  %v2940_v7 = vadd.f32 %v2932_v27, %v2912_v56  ;;  %v4447_v60 = vpop.f32.mrb[10].mxu1  ;;  %v2801_v9 = vadd.f32 %v2793_v22, %v2773_v54  ;;  %v2467_v56 = vadd.f32 %v2459_v25, %v2439_v40  ;;  %v3016_v54 = vmul.f32 %v5948_v32, %v5940_v4 }
 0x340   : > { %3448 = vst.msk [vmem:[#allocation2 + $0x68] sm:$0xff] %vm1182_vm4, %v6844_v37  ;;  %3451 = vst.msk [vmem:[#allocation2 + $0x80] sm:$0xff] %vm1182_vm4, %v6844_v37  ;;  %v2286_v27 = vmul.f32 %v4447_v60, %v5751_v58  ;;  %v2255_v21 = vpop.f32.mrb[11].mxu1  ;;  %v2606_v52 = vadd.f32 %v2598_v1, %v2578_v18  ;;  %v2849_v40 = vmul.f32 %v5934_v33, %v5855_v57 }
 0x341   : > { %3449 = vst.msk [vmem:[#allocation2 + $0x70] sm:$0x3] %vm1185_vm5, %v6844_v37  ;;  %3452 = vst.msk [vmem:[#allocation2 + $0x88] sm:$0x3] %vm1185_vm5, %v6844_v37  ;;  %v2968_v8 = vadd.f32 %v2960_v61, %v2940_v7  ;;  %v2285_v47 = vmul.f32 %v5751_v58, %v2255_v21  ;;  %v2829_v22 = vadd.f32 %v2821_v28, %v2801_v9 }
 0x342   : > { %v2301_v25 = vadd.f32 %v5759_v13, %v2286_v27  ;;  %v2634_v24 = vadd.f32 %v2626_v3, %v2606_v52  ;;  %v2654_v7 = vmul.f32 %v5924_v19, %v5794_v46  ;;  %v3044_v21 = vmul.f32 %v5978_v41, %v5942_v30  ;;  %v5998_v3 = vld [vmem:[%s6862_s10] ss:$0 sm:$0xff]  ;;  %s6901_s10 = sld [smem:[#allocation13_spill]] }
 0x343   : > { %v2996_v60 = vadd.f32 %v2988_v35, %v2968_v8  ;;  %v2300_v61 = vadd.f32 %v5759_v13, %v2285_v47  ;;  %v2857_v18 = vadd.f32 %v2849_v40, %v2829_v22  ;;  %v2877_v1 = vmul.f32 %v5940_v4, %v5859_v29 }
 0x344   : > { %v2309_v9 = vmax.f32 %v2301_v25, 0.0  ;;  %v2662_v39 = vadd.f32 %v2654_v7, %v2634_v24  ;;  %v2682_v35 = vmul.f32 %v5926_v48, %v5802_v16  ;;  %v2905_v47 = vmul.f32 %v5942_v30, %v5892_v6 }
 0x345   : > { %v3024_v28 = vadd.f32 %v3016_v54, %v2996_v60  ;;  %v2308_v52 = vmax.f32 %v2300_v61, 0.0  ;;  %v2885_v27 = vadd.f32 %v2877_v1, %v2857_v18  ;;  %v2487_v8 = vmul.f32 %v5833_v12, %v5708_v23  ;;  %v6009_v54 = vld [vmem:[%s6863_s11] ss:$0 sm:$0xff]  ;;  %s6565_s11 = scalar_lea.vmem %s4777_s30, %s4789_s0 }
 0x346   : > { %2353 = vst.msk [vmem:[#allocation2 + $0xb0] sm:$0xff] %vm1182_vm4, %v2309_v9  ;;  %v2690_v40 = vadd.f32 %v2682_v35, %v2662_v39  ;;  %v2710_v24 = vmul.f32 %v5934_v33, %v5816_v2  ;;  %v2933_v60 = vmul.f32 %v5902_v34, %v5918_v10  ;;  %v2515_v61 = vmul.f32 %v5924_v19, %v5712_v55 }
 0x347   : > { %v3052_v22 = vadd.f32 %v3044_v21, %v3024_v28  ;;  %2352 = vst.msk [vmem:[#allocation2 + $0x98] sm:$0xff] %vm1182_vm4, %v2308_v52  ;;  %v2913_v25 = vadd.f32 %v2905_v47, %v2885_v27  ;;  %v2495_v7 = vadd.f32 %v2487_v8, %v2467_v56  ;;  %v2738_v39 = vmul.f32 %v5940_v4, %v5823_v38 }
 0x348   : > { %v2718_v18 = vadd.f32 %v2710_v24, %v2690_v40  ;;  %v2961_v1 = vmul.f32 %v5912_v5, %v5920_v0  ;;  %v2543_v28 = vmul.f32 %v5926_v48, %v5720_v63  ;;  %v2766_v52 = vmul.f32 %v5942_v30, %v5827_v15 }
 0x349   : > { %v3067_v12 = vmul.f32 %v5998_v3, %v3052_v22  ;;  %v2941_v21 = vadd.f32 %v2933_v60, %v2913_v25  ;;  %v2523_v9 = vadd.f32 %v2515_v61, %v2495_v7  ;;  %v2989_v47 = vmul.f32 %v5938_v49, %v5952_v11 }
 0x34a   : > { %v2746_v56 = vadd.f32 %v2738_v39, %v2718_v18  ;;  %v2571_v22 = vmul.f32 %v5934_v33, %v5724_v59  ;;  %v2794_v25 = vmul.f32 %v5918_v10, %v5847_v50  ;;  %v3017_v7 = vmul.f32 %v5948_v32, %v5954_v26 }
 0x34b   : > { %v3082_v35 = vadd.f32 %v6009_v54, %v3067_v12  ;;  %v2969_v27 = vadd.f32 %v2961_v1, %v2941_v21  ;;  %v2551_v8 = vadd.f32 %v2543_v28, %v2523_v9  ;;  %v2822_v21 = vmul.f32 %v5920_v0, %v5851_v42 }
 0x34c   : > { %v2774_v24 = vadd.f32 %v2766_v52, %v2746_v56  ;;  %v2599_v28 = vmul.f32 %v5940_v4, %v5764_v62  ;;  %v3045_v56 = vmul.f32 %v5978_v41, %v5956_v36  ;;  %v2850_v52 = vmul.f32 %v5952_v11, %v5855_v57 }
 0x34d   : > { %v3090_v40 = vmax.f32 %v3082_v35, 0.0  ;;  %v2997_v60 = vadd.f32 %v2989_v47, %v2969_v27  ;;  %v2579_v61 = vadd.f32 %v2571_v22, %v2551_v8  ;;  %v6033_v12 = vld [vmem:[#allocation2 + $0xae] sm:$0xff] }
 0x34e   : > { %6864 = vst [vmem:[#allocation64_spill] sm:$0xff] %v6033_v12  ;;  %v6035_v18 = vld [vmem:[#allocation2 + $0xaf] sm:$0xff]  ;;  %v2802_v39 = vadd.f32 %v2794_v25, %v2774_v24  ;;  %v6042_v9 = vld [vmem:[#allocation2 + $0x97] sm:$0xff]  ;;  %v2878_v24 = vmul.f32 %v5954_v26, %v5859_v29 }
 0x34f   : > { %6865 = vst [vmem:[#allocation63_spill] sm:$0xff] %v6035_v18  ;;  %4453 = vmatprep.mubr.msk.f32.mxu0 %vm1182_vm4, %v3090_v40  ;;  %v6040_v1 = vld [vmem:[#allocation2 + $0x96] sm:$0xff]  ;;  %3456 = vst.msk [vmem:[#allocation2 + $0xa8] sm:$0xff] %vm1182_vm4, %v6844_v37  ;;  %v3025_v35 = vadd.f32 %v3017_v7, %v2997_v60  ;;  %v2607_v25 = vadd.f32 %v2599_v28, %v2579_v61  ;;  %v2627_v60 = vmul.f32 %v5942_v30, %v5773_v17 }
 0x350   : > { %v6052_v27 = vld [vmem:[#allocation2 + $0x98] sm:$0xff]  ;;  %3453 = vst.msk [vmem:[#allocation2 + $0x90] sm:$0xff] %vm1182_vm4, %v6844_v37  ;;  %v4450_v22 = vpop.f32.mrb[12].mxu1  ;;  %v2830_v40 = vadd.f32 %v2822_v21, %v2802_v39  ;;  %v6064_v7 = vld [vmem:[#allocation2 + $0xb0] sm:$0xff]  ;;  %v2376_v61 = vmul.f32 %v5924_v19, %v5690_v44  ;;  %v2404_v28 = vmul.f32 %v5926_v48, %v5693_v51  ;;  %v2906_v48 = vmul.f32 %v5956_v36, %v5892_v6 }
 0x351   : > { %v6054_v47 = vld [vmem:[#allocation2 + $0x99] sm:$0xff]  ;;  %6866 = vst [vmem:[#allocation42_spill] sm:$0xff] %v6064_v7  ;;  %v6066_v14 = vld [vmem:[#allocation2 + $0xb1] sm:$0xff]  ;;  %v2288_v39 = vmul.f32 %v4450_v22, %v5751_v58  ;;  %v2265_v21 = vpop.f32.mrb[13].mxu1  ;;  %v3053_v53 = vadd.f32 %v3045_v56, %v3025_v35  ;;  %v2655_v22 = vmul.f32 %v5918_v10, %v5794_v46  ;;  %v2683_v56 = vmul.f32 %v5920_v0, %v5802_v16 }
 0x352   : > { %v6056_v8 = vld [vmem:[#allocation2 + $0x9a] sm:$0xff]  ;;  %6867 = vst [vmem:[#allocation54_spill] sm:$0xff] %v6066_v14  ;;  %v6068_v43 = vld [vmem:[#allocation2 + $0xb2] sm:$0xff]  ;;  %v2287_v45 = vmul.f32 %v5751_v58, %v2265_v21  ;;  %v2635_v14 = vadd.f32 %v2627_v60, %v2607_v25  ;;  %v2711_v58 = vmul.f32 %v5952_v11, %v5816_v2  ;;  %v2412_v25 = vadd.f32 %v2404_v28, %v2376_v61 }
 0x353   : > { %6868 = vst [vmem:[#allocation41_spill] sm:$0xff] %v6068_v43  ;;  %3454 = vst.msk [vmem:[#allocation2 + $0x98] sm:$0xff] %vm1182_vm4, %v6844_v37  ;;  %v2858_v43 = vadd.f32 %v2850_v52, %v2830_v40  ;;  %v2303_v35 = vadd.f32 %v5759_v13, %v2288_v39  ;;  %v3068_v19 = vmul.f32 %v5998_v3, %v3053_v53 }
 0x354   : > { %3455 = vst.msk [vmem:[#allocation2 + $0xa0] sm:$0x3] %vm1185_vm5, %v6844_v37  ;;  %3458 = vst.msk [vmem:[#allocation2 + $0xb8] sm:$0x3] %vm1185_vm5, %v6844_v37  ;;  %v2302_v7 = vadd.f32 %v5759_v13, %v2287_v45  ;;  %v2663_v12 = vadd.f32 %v2655_v22, %v2635_v14  ;;  %v2432_v53 = vmul.f32 %v5934_v33, %v5698_v20 }
 0x355   : > { %3457 = vst.msk [vmem:[#allocation2 + $0xb0] sm:$0xff] %vm1182_vm4, %v6844_v37  ;;  %v2886_v18 = vadd.f32 %v2878_v24, %v2858_v43  ;;  %v2311_v52 = vmax.f32 %v2303_v35, 0.0  ;;  %v3083_v40 = vadd.f32 %v6009_v54, %v3068_v19  ;;  %v2934_v21 = vmul.f32 %v5902_v34, %v6040_v1 }
 0x356   : > { %v2310_v60 = vmax.f32 %v2302_v7, 0.0  ;;  %v2691_v16 = vadd.f32 %v2683_v56, %v2663_v12  ;;  %v2440_v43 = vadd.f32 %v2432_v53, %v2412_v25  ;;  %v2460_v14 = vmul.f32 %v5940_v4, %v5704_v31 }
 0x357   : > { %v2914_v39 = vadd.f32 %v2906_v48, %v2886_v18  ;;  %2355 = vst.msk [vmem:[#allocation2 + $0xe0] sm:$0xff] %vm1182_vm4, %v2311_v52  ;;  %v3091_v45 = vmax.f32 %v3083_v40, 0.0  ;;  %v2962_v24 = vmul.f32 %v5912_v5, %v6042_v9  ;;  %v2739_v18 = vmul.f32 %v5954_v26, %v5823_v38 }
 0x358   : > { %2354 = vst.msk [vmem:[#allocation2 + $0xc8] sm:$0xff] %vm1182_vm4, %v2310_v60  ;;  %v2719_v33 = vadd.f32 %v2711_v58, %v2691_v16  ;;  %v2468_v12 = vadd.f32 %v2460_v14, %v2440_v43  ;;  %v2488_v7 = vmul.f32 %v5942_v30, %v5708_v23  ;;  %v2990_v4 = vmul.f32 %v5938_v49, %v6052_v27 }
 0x359   : > { %v2942_v13 = vadd.f32 %v2934_v21, %v2914_v39  ;;  %4454 = vmatmul.mubr.msk.f32.vlgmr.msra.gmra.mrb[10].mxu0 %vm1182_vm4, %v3091_v45  ;;  %v2767_v22 = vmul.f32 %v5956_v36, %v5827_v15  ;;  %v2516_v16 = vmul.f32 %v5918_v10, %v5712_v55  ;;  %v3018_v48 = vmul.f32 %v5948_v32, %v6054_v47 }
 0x35a   : > { %v2747_v28 = vadd.f32 %v2739_v18, %v2719_v33  ;;  %v2496_v35 = vadd.f32 %v2488_v7, %v2468_v12  ;;  %v2795_v30 = vmul.f32 %v6040_v1, %v5847_v50  ;;  %v2544_v52 = vmul.f32 %v5920_v0, %v5720_v63 }
 0x35b   : > { %v2970_v61 = vadd.f32 %v2962_v24, %v2942_v13  ;;  %v2377_v40 = vmul.f32 %v5918_v10, %v5690_v44  ;;  %v2405_v25 = vmul.f32 %v5920_v0, %v5693_v51  ;;  %v3046_v60 = vmul.f32 %v5978_v41, %v6056_v8 }
 0x35c   : > { %v2775_v56 = vadd.f32 %v2767_v22, %v2747_v28  ;;  %v2524_v58 = vadd.f32 %v2516_v16, %v2496_v35  ;;  %v2823_v21 = vmul.f32 %v6042_v9, %v5851_v42  ;;  %v2572_v13 = vmul.f32 %v5952_v11, %v5724_v59 }
 0x35d   : > { %v2998_v19 = vadd.f32 %v2990_v4, %v2970_v61  ;;  %v2413_v0 = vadd.f32 %v2405_v25, %v2377_v40  ;;  %v2851_v12 = vmul.f32 %v6052_v27, %v5855_v57  ;;  %v2433_v28 = vmul.f32 %v5952_v11, %v5698_v20 }
 0x35e   : > { %v2803_v39 = vadd.f32 %v2795_v30, %v2775_v56  ;;  %v6131_v45 = vld [vmem:[#allocation2 + $0xde] sm:$0xff]  ;;  %v2552_v14 = vadd.f32 %v2544_v52, %v2524_v58  ;;  %v2879_v22 = vmul.f32 %v6054_v47, %v5859_v29  ;;  %v2600_v16 = vmul.f32 %v5954_v26, %v5764_v62 }
 0x35f   : > { %v3026_v53 = vadd.f32 %v3018_v48, %v2998_v19  ;;  %v6133_v43 = vld [vmem:[#allocation2 + $0xdf] sm:$0xff]  ;;  %v6139_v24 = vld [vmem:[#allocation2 + $0xc7] sm:$0xff]  ;;  %v2441_v58 = vadd.f32 %v2433_v28, %v2413_v0  ;;  %v2461_v52 = vmul.f32 %v5954_v26, %v5704_v31  ;;  %v2907_v40 = vmul.f32 %v6056_v8, %v5892_v6 }
 0x360   : > { %v6137_v10 = vld [vmem:[#allocation2 + $0xc6] sm:$0xff]  ;;  %3462 = vst.msk [vmem:[#allocation2 + $0xd8] sm:$0xff] %vm1182_vm4, %v6844_v37  ;;  %v2831_v18 = vadd.f32 %v2823_v21, %v2803_v39  ;;  %v2580_v35 = vadd.f32 %v2572_v13, %v2552_v14  ;;  %v2489_v26 = vmul.f32 %v5956_v36, %v5708_v23  ;;  %v6869_v14 = vld [vmem:[#allocation64_spill] sm:$0xff]  ;;  %v2517_v28 = vmul.f32 %v6040_v1, %v5712_v55 }
 0x361   : > { %v3054_v33 = vadd.f32 %v3046_v60, %v3026_v53  ;;  %v6145_v7 = vld [vmem:[#allocation2 + $0xc8] sm:$0xff]  ;;  %3459 = vst.msk [vmem:[#allocation2 + $0xc0] sm:$0xff] %vm1182_vm4, %v6844_v37  ;;  %v6159_v19 = vld [vmem:[#allocation2 + $0xe0] sm:$0xff]  ;;  %v2628_v53 = vmul.f32 %v5956_v36, %v5773_v17  ;;  %v2469_v21 = vadd.f32 %v2461_v52, %v2441_v58  ;;  %v2935_v13 = vmul.f32 %v5902_v34, %v6869_v14 }
 0x362   : > { %v6147_v61 = vld [vmem:[#allocation2 + $0xc9] sm:$0xff]  ;;  %v6161_v48 = vld [vmem:[#allocation2 + $0xe1] sm:$0xff]  ;;  %v2859_v30 = vadd.f32 %v2851_v12, %v2831_v18  ;;  %v2608_v25 = vadd.f32 %v2600_v16, %v2580_v35  ;;  %v2545_v52 = vmul.f32 %v6042_v9, %v5720_v63 }
 0x363   : > { %v6149_v4 = vld [vmem:[#allocation2 + $0xca] sm:$0xff]  ;;  %v6163_v56 = vld [vmem:[#allocation2 + $0xe2] sm:$0xff]  ;;  %v3069_v11 = vmul.f32 %v5998_v3, %v3054_v33  ;;  %v2497_v12 = vadd.f32 %v2489_v26, %v2469_v21  ;;  %v2573_v26 = vmul.f32 %v6052_v27, %v5724_v59 }
 0x364   : > { %3460 = vst.msk [vmem:[#allocation2 + $0xc8] sm:$0xff] %vm1182_vm4, %v6844_v37  ;;  %3463 = vst.msk [vmem:[#allocation2 + $0xe0] sm:$0xff] %vm1182_vm4, %v6844_v37  ;;  %v2887_v39 = vadd.f32 %v2879_v22, %v2859_v30  ;;  %v2636_v0 = vadd.f32 %v2628_v53, %v2608_v25  ;;  %v6870_v16 = vld [vmem:[#allocation62_spill] sm:$0xff] }
 0x365   : > { %3461 = vst.msk [vmem:[#allocation2 + $0xd0] sm:$0x3] %vm1185_vm5, %v6844_v37  ;;  %3464 = vst.msk [vmem:[#allocation2 + $0xe8] sm:$0x3] %vm1185_vm5, %v6844_v37  ;;  %v3084_v60 = vadd.f32 %v6009_v54, %v3069_v11  ;;  %v2656_v37 = vmul.f32 %v6040_v1, %v5794_v46  ;;  %v2684_v22 = vmul.f32 %v6042_v9, %v6870_v16  ;;  %v6871_v11 = vld [vmem:[#allocation63_spill] sm:$0xff]  ;;  %v6872_v25 = vld [vmem:[#allocation42_spill] sm:$0xff] }
 0x366   : > { %v2915_v18 = vadd.f32 %v2907_v40, %v2887_v39  ;;  %v2963_v30 = vmul.f32 %v5912_v5, %v6871_v11  ;;  %v2525_v58 = vadd.f32 %v2517_v28, %v2497_v12  ;;  %v2991_v40 = vmul.f32 %v5938_v49, %v6872_v25  ;;  %v6873_v12 = vld [vmem:[#allocation54_spill] sm:$0xff] }
 0x367   : > { %v3092_v33 = vmax.f32 %v3084_v60, 0.0  ;;  %v2664_v35 = vadd.f32 %v2656_v37, %v2636_v0  ;;  %v2712_v60 = vmul.f32 %v6052_v27, %v5816_v2  ;;  %v2740_v37 = vmul.f32 %v6054_v47, %v5823_v38 }
 0x368   : > { %v2943_v36 = vadd.f32 %v2935_v13, %v2915_v18  ;;  %v2553_v21 = vadd.f32 %v2545_v52, %v2525_v58  ;;  %v2378_v13 = vmul.f32 %v6040_v1, %v5690_v44  ;;  %v3019_v28 = vmul.f32 %v5948_v32, %v6873_v12 }
 0x369   : > { %4456 = vmatprep.mubr.msk.f32.mxu0 %vm1182_vm4, %v3092_v33  ;;  %v2692_v53 = vadd.f32 %v2684_v22, %v2664_v35  ;;  %v2406_v33 = vmul.f32 %v6042_v9, %v5693_v51  ;;  %v2601_v22 = vmul.f32 %v6054_v47, %v5764_v62  ;;  %v2434_v58 = vmul.f32 %v6052_v27, %v5698_v20 }
 0x36a   : > { %v2971_v39 = vadd.f32 %v2963_v30, %v2943_v36  ;;  %v2581_v35 = vadd.f32 %v2573_v26, %v2553_v21  ;;  %v2768_v30 = vmul.f32 %v6056_v8, %v5827_v15  ;;  %v2796_v21 = vmul.f32 %v6869_v14, %v5847_v50 }
 0x36b   : > { %v2720_v0 = vadd.f32 %v2712_v60, %v2692_v53  ;;  %v2414_v1 = vadd.f32 %v2406_v33, %v2378_v13  ;;  %v6874_v53 = vld [vmem:[#allocation41_spill] sm:$0xff]  ;;  %v2629_v60 = vmul.f32 %v6056_v8, %v5773_v17  ;;  %v2824_v27 = vmul.f32 %v6871_v11, %v5851_v42 }
 0x36c   : > { %v2999_v18 = vadd.f32 %v2991_v40, %v2971_v39  ;;  %v3047_v9 = vmul.f32 %v5978_v41, %v6874_v53  ;;  %v2609_v40 = vadd.f32 %v2601_v22, %v2581_v35  ;;  %v2657_v33 = vmul.f32 %v6869_v14, %v5794_v46 }
 0x36d   : > { %v2748_v36 = vadd.f32 %v2740_v37, %v2720_v0  ;;  %v2442_v26 = vadd.f32 %v2434_v58, %v2414_v1  ;;  %v2462_v0 = vmul.f32 %v6054_v47, %v5704_v31  ;;  %v2490_v22 = vmul.f32 %v6056_v8, %v5708_v23 }
 0x36e   : > { %v3027_v52 = vadd.f32 %v3019_v28, %v2999_v18  ;;  %v2637_v37 = vadd.f32 %v2629_v60, %v2609_v40  ;;  %v2852_v28 = vmul.f32 %v6872_v25, %v5855_v57  ;;  %v2880_v47 = vmul.f32 %v6873_v12, %v5859_v29 }
 0x36f   : > { %v2776_v39 = vadd.f32 %v2768_v30, %v2748_v36  ;;  %v2470_v35 = vadd.f32 %v2462_v0, %v2442_v26  ;;  %v2685_v1 = vmul.f32 %v6871_v11, %v6870_v16  ;;  %v2518_v40 = vmul.f32 %v6869_v14, %v5712_v55 }
 0x370   : > { %v3055_v13 = vadd.f32 %v3047_v9, %v3027_v52  ;;  %v2665_v30 = vadd.f32 %v2657_v33, %v2637_v37  ;;  %v2713_v52 = vmul.f32 %v6872_v25, %v5816_v2  ;;  %v2741_v0 = vmul.f32 %v6873_v12, %v5823_v38 }
 0x371   : > { %v2804_v18 = vadd.f32 %v2796_v21, %v2776_v39  ;;  %v2498_v9 = vadd.f32 %v2490_v22, %v2470_v35  ;;  %v2379_v39 = vmul.f32 %v6869_v14, %v5690_v44  ;;  %v2407_v21 = vmul.f32 %v6871_v11, %v5693_v51 }
 0x372   : > { %v3070_v36 = vmul.f32 %v5998_v3, %v3055_v13  ;;  %v2693_v8 = vadd.f32 %v2685_v1, %v2665_v30  ;;  %v2435_v35 = vmul.f32 %v6872_v25, %v5698_v20  ;;  %v2908_v44 = vmul.f32 %v6874_v53, %v5892_v6 }
 0x373   : > { %v2832_v58 = vadd.f32 %v2824_v27, %v2804_v18  ;;  %v2526_v13 = vadd.f32 %v2518_v40, %v2498_v9  ;;  %v2546_v27 = vmul.f32 %v6871_v11, %v5720_v63  ;;  %v2415_v18 = vadd.f32 %v2407_v21, %v2379_v39 }
 0x374   : > { %v3085_v60 = vadd.f32 %v6009_v54, %v3070_v36  ;;  %v2721_v33 = vadd.f32 %v2713_v52, %v2693_v8  ;;  %v2574_v51 = vmul.f32 %v6872_v25, %v5724_v59  ;;  %v2769_v11 = vmul.f32 %v6874_v53, %v5827_v15 }
 0x375   : > { %v2860_v26 = vadd.f32 %v2852_v28, %v2832_v58  ;;  %v2554_v14 = vadd.f32 %v2546_v27, %v2526_v13  ;;  %v2443_v36 = vadd.f32 %v2435_v35, %v2415_v18  ;;  %v2463_v30 = vmul.f32 %v6873_v12, %v5704_v31 }
 0x376   : > { %v3093_v37 = vmax.f32 %v3085_v60, 0.0  ;;  %v2749_v28 = vadd.f32 %v2741_v0, %v2721_v33  ;;  %v2936_v20 = vmul.f32 %v5902_v34, %v6137_v10  ;;  %v2602_v58 = vmul.f32 %v6873_v12, %v5764_v62 }
 0x377   : > { %v2888_v22 = vadd.f32 %v2880_v47, %v2860_v26  ;;  %v2582_v47 = vadd.f32 %v2574_v51, %v2554_v14  ;;  %v2797_v25 = vmul.f32 %v6137_v10, %v5847_v50  ;;  %v2471_v9 = vadd.f32 %v2463_v30, %v2443_v36 }
 0x378   : > { %4457 = vmatmul.mubr.msk.f32.gmra.mrb[12].mxu0 %vm1182_vm4, %v3093_v37  ;;  %v2777_v52 = vadd.f32 %v2769_v11, %v2749_v28  ;;  %v2491_v40 = vmul.f32 %v6874_v53, %v5708_v23  ;;  %v2964_v31 = vmul.f32 %v5912_v5, %v6139_v24  ;;  %v2630_v39 = vmul.f32 %v6874_v53, %v5773_v17 }
 0x379   : > { %v2916_v1 = vadd.f32 %v2908_v44, %v2888_v22  ;;  %v2610_v8 = vadd.f32 %v2602_v58, %v2582_v47  ;;  %v2825_v12 = vmul.f32 %v6139_v24, %v5851_v42  ;;  %v2519_v0 = vmul.f32 %v6137_v10, %v5712_v55 }
 0x37a   : > { %v2805_v21 = vadd.f32 %v2797_v25, %v2777_v52  ;;  %v2499_v26 = vadd.f32 %v2491_v40, %v2471_v9  ;;  %v2992_v23 = vmul.f32 %v5938_v49, %v6145_v7  ;;  %v2658_v37 = vmul.f32 %v6137_v10, %v5794_v46 }
 0x37b   : > { %v2944_v60 = vadd.f32 %v2936_v20, %v2916_v1  ;;  %v2638_v27 = vadd.f32 %v2630_v39, %v2610_v8  ;;  %v2853_v53 = vmul.f32 %v6145_v7, %v5855_v57  ;;  %v2547_v35 = vmul.f32 %v6139_v24, %v5720_v63 }
 0x37c   : > { %v2833_v33 = vadd.f32 %v2825_v12, %v2805_v21  ;;  %v2527_v18 = vadd.f32 %v2519_v0, %v2499_v26  ;;  %v3020_v55 = vmul.f32 %v5948_v32, %v6147_v61  ;;  %v2686_v14 = vmul.f32 %v6139_v24, %v6870_v16 }
 0x37d   : > { %v2972_v13 = vadd.f32 %v2964_v31, %v2944_v60  ;;  %v2666_v44 = vadd.f32 %v2658_v37, %v2638_v27  ;;  %v2881_v10 = vmul.f32 %v6147_v61, %v5859_v29  ;;  %v2575_v11 = vmul.f32 %v6145_v7, %v5724_v59 }
 0x37e   : > { %v2861_v51 = vadd.f32 %v2853_v53, %v2833_v33  ;;  %v2555_v28 = vadd.f32 %v2547_v35, %v2527_v18  ;;  %v3048_v63 = vmul.f32 %v5978_v41, %v6149_v4  ;;  %v2714_v1 = vmul.f32 %v6145_v7, %v5816_v2 }
 0x37f   : > { %v3000_v22 = vadd.f32 %v2992_v23, %v2972_v13  ;;  %v2694_v30 = vadd.f32 %v2686_v14, %v2666_v44  ;;  %v2909_v24 = vmul.f32 %v6149_v4, %v5892_v6  ;;  %v2603_v58 = vmul.f32 %v6147_v61, %v5764_v62 }
 0x380   : > { %v2889_v20 = vadd.f32 %v2881_v10, %v2861_v51  ;;  %v2583_v47 = vadd.f32 %v2575_v11, %v2555_v28  ;;  %v2742_v59 = vmul.f32 %v6147_v61, %v5823_v38  ;;  %v2937_v40 = vmul.f32 %v5902_v34, %v6131_v45 }
 0x381   : > { %v3028_v36 = vadd.f32 %v3020_v55, %v3000_v22  ;;  %v2722_v25 = vadd.f32 %v2714_v1, %v2694_v30  ;;  %v2631_v7 = vmul.f32 %v6149_v4, %v5773_v17  ;;  %v2770_v39 = vmul.f32 %v6149_v4, %v5827_v15 }
 0x382   : > { %v2917_v9 = vadd.f32 %v2909_v24, %v2889_v20  ;;  %v2611_v60 = vadd.f32 %v2603_v58, %v2583_v47  ;;  %v2965_v21 = vmul.f32 %v5912_v5, %v6133_v43  ;;  %v2659_v61 = vmul.f32 %v6131_v45, %v5794_v46 }
 0x383   : > { %v3056_v52 = vadd.f32 %v3048_v63, %v3028_v36  ;;  %v2750_v8 = vadd.f32 %v2742_v59, %v2722_v25  ;;  %v2798_v17 = vmul.f32 %v6131_v45, %v5847_v50  ;;  %v2993_v23 = vmul.f32 %v5938_v49, %v6159_v19  ;;  %v6875_v36 = vld [vmem:[#allocation53_spill] sm:$0xff] }
 0x384   : > { %v2945_v62 = vadd.f32 %v2937_v40, %v2917_v9  ;;  %v2639_v12 = vadd.f32 %v2631_v7, %v2611_v60  ;;  %v2687_v4 = vmul.f32 %v6133_v43, %v6870_v16  ;;  %v2826_v53 = vmul.f32 %v6133_v43, %v5851_v42  ;;  %v6878_v60 = vld [vmem:[#allocation48_spill] sm:$0xff] }
 0x385   : > { %v3071_v31 = vmul.f32 %v5998_v3, %v3056_v52  ;;  %v2778_v0 = vadd.f32 %v2770_v39, %v2750_v8  ;;  %v3021_v18 = vmul.f32 %v5948_v32, %v6161_v48  ;;  %v2715_v45 = vmul.f32 %v6159_v19, %v5816_v2  ;;  %v6877_v52 = vld [vmem:[#allocation47_spill] sm:$0xff] }
 0x386   : > { %v2973_v13 = vadd.f32 %v2965_v21, %v2945_v62  ;;  %v2667_v27 = vadd.f32 %v2659_v61, %v2639_v12  ;;  %v2854_v55 = vmul.f32 %v6159_v19, %v5855_v57  ;;  %v3049_v44 = vmul.f32 %v5978_v41, %v6163_v56  ;;  %v6879_v39 = vld [vmem:[#allocation59_spill] sm:$0xff]  ;;  %v6880_v61 = vld [vmem:[#allocation36_spill] sm:$0xff] }
 0x387   : > { %v3086_v26 = vadd.f32 %v6009_v54, %v3071_v31  ;;  %v2806_v33 = vadd.f32 %v2798_v17, %v2778_v0  ;;  %v2743_v43 = vmul.f32 %v6161_v48, %v5823_v38  ;;  %v2882_v10 = vmul.f32 %v6161_v48, %v5859_v29  ;;  %v6876_v48 = vld [vmem:[#allocation43_spill] sm:$0xff]  ;;  %v6881_v17 = vld [vmem:[#allocation37_spill] sm:$0xff] }
 0x388   : > { %v3001_v46 = vadd.f32 %v2993_v23, %v2973_v13  ;;  %v2695_v35 = vadd.f32 %v2687_v4, %v2667_v27  ;;  %v2771_v11 = vmul.f32 %v6163_v56, %v5827_v15  ;;  %v2799_v19 = vmul.f32 %v6875_v36, %v5847_v50  ;;  %v6882_v4 = vld [vmem:[#allocation61_spill] sm:$0xff] }
 0x389   : > { %v3094_v37 = vmax.f32 %v3086_v26, 0.0  ;;  %v2834_v22 = vadd.f32 %v2826_v53, %v2806_v33  ;;  %v2910_v30 = vmul.f32 %v6163_v56, %v5892_v6  ;;  %v2938_v1 = vmul.f32 %v5902_v34, %v6875_v36  ;;  %v6884_v53 = vld [vmem:[#allocation52_spill] sm:$0xff] }
 0x38a   : > { %v3029_v16 = vadd.f32 %v3021_v18, %v3001_v46  ;;  %v2723_v14 = vadd.f32 %v2715_v45, %v2695_v35  ;;  %v2827_v24 = vmul.f32 %v6876_v48, %v5851_v42  ;;  %v2966_v15 = vmul.f32 %v5912_v5, %v6876_v48  ;;  %v6886_v35 = vld [vmem:[#allocation66_spill] sm:$0xff] }
 0x38b   : > { %4459 = vmatprep.mubr.msk.f32.mxu0 %vm1182_vm4, %v3094_v37  ;;  %v2862_v51 = vadd.f32 %v2854_v55, %v2834_v22  ;;  %v2855_v25 = vmul.f32 %v6877_v52, %v5855_v57  ;;  %v2994_v59 = vmul.f32 %v5938_v49, %v6877_v52  ;;  %v2883_v7 = vmul.f32 %v6878_v60, %v5859_v29 }
 0x38c   : > { %v3057_v28 = vadd.f32 %v3049_v44, %v3029_v16  ;;  %v2751_v2 = vadd.f32 %v2743_v43, %v2723_v14  ;;  %v3022_v31 = vmul.f32 %v5948_v32, %v6878_v60  ;;  %v2911_v62 = vmul.f32 %v6879_v39, %v5892_v6  ;;  %v3267_v14 = vld [vmem:[%s6883_s15 + $0x8] sm:$0xff] }
 0x38d   : > { %v2890_v63 = vadd.f32 %v2882_v10, %v2862_v51  ;;  %v3050_v21 = vmul.f32 %v5978_v41, %v6879_v39  ;;  %v2939_v26 = vmul.f32 %v5902_v34, %v6880_v61  ;;  %v2967_v13 = vmul.f32 %v5912_v5, %v6881_v17  ;;  %v4299_v51 = vld [vmem:[%s6885_s16] ss:$0 sm:$0xff]  ;;  %s6903_s16 = sld [smem:[#allocation15_spill]] }
 0x38e   : > { %v3072_v38 = vmul.f32 %v5998_v3, %v3057_v28  ;;  %v2779_v20 = vadd.f32 %v2771_v11, %v2751_v2  ;;  %v2995_v37 = vmul.f32 %v5938_v49, %v6882_v4  ;;  %v3023_v46 = vmul.f32 %v5948_v32, %v6884_v53  ;;  %v3266_v32 = vld [vmem:[%s6883_s15] sm:$0xff]  ;;  %v6894_v4 = vld [vmem:[#allocation19_spill] sm:$0xff] }
 0x38f   : > { %v2918_v47 = vadd.f32 %v2910_v30, %v2890_v63  ;;  %v3051_v5 = vmul.f32 %v5978_v41, %v6886_v35  ;;  %v4519_v43 = vpack.c.bf16 %v3267_v14, %v3266_v32  ;;  %v4300_v10 = vld [vmem:[%s6887_s18] ss:$0 sm:$0xff]  ;;  %v3509_v53 = vld [vmem:[#allocation2 + $0x8] sm:$0xff]  ;;  %s6904_s18 = sld [smem:[#allocation16_spill]] }
 0x390   : > { %v3087_v58 = vadd.f32 %v6009_v54, %v3072_v38  ;;  %v2807_v50 = vadd.f32 %v2799_v19, %v2779_v20  ;;  %v3479_v61 = vld [vmem:[%s6891_s1] sm:$0xff] }
 0x391   : > { %v2946_v56 = vadd.f32 %v2938_v1, %v2918_v47  ;;  %4520 = vmatprep.subr.bf16.mxu1 %v4519_v43 }
 0x392   : > { %v3095_v9 = vmax.f32 %v3087_v58, 0.0  ;;  %v2835_v40 = vadd.f32 %v2827_v24, %v2807_v50  ;;  %4522 = vmatpush3.bf16.msra.mxu1 %v4519_v43  ;;  %v6897_v43 = vld [vmem:[#allocation22_spill] sm:$0xff] }
 0x393   : > { %v2974_v42 = vadd.f32 %v2966_v15, %v2946_v56 }
 0x394   : > { %4460 = vmatmul.mubr.msk.f32.gmra.mrb[14].mxu0 %vm1182_vm4, %v3095_v9  ;;  %v2863_v8 = vadd.f32 %v2855_v25, %v2835_v40 }
 0x395   : > { %v3002_v57 = vadd.f32 %v2994_v59, %v2974_v42 }
 0x396   : > { %v2891_v12 = vadd.f32 %v2883_v7, %v2863_v8 }
 0x397   : > { %v3030_v0 = vadd.f32 %v3022_v31, %v3002_v57  ;;  %v3947_v57 = vld [vmem:[%s6888_s22] sm:$0xff]  ;;  %s6579_s22 = scalar_lea.vmem %s4772_s20, %s4789_s0 }
 0x398   : > { %v2919_v29 = vadd.f32 %v2911_v62, %v2891_v12  ;;  %4495 = vmatprep.subr.mxu1 %v3947_v57  ;;  %v6394_v12 = vld [vmem:[%s6890_s26] ss:$0 sm:$0xff] }
 0x399   : > { %v3058_v23 = vadd.f32 %v3050_v21, %v3030_v0  ;;  %v3771_v21 = vld [vmem:[%s6889_s23] sm:$0xff] }
 0x39a   : > { %v2947_v27 = vadd.f32 %v2939_v26, %v2919_v29  ;;  %4481 = vmatprep.subr.mxu0 %v3771_v21  ;;  %v6398_v0 = vld [vmem:[%s6892_s2] ss:$0 sm:$0xff] }
 0x39b   : > { %v3073_v6 = vmul.f32 %v5998_v3, %v3058_v23  ;;  %4482 = vmatpush3.msra.mxu0 %v3771_v21  ;;  %v6893_v23 = vld [vmem:[#allocation18_spill] sm:$0xff] }
 0x39c   : > { %v2975_v33 = vadd.f32 %v2967_v13, %v2947_v27  ;;  %v6403_v27 = vrot.slane %v3479_v61, %v6893_v23 }
 0x39d   : > { %v3088_v34 = vadd.f32 %v6009_v54, %v3073_v6 }
 0x39e   : > { %v3003_v18 = vadd.f32 %v2995_v37, %v2975_v33  ;;  %v6406_v37 = vrot.slane %v3479_v61, %v6894_v4  ;;  %v3481_v33 = vld [vmem:[#allocation2 + $0x7] sm:$0xff] }
 0x39f   : > { %v3096_v45 = vmax.f32 %v3088_v34, 0.0  ;;  %v3493_v35 = vmul.f32 %v6403_v27, %v3481_v33 }
 0x3a0   : > { %v3031_v22 = vadd.f32 %v3023_v46, %v3003_v18 }
 0x3a1   : > { %4462 = vmatprep.mubr.msk.f32.mxu0 %vm1182_vm4, %v3096_v45  ;;  %v6895_v45 = vld [vmem:[#allocation20_spill] sm:$0xff] }
 0x3a2   : > { %v3059_v49 = vadd.f32 %v3051_v5, %v3031_v22  ;;  %v3521_v5 = vmul.f32 %v6406_v37, %v3509_v53  ;;  %v6413_v22 = vrot.slane %v3479_v61, %v6895_v45 }
 0x3a4   : > { %v3074_v55 = vmul.f32 %v5998_v3, %v3059_v49  ;;  %v3537_v49 = vld [vmem:[#allocation2 + $0x9] sm:$0xff] }
 0x3a6   : > { %v3089_v16 = vadd.f32 %v6009_v54, %v3074_v55  ;;  %v3529_v55 = vadd.f32 %v3521_v5, %v3493_v35 }
 0x3a8   : > { %v3097_v44 = vmax.f32 %v3089_v16, 0.0  ;;  %v3549_v16 = vmul.f32 %v6413_v22, %v3537_v49 }
 0x3aa   : > { %4463 = vmatmul.mubr.msk.f32.gmra.mrb[16].mxu0 %vm1182_vm4, %v3097_v44  ;;  %v6896_v44 = vld [vmem:[#allocation21_spill] sm:$0xff]  ;;  %v3557_v14 = vadd.f32 %v3549_v16, %v3529_v55 }
 0x3ab   : > { %v6421_v32 = vrot.slane %v3479_v61, %v6896_v44 }
 0x42c   : > { %v4455_v41 = vpop.f32.mrb[10].mxu0 }
 0x42d   : > { %v3236_v28 = vmul.f32 %v4455_v41, %v4299_v51  ;;  %v3189_v2 = vpop.f32.mrb[11].mxu0 }
 0x42e   : > { %v3235_v11 = vmul.f32 %v4299_v51, %v3189_v2  ;;  %v6898_v2 = vld [vmem:[#allocation23_spill] sm:$0xff] }
 0x42f   : > { %v3251_v36 = vadd.f32 %v4300_v10, %v3236_v28 }
 0x430   : > { %v3250_v19 = vadd.f32 %v4300_v10, %v3235_v11  ;;  %v6428_v11 = vrot.slane %v3479_v61, %v6898_v2 }
 0x431   : > { %v3259_v3 = vmax.f32 %v3251_v36, 0.0 }
 0x432   : > { %v3258_v63 = vmax.f32 %v3250_v19, 0.0 }
 0x434   : > { %4469 = vmatprep.mubr.msk.f32.mxu1 %vm2144_vm6, %v3258_v63 }
 0x435   : > { %4470 = vmatmul.mubr.msk.f32.vlgmr.msra.gmra.mrb[14].mxu1 %vm2144_vm6, %v3259_v3  ;;  %v6899_v3 = vld [vmem:[#allocation24_spill] sm:$0xff] }
 0x436   : > { %4496 = vmatpush3.msra.mxu1 %v3947_v57 }
 0x44b   : > { %v4458_v54 = vpop.f32.mrb[12].mxu0 }
 0x44c   : > { %v3238_v30 = vmul.f32 %v4458_v54, %v4299_v51  ;;  %v3199_v1 = vpop.f32.mrb[13].mxu0  ;;  %v6432_v54 = vrot.slane %v3479_v61, %v6899_v3 }
 0x44d   : > { %v3237_v38 = vmul.f32 %v4299_v51, %v3199_v1 }
 0x44e   : > { %v3253_v20 = vadd.f32 %v4300_v10, %v3238_v30 }
 0x44f   : > { %v3252_v48 = vadd.f32 %v4300_v10, %v3237_v38 }
 0x450   : > { %v3261_v47 = vmax.f32 %v3253_v20, 0.0  ;;  %v6902_v20 = vld [vmem:[#allocation25_spill] sm:$0xff] }
 0x451   : > { %v3260_v24 = vmax.f32 %v3252_v48, 0.0  ;;  %v6436_v48 = vrot.slane %v3479_v61, %v6902_v20 }
 0x453   : > { %4472 = vmatprep.mubr.msk.f32.mxu1 %vm2144_vm6, %v3260_v24 }
 0x454   : > { %4473 = vmatmul.mubr.msk.f32.gmra.mrb[16].mxu1 %vm2144_vm6, %v3261_v47 }
 0x467   : > { %v4461_v15 = vpop.f32.mrb[14].mxu0 }
 0x468   : > { %v3240_v58 = vmul.f32 %v4461_v15, %v4299_v51  ;;  %v3209_v50 = vpop.f32.mrb[15].mxu0 }
 0x469   : > { %v3239_v52 = vmul.f32 %v4299_v51, %v3209_v50 }
 0x46a   : > { %v3255_v25 = vadd.f32 %v4300_v10, %v3240_v58  ;;  %v6440_v58 = vld [vmem:[%s6891_s1 + $0x8] ss:$0 sm:$0xff] }
 0x46b   : > { %v3254_v56 = vadd.f32 %v4300_v10, %v3239_v52 }
 0x46c   : > { %v3263_v9 = vmax.f32 %v3255_v25, 0.0 }
 0x46d   : > { %v3262_v59 = vmax.f32 %v3254_v56, 0.0 }
 0x46f   : > { %4475 = vmatprep.mubr.msk.f32.mxu1 %vm2144_vm6, %v3262_v59 }
 0x470   : > { %4476 = vmatmul.mubr.msk.f32.gmra.mrb[18].mxu1 %vm2144_vm6, %v3263_v9 }
 0x47d   : > { %v4464_v40 = vpop.f32.mrb[16].mxu0 }
 0x47e   : > { %v3242_v60 = vmul.f32 %v4464_v40, %v4299_v51  ;;  %v3219_v7 = vpop.f32.mrb[17].mxu0 }
 0x47f   : > { %v3241_v42 = vmul.f32 %v4299_v51, %v3219_v7  ;;  %v6424_v51 = vrot.slane %v3479_v61, %v6897_v43 }
 0x480   : > { %v3257_v31 = vadd.f32 %v4300_v10, %v3242_v60  ;;  %v6447_v60 = vld [vmem:[%s6900_s7] ss:$0 sm:$0xff] }
 0x481   : > { %v3256_v8 = vadd.f32 %v4300_v10, %v3241_v42  ;;  %v6450_v42 = vld [vmem:[%s6901_s10] ss:$0 sm:$0xff] }
 0x482   : > { %v3265_v62 = vmax.f32 %v3257_v31, 0.0 }
 0x483   : > { %v3264_v39 = vmax.f32 %v3256_v8, 0.0 }
 0x485   : > { %4478 = vmatprep.mubr.msk.f32.mxu1 %vm2144_vm6, %v3264_v39 }
 0x486   : > { %4479 = vmatmul.mubr.msk.f32.gmra.mrb[20].mxu1 %vm2144_vm6, %v3265_v62 }
 0x508   : > { %v4471_v26 = vpop.f32.mrb[14].mxu1 }
 0x509   : > { %v3405_v29 = vmul.f32 %v4471_v26, %v6394_v12  ;;  %v3358_v17 = vpop.f32.mrb[15].mxu1 }
 0x50a   : > { %v3404_v13 = vmul.f32 %v6394_v12, %v3358_v17 }
 0x50b   : > { %v3420_v6 = vadd.f32 %v6398_v0, %v3405_v29 }
 0x50c   : > { %v3419_v46 = vadd.f32 %v6398_v0, %v3404_v13 }
 0x50d   : > { %v3428_v34 = vmax.f32 %v3420_v6, 0.0 }
 0x50e   : > { %v3427_v18 = vmax.f32 %v3419_v46, 0.0 }
 0x50f   : > { %3472 = vst.msk [vmem:[#allocation2 + $0x38] sm:$0xff] %vm1182_vm4, %v3428_v34 }
 0x510   : > { %3471 = vst.msk [vmem:[#allocation2 + $0x20] sm:$0xff] %vm1182_vm4, %v3427_v18  ;;  %4497 = vmatprep.mubr.msk.f32.mxu1 %vm1182_vm4, %v3427_v18 }
 0x511   : > { %4498 = vmatmul.mubr.msk.f32.vlgmr.msra.gmra.mrb[22].mxu1 %vm1182_vm4, %v3428_v34 }
 0x516   : > { %v3649_v30 = vld [vmem:[#allocation2 + $0x37] sm:$0xff] }
 0x517   : > { %v3565_v41 = vld [vmem:[#allocation2 + $0x1f] sm:$0xff]  ;;  %v3661_v15 = vmul.f32 %v6432_v54, %v3649_v30  ;;  %v3578_v4 = vmul.f32 %v3649_v30, %v6421_v32  ;;  %v3495_v34 = vmul.f32 %v3649_v30, %v6403_v27 }
 0x518   : > { %v3593_v10 = vld [vmem:[#allocation2 + $0x20] sm:$0xff]  ;;  %v3577_v28 = vmul.f32 %v6421_v32, %v3565_v41  ;;  %v3677_v24 = vld [vmem:[#allocation2 + $0x38] sm:$0xff]  ;;  %v3494_v56 = vmul.f32 %v3565_v41, %v6403_v27 }
 0x519   : > { %v3621_v36 = vld [vmem:[#allocation2 + $0x21] sm:$0xff]  ;;  %v3605_v63 = vmul.f32 %v6424_v51, %v3593_v10  ;;  %v3705_v50 = vld [vmem:[#allocation2 + $0x39] sm:$0xff]  ;;  %v3689_v25 = vmul.f32 %v6436_v48, %v3677_v24  ;;  %v3522_v59 = vmul.f32 %v3593_v10, %v6406_v37  ;;  %v3606_v46 = vmul.f32 %v3677_v24, %v6424_v51 }
 0x51a   : > { %v3585_v19 = vadd.f32 %v3577_v28, %v3557_v14  ;;  %v3633_v38 = vmul.f32 %v6428_v11, %v3621_v36  ;;  %v3717_v40 = vmul.f32 %v6440_v58, %v3705_v50  ;;  %v3550_v62 = vmul.f32 %v3621_v36, %v6413_v22 }
 0x51b   : > { %v3530_v31 = vadd.f32 %v3522_v59, %v3494_v56  ;;  %v3523_v18 = vmul.f32 %v3677_v24, %v6406_v37  ;;  %v3634_v5 = vmul.f32 %v3705_v50, %v6428_v11  ;;  %v3551_v55 = vmul.f32 %v3705_v50, %v6413_v22 }
 0x51c   : > { %v3613_v1 = vadd.f32 %v3605_v63, %v3585_v19 }
 0x51d   : > { %v3558_v29 = vadd.f32 %v3550_v62, %v3530_v31  ;;  %v3531_v45 = vadd.f32 %v3523_v18, %v3495_v34 }
 0x51e   : > { %v3641_v47 = vadd.f32 %v3633_v38, %v3613_v1 }
 0x51f   : > { %v3586_v53 = vadd.f32 %v3578_v4, %v3558_v29  ;;  %v3559_v43 = vadd.f32 %v3551_v55, %v3531_v45 }
 0x520   : > { %v3669_v52 = vadd.f32 %v3661_v15, %v3641_v47 }
 0x521   : > { %v3614_v35 = vadd.f32 %v3606_v46, %v3586_v53 }
 0x522   : > { %v3697_v9 = vadd.f32 %v3689_v25, %v3669_v52 }
 0x523   : > { %v3642_v49 = vadd.f32 %v3634_v5, %v3614_v35 }
 0x524   : > { %v3725_v7 = vadd.f32 %v3717_v40, %v3697_v9 }
 0x526   : > { %v3740_v8 = vmul.f32 %v6447_v60, %v3725_v7 }
 0x527   : > { %v4474_v39 = vpop.f32.mrb[16].mxu1 }
 0x528   : > { %v3407_v57 = vmul.f32 %v4474_v39, %v6394_v12  ;;  %v3368_v21 = vpop.f32.mrb[17].mxu1  ;;  %v3755_v61 = vadd.f32 %v6450_v42, %v3740_v8 }
 0x529   : > { %v3406_v26 = vmul.f32 %v6394_v12, %v3368_v21 }
 0x52a   : > { %v3422_v17 = vadd.f32 %v6398_v0, %v3407_v57  ;;  %v3763_v13 = vmax.f32 %v3755_v61, 0.0 }
 0x52b   : > { %v3421_v23 = vadd.f32 %v6398_v0, %v3406_v26 }
 0x52c   : > { %v3430_v6 = vmax.f32 %v3422_v17, 0.0  ;;  %4483 = vmatprep.mubr.msk.f32.mxu0 %vm1182_vm4, %v3763_v13 }
 0x52d   : > { %v3429_v33 = vmax.f32 %v3421_v23, 0.0 }
 0x52e   : > { %3474 = vst.msk [vmem:[#allocation2 + $0x68] sm:$0xff] %vm1182_vm4, %v3430_v6 }
 0x52f   : > { %3473 = vst.msk [vmem:[#allocation2 + $0x50] sm:$0xff] %vm1182_vm4, %v3429_v33  ;;  %4500 = vmatprep.mubr.msk.f32.mxu1 %vm1182_vm4, %v3429_v33 }
 0x530   : > { %4501 = vmatmul.mubr.msk.f32.gmra.mrb[24].mxu1 %vm1182_vm4, %v3430_v6 }
 0x535   : > { %v3651_v63 = vld [vmem:[#allocation2 + $0x67] sm:$0xff] }
 0x536   : > { %v3650_v16 = vld [vmem:[#allocation2 + $0x4f] sm:$0xff]  ;;  %v3663_v15 = vmul.f32 %v6432_v54, %v3651_v63  ;;  %v3580_v53 = vmul.f32 %v3651_v63, %v6421_v32  ;;  %v3497_v5 = vmul.f32 %v3651_v63, %v6403_v27 }
 0x537   : > { %v3678_v44 = vld [vmem:[#allocation2 + $0x50] sm:$0xff]  ;;  %v3662_v14 = vmul.f32 %v6432_v54, %v3650_v16  ;;  %v3579_v41 = vmul.f32 %v3650_v16, %v6421_v32  ;;  %v3679_v20 = vld [vmem:[#allocation2 + $0x68] sm:$0xff]  ;;  %v3496_v59 = vmul.f32 %v3650_v16, %v6403_v27 }
 0x538   : > { %v3706_v10 = vld [vmem:[#allocation2 + $0x51] sm:$0xff]  ;;  %v3690_v2 = vmul.f32 %v6436_v48, %v3678_v44  ;;  %v3607_v19 = vmul.f32 %v3678_v44, %v6424_v51  ;;  %v3691_v50 = vmul.f32 %v6436_v48, %v3679_v20  ;;  %v3707_v52 = vld [vmem:[#allocation2 + $0x69] sm:$0xff]  ;;  %v3524_v9 = vmul.f32 %v3678_v44, %v6406_v37 }
 0x539   : > { %v3670_v28 = vadd.f32 %v3662_v14, %v3642_v49  ;;  %v3587_v36 = vadd.f32 %v3579_v41, %v3559_v43  ;;  %v3718_v30 = vmul.f32 %v6440_v58, %v3706_v10  ;;  %v3635_v38 = vmul.f32 %v3706_v10, %v6428_v11 }
 0x53a   : > { %v3719_v31 = vmul.f32 %v6440_v58, %v3707_v52  ;;  %v3532_v62 = vadd.f32 %v3524_v9, %v3496_v59  ;;  %v3552_v61 = vmul.f32 %v3706_v10, %v6413_v22  ;;  %v3608_v35 = vmul.f32 %v3679_v20, %v6424_v51 }
 0x53b   : > { %v3698_v3 = vadd.f32 %v3690_v2, %v3670_v28  ;;  %v3615_v1 = vadd.f32 %v3607_v19, %v3587_v36  ;;  %v3525_v45 = vmul.f32 %v3679_v20, %v6406_v37  ;;  %v3636_v55 = vmul.f32 %v3707_v52, %v6428_v11 }
 0x53c   : > { %v3560_v23 = vadd.f32 %v3552_v61, %v3532_v62  ;;  %v3553_v14 = vmul.f32 %v3707_v52, %v6413_v22 }
 0x53d   : > { %v3726_v24 = vadd.f32 %v3718_v30, %v3698_v3  ;;  %v3643_v47 = vadd.f32 %v3635_v38, %v3615_v1  ;;  %v3533_v16 = vadd.f32 %v3525_v45, %v3497_v5 }
 0x53e   : > { %v3588_v18 = vadd.f32 %v3580_v53, %v3560_v23 }
 0x53f   : > { %v3741_v25 = vmul.f32 %v6447_v60, %v3726_v24  ;;  %v3671_v56 = vadd.f32 %v3663_v15, %v3643_v47  ;;  %v3561_v2 = vadd.f32 %v3553_v14, %v3533_v16 }
 0x540   : > { %v3616_v49 = vadd.f32 %v3608_v35, %v3588_v18 }
 0x541   : > { %v3756_v40 = vadd.f32 %v6450_v42, %v3741_v25  ;;  %v3699_v7 = vadd.f32 %v3691_v50, %v3671_v56 }
 0x542   : > { %v3644_v44 = vadd.f32 %v3636_v55, %v3616_v49 }
 0x543   : > { %v3764_v8 = vmax.f32 %v3756_v40, 0.0  ;;  %v3727_v39 = vadd.f32 %v3719_v31, %v3699_v7  ;;  %v4477_v57 = vpop.f32.mrb[18].mxu1 }
 0x544   : > { %v3409_v26 = vmul.f32 %v4477_v57, %v6394_v12  ;;  %v3378_v29 = vpop.f32.mrb[19].mxu1 }
 0x545   : > { %4484 = vmatmul.mubr.msk.f32.vlgmr.msra.gmra.mrb[18].mxu0 %vm1182_vm4, %v3764_v8  ;;  %v3742_v21 = vmul.f32 %v6447_v60, %v3727_v39  ;;  %v3408_v17 = vmul.f32 %v6394_v12, %v3378_v29 }
 0x546   : > { %v3424_v4 = vadd.f32 %v6398_v0, %v3409_v26 }
 0x547   : > { %v3757_v13 = vadd.f32 %v6450_v42, %v3742_v21  ;;  %v3423_v6 = vadd.f32 %v6398_v0, %v3408_v17 }
 0x548   : > { %v3432_v46 = vmax.f32 %v3424_v4, 0.0 }
 0x549   : > { %v3765_v33 = vmax.f32 %v3757_v13, 0.0  ;;  %v3431_v34 = vmax.f32 %v3423_v6, 0.0 }
 0x54a   : > { %3476 = vst.msk [vmem:[#allocation2 + $0x98] sm:$0xff] %vm1182_vm4, %v3432_v46 }
 0x54b   : > { %4486 = vmatprep.mubr.msk.f32.mxu0 %vm1182_vm4, %v3765_v33  ;;  %3475 = vst.msk [vmem:[#allocation2 + $0x80] sm:$0xff] %vm1182_vm4, %v3431_v34  ;;  %4503 = vmatprep.mubr.msk.f32.mxu1 %vm1182_vm4, %v3431_v34 }
 0x54c   : > { %4504 = vmatmul.mubr.msk.f32.gmra.mrb[26].mxu1 %vm1182_vm4, %v3432_v46 }
 0x551   : > { %v3653_v24 = vld [vmem:[#allocation2 + $0x97] sm:$0xff] }
 0x552   : > { %v3652_v43 = vld [vmem:[#allocation2 + $0x7f] sm:$0xff]  ;;  %v3665_v40 = vmul.f32 %v6432_v54, %v3653_v24  ;;  %v3582_v6 = vmul.f32 %v3653_v24, %v6421_v32  ;;  %v3499_v53 = vmul.f32 %v3653_v24, %v6403_v27 }
 0x553   : > { %v3680_v41 = vld [vmem:[#allocation2 + $0x80] sm:$0xff]  ;;  %v3664_v10 = vmul.f32 %v6432_v54, %v3652_v43  ;;  %v3581_v36 = vmul.f32 %v3652_v43, %v6421_v32  ;;  %v3498_v19 = vmul.f32 %v3652_v43, %v6403_v27  ;;  %v3681_v52 = vld [vmem:[#allocation2 + $0x98] sm:$0xff] }
 0x554   : > { %v3708_v28 = vld [vmem:[#allocation2 + $0x81] sm:$0xff]  ;;  %v3526_v63 = vmul.f32 %v3680_v41, %v6406_v37  ;;  %v3692_v30 = vmul.f32 %v6436_v48, %v3680_v41  ;;  %v3609_v38 = vmul.f32 %v3680_v41, %v6424_v51  ;;  %v3709_v7 = vld [vmem:[#allocation2 + $0x99] sm:$0xff]  ;;  %v3693_v62 = vmul.f32 %v6436_v48, %v3681_v52 }
 0x555   : > { %v3672_v3 = vadd.f32 %v3664_v10, %v3644_v44  ;;  %v3589_v1 = vadd.f32 %v3581_v36, %v3561_v2  ;;  %v3720_v20 = vmul.f32 %v6440_v58, %v3708_v28  ;;  %v3637_v50 = vmul.f32 %v3708_v28, %v6428_v11 }
 0x556   : > { %v3534_v25 = vadd.f32 %v3526_v63, %v3498_v19  ;;  %v3554_v31 = vmul.f32 %v3708_v28, %v6413_v22  ;;  %v3721_v17 = vmul.f32 %v6440_v58, %v3709_v7  ;;  %v3610_v5 = vmul.f32 %v3681_v52, %v6424_v51 }
 0x557   : > { %v3700_v47 = vadd.f32 %v3692_v30, %v3672_v3  ;;  %v3617_v15 = vadd.f32 %v3609_v38, %v3589_v1  ;;  %v3638_v44 = vmul.f32 %v3709_v7, %v6428_v11  ;;  %v3555_v14 = vmul.f32 %v3709_v7, %v6413_v22 }
 0x558   : > { %v3562_v26 = vadd.f32 %v3554_v31, %v3534_v25 }
 0x559   : > { %v4480_v56 = vpop.f32.mrb[20].mxu1  ;;  %v3728_v59 = vadd.f32 %v3720_v20, %v3700_v47  ;;  %v3645_v9 = vadd.f32 %v3637_v50, %v3617_v15 }
 0x55a   : > { %v3411_v8 = vmul.f32 %v4480_v56, %v6394_v12  ;;  %v3388_v39 = vpop.f32.mrb[21].mxu1  ;;  %v3590_v35 = vadd.f32 %v3582_v6, %v3562_v26 }
 0x55b   : > { %v3410_v57 = vmul.f32 %v6394_v12, %v3388_v39  ;;  %v3743_v21 = vmul.f32 %v6447_v60, %v3728_v59  ;;  %v3673_v61 = vadd.f32 %v3665_v40, %v3645_v9  ;;  %v3527_v12 = vmul.f32 %v3681_v52, %v6406_v37 }
 0x55c   : > { %v3426_v29 = vadd.f32 %v6398_v0, %v3411_v8  ;;  %v3618_v49 = vadd.f32 %v3610_v5, %v3590_v35  ;;  %v3656_v8 = vld [vmem:[#allocation2 + $0xdf] sm:$0xff] }
 0x55d   : > { %v3425_v13 = vadd.f32 %v6398_v0, %v3410_v57  ;;  %v3758_v23 = vadd.f32 %v6450_v42, %v3743_v21  ;;  %v3701_v4 = vadd.f32 %v3693_v62, %v3673_v61  ;;  %v3535_v55 = vadd.f32 %v3527_v12, %v3499_v53  ;;  %v3684_v61 = vld [vmem:[#allocation2 + $0xe0] sm:$0xff] }
 0x55e   : > { %v3434_v33 = vmax.f32 %v3426_v29, 0.0  ;;  %v3646_v43 = vadd.f32 %v3638_v44, %v3618_v49  ;;  %v4333_v49 = vld [vmem:[%s4767_s12] ss:$0 sm:$0xff] }
 0x55f   : > { %v3433_v46 = vmax.f32 %v3425_v13, 0.0  ;;  %v3766_v34 = vmax.f32 %v3758_v23, 0.0  ;;  %v3729_v18 = vadd.f32 %v3721_v17, %v3701_v4  ;;  %v3563_v41 = vadd.f32 %v3555_v14, %v3535_v55  ;;  %v3712_v4 = vld [vmem:[#allocation2 + $0xe1] sm:$0xff] }
 0x560   : > { %3478 = vst.msk [vmem:[#allocation2 + $0xc8] sm:$0xff] %vm1182_vm4, %v3434_v33 }
 0x561   : > { %3477 = vst.msk [vmem:[#allocation2 + $0xb0] sm:$0xff] %vm1182_vm4, %v3433_v46  ;;  %4506 = vmatprep.mubr.msk.f32.mxu1 %vm1182_vm4, %v3433_v46  ;;  %4487 = vmatmul.mubr.msk.f32.gmra.mrb[20].mxu0 %vm1182_vm4, %v3766_v34  ;;  %v3744_v0 = vmul.f32 %v6447_v60, %v3729_v18  ;;  %v3724_v46 = vmul.f32 %v6440_v58, %v3712_v4 }
 0x562   : > { %4507 = vmatmul.mubr.msk.f32.gmra.mrb[28].mxu1 %vm1182_vm4, %v3434_v33 }
 0x563   : > { %v3759_v45 = vadd.f32 %v6450_v42, %v3744_v0 }
 0x565   : > { %v3767_v16 = vmax.f32 %v3759_v45, 0.0 }
 0x567   : > { %4489 = vmatprep.mubr.msk.f32.mxu0 %vm1182_vm4, %v3767_v16  ;;  %v3655_v24 = vld [vmem:[#allocation2 + $0xc7] sm:$0xff] }
 0x568   : > { %v3654_v10 = vld [vmem:[#allocation2 + $0xaf] sm:$0xff]  ;;  %v3667_v7 = vmul.f32 %v6432_v54, %v3655_v24 }
 0x569   : > { %v3682_v28 = vld [vmem:[#allocation2 + $0xb0] sm:$0xff]  ;;  %v3666_v2 = vmul.f32 %v6432_v54, %v3654_v10  ;;  %v3583_v19 = vmul.f32 %v3654_v10, %v6421_v32  ;;  %v3500_v63 = vmul.f32 %v3654_v10, %v6403_v27  ;;  %v3683_v59 = vld [vmem:[#allocation2 + $0xc8] sm:$0xff] }
 0x56a   : > { %v3710_v36 = vld [vmem:[#allocation2 + $0xb1] sm:$0xff]  ;;  %v3528_v3 = vmul.f32 %v3682_v28, %v6406_v37  ;;  %v3694_v1 = vmul.f32 %v6436_v48, %v3682_v28  ;;  %v3611_v20 = vmul.f32 %v3682_v28, %v6424_v51  ;;  %v3584_v37 = vmul.f32 %v3655_v24, %v6421_v32  ;;  %v3711_v31 = vld [vmem:[#allocation2 + $0xc9] sm:$0xff] }
 0x56b   : > { %v3674_v30 = vadd.f32 %v3666_v2, %v3646_v43  ;;  %v3591_v38 = vadd.f32 %v3583_v19, %v3563_v41  ;;  %v3556_v15 = vmul.f32 %v3710_v36, %v6413_v22  ;;  %v3722_v52 = vmul.f32 %v6440_v58, %v3710_v36 }
 0x56c   : > { %v3536_v47 = vadd.f32 %v3528_v3, %v3500_v63  ;;  %v3639_v56 = vmul.f32 %v3710_v36, %v6428_v11  ;;  %v3612_v62 = vmul.f32 %v3683_v59, %v6424_v51  ;;  %v3695_v21 = vmul.f32 %v6436_v48, %v3683_v59 }
 0x56d   : > { %v3702_v50 = vadd.f32 %v3694_v1, %v3674_v30  ;;  %v3619_v25 = vadd.f32 %v3611_v20, %v3591_v38  ;;  %v3640_v29 = vmul.f32 %v3711_v31, %v6428_v11  ;;  %v3668_v32 = vmul.f32 %v6432_v54, %v3656_v8  ;;  %v4322_v30 = vld [vmem:[%s6903_s16] ss:$0 sm:$0xff] }
 0x56e   : > { %v3564_v27 = vadd.f32 %v3556_v15, %v3536_v47  ;;  %v3723_v23 = vmul.f32 %v6440_v58, %v3711_v31  ;;  %v3696_v51 = vmul.f32 %v6436_v48, %v3684_v61  ;;  %v4332_v58 = vld [vmem:[%s4762_s4] ss:$0 sm:$0xff] }
 0x56f   : > { %v3730_v9 = vadd.f32 %v3722_v52, %v3702_v50  ;;  %v3647_v40 = vadd.f32 %v3639_v56, %v3619_v25  ;;  %v4323_v38 = vld [vmem:[%s6904_s18] ss:$0 sm:$0xff] }
 0x570   : > { %v3592_v39 = vadd.f32 %v3584_v37, %v3564_v27 }
 0x571   : > { %v3745_v22 = vmul.f32 %v6447_v60, %v3730_v9  ;;  %v3675_v57 = vadd.f32 %v3667_v7, %v3647_v40 }
 0x572   : > { %v3620_v26 = vadd.f32 %v3612_v62, %v3592_v39 }
 0x573   : > { %v3760_v17 = vadd.f32 %v6450_v42, %v3745_v22  ;;  %v3703_v13 = vadd.f32 %v3695_v21, %v3675_v57 }
 0x574   : > { %v3648_v6 = vadd.f32 %v3640_v29, %v3620_v26 }
 0x575   : > { %v3768_v33 = vmax.f32 %v3760_v17, 0.0  ;;  %v3731_v53 = vadd.f32 %v3723_v23, %v3703_v13 }
 0x576   : > { %v3676_v12 = vadd.f32 %v3668_v32, %v3648_v6 }
 0x577   : > { %4490 = vmatmul.mubr.msk.f32.gmra.mrb[22].mxu0 %vm1182_vm4, %v3768_v33  ;;  %v3746_v11 = vmul.f32 %v6447_v60, %v3731_v53 }
 0x578   : > { %v3704_v54 = vadd.f32 %v3696_v51, %v3676_v12 }
 0x579   : > { %v3761_v34 = vadd.f32 %v6450_v42, %v3746_v11 }
 0x57a   : > { %v3732_v18 = vadd.f32 %v3724_v46, %v3704_v54 }
 0x57b   : > { %v3769_v35 = vmax.f32 %v3761_v34, 0.0 }
 0x57c   : > { %v3747_v48 = vmul.f32 %v6447_v60, %v3732_v18 }
 0x57d   : > { %4492 = vmatprep.mubr.msk.f32.mxu0 %vm1182_vm4, %v3769_v35 }
 0x57e   : > { %v3762_v0 = vadd.f32 %v6450_v42, %v3747_v48 }
 0x580   : > { %v3770_v5 = vmax.f32 %v3762_v0, 0.0 }
 0x582   : > { %4493 = vmatmul.mubr.msk.f32.gmra.mrb[24].mxu0 %vm1182_vm4, %v3770_v5 }
 0x5e4   : > { %v4499_v45 = vpop.f32.mrb[22].mxu1 }
 0x5e5   : > { %v4085_v55 = vmul.f32 %v4499_v45, %v4332_v58  ;;  %v4038_v16 = vpop.f32.mrb[23].mxu1 }
 0x5e6   : > { %v4084_v44 = vmul.f32 %v4332_v58, %v4038_v16 }
 0x5e7   : > { %v4100_v14 = vadd.f32 %v4333_v49, %v4085_v55 }
 0x5e8   : > { %v4099_v60 = vadd.f32 %v4333_v49, %v4084_v44 }
 0x5e9   : > { %v4108_v43 = vmax.f32 %v4100_v14, 0.0 }
 0x5ea   : > { %v4107_v42 = vmax.f32 %v4099_v60, 0.0 }
 0x5eb   : > { %4116 = vst.msk [vmem:[%s6565_s11 + $0x8] sm:$0xff] %vm1182_vm4, %v4108_v43 }
 0x5ec   : > { %4115 = vst.msk [vmem:[%s6565_s11] sm:$0xff] %vm1182_vm4, %v4107_v42 }
 0x603   : > { %v4502_v41 = vpop.f32.mrb[24].mxu1 }
 0x604   : > { %v4087_v10 = vmul.f32 %v4502_v41, %v4332_v58  ;;  %v4048_v28 = vpop.f32.mrb[25].mxu1 }
 0x605   : > { %v4086_v2 = vmul.f32 %v4332_v58, %v4048_v28 }
 0x606   : > { %v4102_v36 = vadd.f32 %v4333_v49, %v4087_v10 }
 0x607   : > { %v4101_v19 = vadd.f32 %v4333_v49, %v4086_v2 }
 0x608   : > { %v4110_v63 = vmax.f32 %v4102_v36, 0.0 }
 0x609   : > { %v4109_v3 = vmax.f32 %v4101_v19, 0.0 }
 0x60a   : > { %4118 = vst.msk [vmem:[%s6565_s11 + $0x18] sm:$0xff] %vm1182_vm4, %v4110_v63 }
 0x60b   : > { %4117 = vst.msk [vmem:[%s6565_s11 + $0x10] sm:$0xff] %vm1182_vm4, %v4109_v3 }
 0x618   : > { %v4485_v1 = vpop.f32.mrb[18].mxu0 }
 0x619   : > { %v3909_v20 = vmul.f32 %v4485_v1, %v4322_v30  ;;  %v3862_v24 = vpop.f32.mrb[19].mxu0 }
 0x61a   : > { %v3908_v47 = vmul.f32 %v4322_v30, %v3862_v24 }
 0x61b   : > { %v3924_v15 = vadd.f32 %v4323_v38, %v3909_v20 }
 0x61c   : > { %v3923_v50 = vadd.f32 %v4323_v38, %v3908_v47 }
 0x61d   : > { %v3932_v52 = vmax.f32 %v3924_v15, 0.0 }
 0x61e   : > { %v3931_v25 = vmax.f32 %v3923_v50, 0.0 }
 0x61f   : > { %3940 = vst.msk [vmem:[%s6579_s22 + $0x8] sm:$0xff] %vm2144_vm6, %v3932_v52  ;;  %v4505_v56 = vpop.f32.mrb[26].mxu1 }
 0x620   : > { %3939 = vst.msk [vmem:[%s6579_s22] sm:$0xff] %vm2144_vm6, %v3931_v25  ;;  %v4089_v59 = vmul.f32 %v4505_v56, %v4332_v58  ;;  %v4058_v27 = vpop.f32.mrb[27].mxu1 }
 0x621   : > { %v4088_v37 = vmul.f32 %v4332_v58, %v4058_v27 }
 0x622   : > { %v4104_v9 = vadd.f32 %v4333_v49, %v4089_v59 }
 0x623   : > { %v4103_v40 = vadd.f32 %v4333_v49, %v4088_v37 }
 0x624   : > { %v4112_v7 = vmax.f32 %v4104_v9, 0.0 }
 0x625   : > { %v4111_v31 = vmax.f32 %v4103_v40, 0.0 }
 0x626   : > { %4120 = vst.msk [vmem:[%s6565_s11 + $0x28] sm:$0xff] %vm1182_vm4, %v4112_v7 }
 0x627   : > { %4119 = vst.msk [vmem:[%s6565_s11 + $0x20] sm:$0xff] %vm1182_vm4, %v4111_v31 }
 0x634   : > { %v4488_v8 = vpop.f32.mrb[20].mxu0 }
 0x635   : > { %v4508_v39 = vpop.f32.mrb[28].mxu1  ;;  %v3911_v62 = vmul.f32 %v4488_v8, %v4322_v30  ;;  %v3872_v22 = vpop.f32.mrb[21].mxu0 }
 0x636   : > { %v4091_v57 = vmul.f32 %v4508_v39, %v4332_v58  ;;  %v4068_v21 = vpop.f32.mrb[29].mxu1  ;;  %v3910_v61 = vmul.f32 %v4322_v30, %v3872_v22 }
 0x637   : > { %v4090_v26 = vmul.f32 %v4332_v58, %v4068_v21  ;;  %v3926_v29 = vadd.f32 %v4323_v38, %v3911_v62 }
 0x638   : > { %v4106_v32 = vadd.f32 %v4333_v49, %v4091_v57  ;;  %v3925_v17 = vadd.f32 %v4323_v38, %v3910_v61 }
 0x639   : > { %v4105_v13 = vadd.f32 %v4333_v49, %v4090_v26  ;;  %v3934_v23 = vmax.f32 %v3926_v29, 0.0 }
 0x63a   : > { %v4114_v4 = vmax.f32 %v4106_v32, 0.0  ;;  %v3933_v6 = vmax.f32 %v3925_v17, 0.0 }
 0x63b   : > { %v4113_v51 = vmax.f32 %v4105_v13, 0.0  ;;  %3942 = vst.msk [vmem:[%s6579_s22 + $0x18] sm:$0xff] %vm2144_vm6, %v3934_v23 }
 0x63c   : > { %4122 = vst.msk [vmem:[%s6565_s11 + $0x38] sm:$0xff] %vm1182_vm4, %v4114_v4 }
 0x63d   : > { %3941 = vst.msk [vmem:[%s6579_s22 + $0x10] sm:$0xff] %vm2144_vm6, %v3933_v6 }
 0x63e   : > { %4121 = vst.msk [vmem:[%s6565_s11 + $0x30] sm:$0xff] %vm1182_vm4, %v4113_v51 }
 0x64a   : > { %v4491_v33 = vpop.f32.mrb[22].mxu0 }
 0x64b   : > { %v3913_v53 = vmul.f32 %v4491_v33, %v4322_v30  ;;  %v3882_v12 = vpop.f32.mrb[23].mxu0 }
 0x64c   : > { %v3912_v46 = vmul.f32 %v4322_v30, %v3882_v12 }
 0x64d   : > { %v3928_v11 = vadd.f32 %v4323_v38, %v3913_v53 }
 0x64e   : > { %v3927_v54 = vadd.f32 %v4323_v38, %v3912_v46 }
 0x64f   : > { %v3936_v34 = vmax.f32 %v3928_v11, 0.0 }
 0x650   : > { %v3935_v18 = vmax.f32 %v3927_v54, 0.0 }
 0x651   : > { %3944 = vst.msk [vmem:[%s6579_s22 + $0x28] sm:$0xff] %vm2144_vm6, %v3936_v34 }
 0x652   : > { %3943 = vst.msk [vmem:[%s6579_s22 + $0x20] sm:$0xff] %vm2144_vm6, %v3935_v18 }
 0x655   : > { %v4494_v35 = vpop.f32.mrb[24].mxu0 }
 0x656   : > { %v3915_v48 = vmul.f32 %v4494_v35, %v4322_v30  ;;  %v3892_v0 = vpop.f32.mrb[25].mxu0 }
 0x657   : > { %v3914_v5 = vmul.f32 %v4322_v30, %v3892_v0 }
 0x658   : > { %v3930_v58 = vadd.f32 %v4323_v38, %v3915_v48 }
 0x659   : > { %v3929_v45 = vadd.f32 %v4323_v38, %v3914_v5 }
 0x65a   : > { %v3938_v49 = vmax.f32 %v3930_v58, 0.0 }
 0x65b   : > { %v3937_v55 = vmax.f32 %v3929_v45, 0.0 }
 0x65c   : > { %3946 = vst.msk [vmem:[%s6579_s22 + $0x38] sm:$0xff] %vm2144_vm6, %v3938_v49 }
 0x65d   : > { %3945 = vst.msk [vmem:[%s6579_s22 + $0x30] sm:$0xff] %vm2144_vm6, %v3937_v55 }
 0x65e PF: > { %s76_s28 = sadd.s32 1, %s4573_s28  }
 0x65f   : > { %p73_p4 = scmp.ge.s32.totalorder %s76_s28, 4  }
 0x661   :  { %75 = sbr.rel (!%p73_p4) target bundleno = 49 (0x31), region = 222 }

</bundles_post_ra>
